<compile_context>
chip_gen: v5e
topology: v5e:2x2
jax: 0.10.0
libtpu: 0.0.40
codegen_flags: <defaults>
</compile_context>

<pallas_src>
import math
from functools import partial

import jax
import jax.numpy as jnp
from jax.experimental import pallas as pl
from jax.experimental.pallas import tpu as pltpu  # noqa: F401  (TPU backend)

HP = 128  # lane-padded feature width (H=32 real lanes, rest zero)


# --------------------------------------------------------------------------
# In-kernel building blocks
# --------------------------------------------------------------------------
def _conv_and_score(x, src_col, dst_row, ea, mask, w_big, b_big, *, h):
    """Fused GraphConvE (H->H, relu) + SAGPool score GraphConv (H->1).

    x:       (N, HP)  node features (lanes >= h are zero)
    src_col: (E, 1)   int32 source node ids
    dst_row: (1, E)   int32 destination node ids
    ea:      (E, HP)  edge_attr embedding (conv edge weight), lane padded
    mask:    (E, 1)   live-edge mask (score-GNN edge weight, kills dead edges)
    w_big:   (3*HP, HP) bf16 packed [w_rel | sw_rel | w_root+sw_root] block matrix
    b_big:   (1, HP)  f32 packed bias (cols [0:h) = conv bias, col h = score bias)
    returns  (N, HP)  slab: cols [0:h) = relu(conv), col h = raw score, rest 0
    """
    n = x.shape[0]
    e = src_col.shape[0]
    # one-hot gather / scatter matrices built in-kernel (exact in bf16)
    gsrc = jnp.where(
        jax.lax.broadcasted_iota(jnp.int32, (e, n), 1) == src_col, 1.0, 0.0
    ).astype(jnp.bfloat16)                                             # (E, N)
    sdst = jnp.where(
        jax.lax.broadcasted_iota(jnp.int32, (n, e), 0) == dst_row, 1.0, 0.0
    ).astype(jnp.bfloat16)                                             # (N, E)

    gathered = jnp.dot(gsrc, x.astype(jnp.bfloat16),
                       preferred_element_type=jnp.float32)             # (E, HP) == x[src]
    msg = jnp.concatenate([gathered * ea * mask,                       # conv messages
                           gathered * mask], axis=1)                   # score messages
    agg = jnp.dot(sdst, msg.astype(jnp.bfloat16),
                  preferred_element_type=jnp.float32)                  # (N, 2*HP) scatter-add

    operand = jnp.concatenate([agg, x], axis=1).astype(jnp.bfloat16)   # (N, 3*HP)
    pre = jnp.dot(operand, w_big, preferred_element_type=jnp.float32) + b_big   # (N, HP)
    lane = jax.lax.broadcasted_iota(jnp.int32, pre.shape, 1)
    # relu only the conv lanes; lane h keeps the raw pooling score
    return jnp.where(lane < h, jnp.maximum(pre, 0.0), pre)


def _pool_and_readout(slab, perm_col, acc, *, h, segments):
    """SAGPool gather + tanh scaling + [gmp | gap] readout accumulation.

    slab:     (Nprev, HP) previous-stage slab (conv output + score column)
    perm_col: (Nk, 1) int32 selected node ids (per-graph top-k, graph-contiguous)
    acc:      (G, 2*HP) running readout accumulator
    segments: static ((start, size), ...) for the pooled graphs
    """
    nprev, hp = slab.shape
    nk = perm_col.shape[0]
    sel = jnp.where(
        jax.lax.broadcasted_iota(jnp.int32, (nk, nprev), 1) == perm_col, 1.0, 0.0)
    picked = jnp.dot(sel, slab, preferred_element_type=jnp.float32)    # (Nk, HP): slab[perm]

    lane = jax.lax.broadcasted_iota(jnp.int32, (nk, hp), 1)
    score = jnp.sum(jnp.where(lane == h, picked, 0.0),
                    axis=1, keepdims=True)                             # (Nk, 1)
    x_new = jnp.where(lane < h, picked * jnp.tanh(score), 0.0)         # x[perm]*tanh(score)

    # segmented readout (graphs contiguous with static sizes), no lane-1 stores
    row = jax.lax.broadcasted_iota(jnp.int32, (nk, 1), 0)
    rows = []
    for start, size in segments:
        in_seg = jnp.where((row >= start) & (row < start + size), 1.0, 0.0)   # (Nk, 1)
        gmp = jnp.max(x_new + (in_seg - 1.0) * 1e30, axis=0, keepdims=True)   # max pool
        gap = jnp.sum(x_new * in_seg, axis=0, keepdims=True) * (1.0 / size)   # mean pool
        rows.append(jnp.concatenate([gmp, gap], axis=1))                       # (1, 2*HP)
    acc_new = acc + jnp.concatenate(rows, axis=0)                              # (G, 2*HP)
    return x_new, acc_new


def _head(acc, w1, b1, w2, b2, w3, b3, *, h):
    h1 = jnp.maximum(jnp.dot(acc.astype(jnp.bfloat16), w1,
                             preferred_element_type=jnp.float32) + b1, 0.0)
    # F.dropout(p=0.3) in eval mode -> identity
    # TODO(synk): training-mode dropout (pltpu.prng_* mask) not implemented.
    h2 = jnp.maximum(jnp.dot(h1.astype(jnp.bfloat16), w2,
                             preferred_element_type=jnp.float32) + b2, 0.0)
    logits = jnp.dot(h2.astype(jnp.bfloat16), w3,
                     preferred_element_type=jnp.float32) + b3
    lane = jax.lax.broadcasted_iota(jnp.int32, logits.shape, 1)
    logits = jnp.where(lane < h, logits, -1e30)                        # mask lane padding
    z = logits - jnp.max(logits, axis=-1, keepdims=True)
    return z - jnp.log(jnp.sum(jnp.exp(z), axis=-1, keepdims=True))    # log_softmax


# --------------------------------------------------------------------------
# Pallas kernels (5 launches total per forward)
# --------------------------------------------------------------------------
def _conv_score_kernel(src_ref, dst_ref, x_ref, ea_ref, mask_ref, w_ref, b_ref,
                       slab_ref, *, h):
    slab_ref[...] = _conv_and_score(x_ref[...], src_ref[...], dst_ref[...],
                                    ea_ref[...], mask_ref[...],
                                    w_ref[...], b_ref[...], h=h)


def _stage_kernel(src_ref, dst_ref, perm_ref, slab_ref, ea_ref, mask_ref, w_ref,
                  b_ref, acc_ref, slab_out_ref, acc_out_ref, *, h, segments):
    x_new, acc_new = _pool_and_readout(slab_ref[...], perm_ref[...], acc_ref[...],
                                       h=h, segments=segments)
    acc_out_ref[...] = acc_new                                         # aliased accumulator
    slab_out_ref[...] = _conv_and_score(x_new, src_ref[...], dst_ref[...],
                                        ea_ref[...], mask_ref[...],
                                        w_ref[...], b_ref[...], h=h)


def _final_kernel(perm_ref, slab_ref, acc_ref, w1_ref, b1_ref, w2_ref, b2_ref,
                  w3_ref, b3_ref, out_ref, *, h, segments):
    _, acc_new = _pool_and_readout(slab_ref[...], perm_ref[...], acc_ref[...],
                                   h=h, segments=segments)
    out_ref[...] = _head(acc_new, w1_ref[...], b1_ref[...], w2_ref[...], b2_ref[...],
                         w3_ref[...], b3_ref[...], h=h)


# --------------------------------------------------------------------------
# XLA-side glue (tiny): weight packing, per-graph top-k, edge relabeling
# --------------------------------------------------------------------------
def _segments(sizes):
    segs, start = [], 0
    for sz in sizes:
        segs.append((start, sz))
        start += sz
    return tuple(segs)


def _pack_conv_weights(conv_p, pool_p, h):
    """Pack GraphConvE + score-GNN weights into one (3*HP, HP) block matrix."""
    w = jnp.zeros((3 * HP, HP), jnp.float32)
    w = w.at[0:h, 0:h].set(conv_p["w_rel"])                  # agg_conv  -> conv lanes
    w = w.at[HP:HP + h, h].set(pool_p["w_rel"][:, 0])        # agg_score -> score lane
    w = w.at[2 * HP:2 * HP + h, 0:h].set(conv_p["w_root"])   # x         -> conv lanes
    w = w.at[2 * HP:2 * HP + h, h].set(pool_p["w_root"][:, 0])
    b = jnp.zeros((1, HP), jnp.float32)
    b = b.at[0, 0:h].set(conv_p["b"][0])
    b = b.at[0, h].set(pool_p["b"][0, 0])
    return w.astype(jnp.bfloat16), b


def _pack_head_weights(head_p, h):
    w1 = jnp.zeros((2 * HP, HP), jnp.float32)
    w1 = w1.at[0:h, 0:h].set(head_p["w1"][0:h])              # gmp block of lin1
    w1 = w1.at[HP:HP + h, 0:h].set(head_p["w1"][h:2 * h])    # gap block of lin1
    b1 = jnp.zeros((1, HP), jnp.float32).at[0, 0:h].set(head_p["b1"][0])
    w2 = jnp.zeros((HP, HP), jnp.float32).at[0:h, 0:h].set(head_p["w2"])
    b2 = jnp.zeros((1, HP), jnp.float32).at[0, 0:h].set(head_p["b2"][0])
    w3 = jnp.zeros((HP, HP), jnp.float32).at[0:h, 0:h].set(head_p["w3"])
    b3 = jnp.zeros((1, HP), jnp.float32).at[0, 0:h].set(head_p["b3"][0])
    return (w1.astype(jnp.bfloat16), b1, w2.astype(jnp.bfloat16), b2,
            w3.astype(jnp.bfloat16), b3)


def _topk_and_relabel(slab, sizes, src_col, dst_row, mask, h, *, relabel=True):
    """Per-graph top-k (ratio 0.5) on the score lane + edge filter/relabel."""
    score = slab[:, h]
    n = slab.shape[0]
    perm_parts, new_sizes, start = [], [], 0
    for sz in sizes:                                          # static per-graph sizes
        k = max(1, int(math.ceil(0.5 * sz)))
        _, idx = jax.lax.top_k(score[start:start + sz], k)
        perm_parts.append(idx.astype(jnp.int32) + start)
        new_sizes.append(k)
        start += sz
    perm = jnp.concatenate(perm_parts)
    nk = int(perm.shape[0])
    if not relabel:
        return perm[:, None], tuple(new_sizes), None, None, None
    inv = jnp.full((n,), -1, jnp.int32).at[perm].set(jnp.arange(nk, dtype=jnp.int32))
    src, dst = src_col[:, 0], dst_row[0, :]
    keep = (inv[src] >= 0) & (inv[dst] >= 0)
    # dropped edges stay at fixed E, relabeled to node 0 with zero mask (zero contribution)
    new_src = jnp.where(keep, inv[src], 0).astype(jnp.int32)[:, None]
    new_dst = jnp.where(keep, inv[dst], 0).astype(jnp.int32)[None, :]
    new_mask = mask * keep.astype(mask.dtype)[:, None]
    return perm[:, None], tuple(new_sizes), new_src, new_dst, new_mask


def gnn_global_forward(params, node_tokens, edge_tokens, edge_index, sizes):
    emb = params["embedding"]
    h = emb.shape[1]
    num_graphs = len(sizes)

    x = jnp.take(emb, node_tokens, axis=0)                    # embedding_layer(x)
    ea = jnp.take(emb, edge_tokens, axis=0)                   # embedding_layer(edge_attr)
    x = jnp.pad(x, ((0, 0), (0, HP - h)))                     # lane-pad H -> 128
    ea = jnp.pad(ea, ((0, 0), (0, HP - h)))
    e = edge_index.shape[1]
    src = edge_index[0].astype(jnp.int32)[:, None]            # (E, 1)
    dst = edge_index[1].astype(jnp.int32)[None, :]            # (1, E)
    mask = jnp.ones((e, 1), jnp.float32)                      # live-edge mask
    acc = jnp.zeros((num_graphs, 2 * HP), jnp.float32)        # running [gmp | gap] readout

    # stage 1: conv1 + pool1 score (one fused kernel)
    n0 = x.shape[0]
    wb, bb = _pack_conv_weights(params["conv1"], params["pool1"], h)
    slab = pl.pallas_call(
        partial(_conv_score_kernel, h=h),
        out_shape=jax.ShapeDtypeStruct((n0, HP), jnp.float32),
    )(src, dst, x, ea, mask, wb, bb)

    # stages 2..4: fused pool_{s-1} + readout_{s-1} + conv_s + score_s
    cur_sizes = tuple(sizes)
    for stage in range(2, 5):
        perm, new_sizes, src, dst, mask = _topk_and_relabel(
            slab, cur_sizes, src, dst, mask, h)
        wb, bb = _pack_conv_weights(params[f"conv{stage}"], params[f"pool{stage}"], h)
        nk = sum(new_sizes)
        slab, acc = pl.pallas_call(
            partial(_stage_kernel, h=h, segments=_segments(new_sizes)),
            out_shape=(jax.ShapeDtypeStruct((nk, HP), jnp.float32),
                       jax.ShapeDtypeStruct((num_graphs, 2 * HP), jnp.float32)),
            input_output_aliases={8: 1},                      # accumulate readout in place
        )(src, dst, perm, slab, ea, mask, wb, bb, acc)
        cur_sizes = new_sizes

    # final: pool4 + readout4 + MLP head + log_softmax
    perm, new_sizes, _, _, _ = _topk_and_relabel(
        slab, cur_sizes, src, dst, mask, h, relabel=False)
    hw = _pack_head_weights(params["head"], h)
    out = pl.pallas_call(
        partial(_final_kernel, h=h, segments=_segments(new_sizes)),
        out_shape=jax.ShapeDtypeStruct((num_graphs, HP), jnp.float32),
    )(perm, slab, acc, *hw)
    return out[:, :h]                                         # strip lane padding


# --------------------------------------------------------------------------
# Deterministic parameter init + example run
# --------------------------------------------------------------------------
if __name__ == "__main__":
    H = 32                # hidden_dim
    VOCAB = 50            # embedding vocabulary
    sizes = [16, 16]      # 2 graphs, 16 nodes each
    N = sum(sizes)
    E_PER = 32            # edges per graph

    key = jax.random.PRNGKey(0)
    keys = jax.random.split(key, 12)

    node_tokens = jax.random.randint(keys[0], (N,), 0, VOCAB)
    edge_tokens = jax.random.randint(keys[1], (E_PER * len(sizes),), 0, VOCAB)

    srcs, dsts, start, ki = [], [], 0, 2
    for sz in sizes:
        srcs.append(jax.random.randint(keys[ki], (E_PER,), start, start + sz)); ki += 1
        dsts.append(jax.random.randint(keys[ki], (E_PER,), start, start + sz)); ki += 1
        start += sz
    edge_index = jnp.stack([jnp.concatenate(srcs), jnp.concatenate(dsts)]).astype(jnp.int32)

    def init_lin(k, din, dout, scale=0.1):
        kw, kb = jax.random.split(k)
        return (scale * jax.random.normal(kw, (din, dout), jnp.float32),
                scale * jax.random.normal(kb, (1, dout), jnp.float32))

    pk = jax.random.split(keys[10], 16)
    params = {"embedding": 0.1 * jax.random.normal(pk[0], (VOCAB, H), jnp.float32)}
    for i in range(4):
        w_rel, b = init_lin(pk[1 + i], H, H)
        w_root, _ = init_lin(pk[5 + i], H, H)
        params[f"conv{i + 1}"] = {"w_rel": w_rel, "w_root": w_root, "b": b}
        sw_rel, sb = init_lin(pk[9 + i], H, 1)
        sw_root, _ = init_lin(jax.random.fold_in(pk[9 + i], 1), H, 1)
        params[f"pool{i + 1}"] = {"w_rel": sw_rel, "w_root": sw_root, "b": sb}
    w1, b1 = init_lin(pk[13], 2 * H, H)
    w2, b2 = init_lin(pk[14], H, H)
    w3, b3 = init_lin(pk[15], H, H)
    params["head"] = {"w1": w1, "b1": b1, "w2": w2, "b2": b2, "w3": w3, "b3": b3}

    fwd = jax.jit(lambda p, nt, et, ei: gnn_global_forward(p, nt, et, ei, tuple(sizes)))
    out = fwd(params, node_tokens, edge_tokens, edge_index)
    jax.block_until_ready(out)
    assert out.shape == (len(sizes), H)
    print("KERNEL_OK")
</pallas_src>

<mosaic_0001>
module attributes {stable_mosaic.version = 11 : i64} {
  func.func @_conv_score_kernel(%arg0: memref<64x1xi32, #tpu.memory_space<vmem>>, %arg1: memref<1x64xi32, #tpu.memory_space<vmem>>, %arg2: memref<32x128xf32, #tpu.memory_space<vmem>>, %arg3: memref<64x128xf32, #tpu.memory_space<vmem>>, %arg4: memref<64x1xf32, #tpu.memory_space<vmem>>, %arg5: memref<384x128xbf16, #tpu.memory_space<vmem>>, %arg6: memref<1x128xf32, #tpu.memory_space<vmem>>, %arg7: memref<32x128xf32, #tpu.memory_space<vmem>>) attributes {dimension_semantics = [], scalar_prefetch = 0 : i64, scratch_operands = 0 : i64, tpu.core_type = #tpu.core_type<tc>} {
    %c0 = arith.constant 0 : index
    %c0_0 = arith.constant 0 : index
    %0 = vector.load %arg2[%c0, %c0_0] : memref<32x128xf32, #tpu.memory_space<vmem>>, vector<32x128xf32>
    %c0_1 = arith.constant 0 : index
    %c0_2 = arith.constant 0 : index
    %1 = vector.load %arg0[%c0_1, %c0_2] : memref<64x1xi32, #tpu.memory_space<vmem>>, vector<64x1xi32>
    %c0_3 = arith.constant 0 : index
    %c0_4 = arith.constant 0 : index
    %2 = vector.load %arg1[%c0_3, %c0_4] : memref<1x64xi32, #tpu.memory_space<vmem>>, vector<1x64xi32>
    %c0_5 = arith.constant 0 : index
    %c0_6 = arith.constant 0 : index
    %3 = vector.load %arg3[%c0_5, %c0_6] : memref<64x128xf32, #tpu.memory_space<vmem>>, vector<64x128xf32>
    %c0_7 = arith.constant 0 : index
    %c0_8 = arith.constant 0 : index
    %4 = vector.load %arg4[%c0_7, %c0_8] : memref<64x1xf32, #tpu.memory_space<vmem>>, vector<64x1xf32>
    %c0_9 = arith.constant 0 : index
    %c0_10 = arith.constant 0 : index
    %5 = vector.load %arg5[%c0_9, %c0_10] : memref<384x128xbf16, #tpu.memory_space<vmem>>, vector<384x128xbf16>
    %c0_11 = arith.constant 0 : index
    %c0_12 = arith.constant 0 : index
    %6 = vector.load %arg6[%c0_11, %c0_12] : memref<1x128xf32, #tpu.memory_space<vmem>>, vector<1x128xf32>
    %7 = tpu.iota {dimensions = array<i32: 1>} : vector<64x32xi32>
    %8 = vector.broadcast %1 : vector<64x1xi32> to vector<64x32xi32>
    %9 = arith.cmpi eq, %7, %8 : vector<64x32xi32>
    %cst = arith.constant 1.000000e+00 : f32
    %cst_13 = arith.constant 0.000000e+00 : f32
    %10 = vector.broadcast %cst : f32 to vector<64x32xf32>
    %11 = vector.broadcast %cst_13 : f32 to vector<64x32xf32>
    %12 = arith.select %9, %10, %11 : vector<64x32xi1>, vector<64x32xf32>
    %13 = arith.truncf %12 : vector<64x32xf32> to vector<64x32xbf16>
    %14 = tpu.iota {dimensions = array<i32: 0>} : vector<32x64xi32>
    %15 = vector.broadcast %2 : vector<1x64xi32> to vector<32x64xi32>
    %16 = arith.cmpi eq, %14, %15 : vector<32x64xi32>
    %cst_14 = arith.constant 1.000000e+00 : f32
    %cst_15 = arith.constant 0.000000e+00 : f32
    %17 = vector.broadcast %cst_14 : f32 to vector<32x64xf32>
    %18 = vector.broadcast %cst_15 : f32 to vector<32x64xf32>
    %19 = arith.select %16, %17, %18 : vector<32x64xi1>, vector<32x64xf32>
    %20 = arith.truncf %19 : vector<32x64xf32> to vector<32x64xbf16>
    %21 = arith.truncf %0 : vector<32x128xf32> to vector<32x128xbf16>
    %cst_16 = arith.constant dense<0.000000e+00> : vector<64x128xf32>
    %22 = tpu.matmul %13, %21, %cst_16 {dimension_numbers = #tpu.dot_dimension_numbers<[1], [0], [0], [1], [0, 0, 1, 1], [], []>} : vector<64x32xbf16>, vector<32x128xbf16>, vector<64x128xf32> -> vector<64x128xf32>
    %23 = arith.mulf %22, %3 : vector<64x128xf32>
    %24 = vector.broadcast %4 : vector<64x1xf32> to vector<64x128xf32>
    %25 = arith.mulf %23, %24 : vector<64x128xf32>
    %26 = vector.broadcast %4 : vector<64x1xf32> to vector<64x128xf32>
    %27 = arith.mulf %22, %26 : vector<64x128xf32>
    %28 = tpu.concatenate %25, %27 in 1 : vector<64x128xf32>, vector<64x128xf32> -> vector<64x256xf32>
    %29 = arith.truncf %28 : vector<64x256xf32> to vector<64x256xbf16>
    %cst_17 = arith.constant dense<0.000000e+00> : vector<32x256xf32>
    %30 = tpu.matmul %20, %29, %cst_17 {dimension_numbers = #tpu.dot_dimension_numbers<[1], [0], [0], [1], [0, 0, 1, 1], [], []>} : vector<32x64xbf16>, vector<64x256xbf16>, vector<32x256xf32> -> vector<32x256xf32>
    %31 = tpu.concatenate %30, %0 in 1 : vector<32x256xf32>, vector<32x128xf32> -> vector<32x384xf32>
    %32 = arith.truncf %31 : vector<32x384xf32> to vector<32x384xbf16>
    %cst_18 = arith.constant dense<0.000000e+00> : vector<32x128xf32>
    %33 = tpu.matmul %32, %5, %cst_18 {dimension_numbers = #tpu.dot_dimension_numbers<[1], [0], [0], [1], [0, 0, 1, 1], [], []>} : vector<32x384xbf16>, vector<384x128xbf16>, vector<32x128xf32> -> vector<32x128xf32>
    %34 = vector.broadcast %6 : vector<1x128xf32> to vector<32x128xf32>
    %35 = arith.addf %33, %34 : vector<32x128xf32>
    %36 = tpu.iota {dimensions = array<i32: 1>} : vector<32x128xi32>
    %c32_i32 = arith.constant 32 : i32
    %37 = vector.broadcast %c32_i32 : i32 to vector<32x128xi32>
    %38 = arith.cmpi slt, %36, %37 : vector<32x128xi32>
    %cst_19 = arith.constant 0.000000e+00 : f32
    %39 = vector.broadcast %cst_19 : f32 to vector<32x128xf32>
    %40 = arith.maximumf %35, %39 : vector<32x128xf32>
    %41 = arith.select %38, %40, %35 : vector<32x128xi1>, vector<32x128xf32>
    %c0_20 = arith.constant 0 : index
    %c0_21 = arith.constant 0 : index
    %42 = vector.load %arg7[%c0_20, %c0_21] : memref<32x128xf32, #tpu.memory_space<vmem>>, vector<32x128xf32>
    tpu.vector_store %arg7[%c0_20, %c0_21], %41 {strides = array<i32>} : memref<32x128xf32, #tpu.memory_space<vmem>>, vector<32x128xf32>,
    return
  }
}

module attributes {stable_mosaic.version = 11 : i64} {
  func.func @_stage_kernel(%arg0: memref<64x1xi32, #tpu.memory_space<vmem>>, %arg1: memref<1x64xi32, #tpu.memory_space<vmem>>, %arg2: memref<16x1xi32, #tpu.memory_space<vmem>>, %arg3: memref<32x128xf32, #tpu.memory_space<vmem>>, %arg4: memref<64x128xf32, #tpu.memory_space<vmem>>, %arg5: memref<64x1xf32, #tpu.memory_space<vmem>>, %arg6: memref<384x128xbf16, #tpu.memory_space<vmem>>, %arg7: memref<1x128xf32, #tpu.memory_space<vmem>>, %arg8: memref<2x256xf32, #tpu.memory_space<vmem>>, %arg9: memref<16x128xf32, #tpu.memory_space<vmem>>, %arg10: memref<2x256xf32, #tpu.memory_space<vmem>>) attributes {dimension_semantics = [], scalar_prefetch = 0 : i64, scratch_operands = 0 : i64, tpu.core_type = #tpu.core_type<tc>} {
    %c0 = arith.constant 0 : index
    %c0_0 = arith.constant 0 : index
    %0 = vector.load %arg3[%c0, %c0_0] : memref<32x128xf32, #tpu.memory_space<vmem>>, vector<32x128xf32>
    %c0_1 = arith.constant 0 : index
    %c0_2 = arith.constant 0 : index
    %1 = vector.load %arg2[%c0_1, %c0_2] : memref<16x1xi32, #tpu.memory_space<vmem>>, vector<16x1xi32>
    %c0_3 = arith.constant 0 : index
    %c0_4 = arith.constant 0 : index
    %2 = vector.load %arg8[%c0_3, %c0_4] : memref<2x256xf32, #tpu.memory_space<vmem>>, vector<2x256xf32>
    %3 = tpu.iota {dimensions = array<i32: 1>} : vector<16x32xi32>
    %4 = vector.broadcast %1 : vector<16x1xi32> to vector<16x32xi32>
    %5 = arith.cmpi eq, %3, %4 : vector<16x32xi32>
    %cst = arith.constant 1.000000e+00 : f32
    %cst_5 = arith.constant 0.000000e+00 : f32
    %6 = vector.broadcast %cst : f32 to vector<16x32xf32>
    %7 = vector.broadcast %cst_5 : f32 to vector<16x32xf32>
    %8 = arith.select %5, %6, %7 : vector<16x32xi1>, vector<16x32xf32>
    %cst_6 = arith.constant dense<0.000000e+00> : vector<16x128xf32>
    %9 = tpu.matmul %8, %0, %cst_6 {dimension_numbers = #tpu.dot_dimension_numbers<[1], [0], [0], [1], [0, 0, 1, 1], [], []>} : vector<16x32xf32>, vector<32x128xf32>, vector<16x128xf32> -> vector<16x128xf32>
    %10 = tpu.iota {dimensions = array<i32: 1>} : vector<16x128xi32>
    %c32_i32 = arith.constant 32 : i32
    %11 = vector.broadcast %c32_i32 : i32 to vector<16x128xi32>
    %12 = arith.cmpi eq, %10, %11 : vector<16x128xi32>
    %cst_7 = arith.constant 0.000000e+00 : f32
    %13 = vector.broadcast %cst_7 : f32 to vector<16x128xf32>
    %14 = arith.select %12, %9, %13 : vector<16x128xi1>, vector<16x128xf32>
    %cst_8 = arith.constant dense<0.000000e+00> : vector<16xf32>
    %15 = vector.multi_reduction <add>, %14, %cst_8 [1] : vector<16x128xf32> to vector<16xf32>
    %16 = vector.shape_cast %15 : vector<16xf32> to vector<16x1xf32>
    %c32_i32_9 = arith.constant 32 : i32
    %17 = vector.broadcast %c32_i32_9 : i32 to vector<16x128xi32>
    %18 = arith.cmpi slt, %10, %17 : vector<16x128xi32>
    %19 = math.tanh %16 : vector<16x1xf32>
    %20 = vector.broadcast %19 : vector<16x1xf32> to vector<16x128xf32>
    %21 = arith.mulf %9, %20 : vector<16x128xf32>
    %cst_10 = arith.constant 0.000000e+00 : f32
    %22 = vector.broadcast %cst_10 : f32 to vector<16x128xf32>
    %23 = arith.select %18, %21, %22 : vector<16x128xi1>, vector<16x128xf32>
    %24 = tpu.iota {dimensions = array<i32: 0>} : vector<16x1xi32>
    %c0_i32 = arith.constant 0 : i32
    %25 = vector.broadcast %c0_i32 : i32 to vector<16x1xi32>
    %26 = arith.cmpi sge, %24, %25 : vector<16x1xi32>
    %c8_i32 = arith.constant 8 : i32
    %27 = vector.broadcast %c8_i32 : i32 to vector<16x1xi32>
    %28 = arith.cmpi slt, %24, %27 : vector<16x1xi32>
    %29 = arith.andi %26, %28 : vector<16x1xi1>
    %cst_11 = arith.constant 1.000000e+00 : f32
    %cst_12 = arith.constant 0.000000e+00 : f32
    %30 = vector.broadcast %cst_11 : f32 to vector<16x1xf32>
    %31 = vector.broadcast %cst_12 : f32 to vector<16x1xf32>
    %32 = arith.select %29, %30, %31 : vector<16x1xi1>, vector<16x1xf32>
    %cst_13 = arith.constant 1.000000e+00 : f32
    %33 = vector.broadcast %cst_13 : f32 to vector<16x1xf32>
    %34 = arith.subf %32, %33 : vector<16x1xf32>
    %cst_14 = arith.constant 1.000000e+30 : f32
    %35 = vector.broadcast %cst_14 : f32 to vector<16x1xf32>
    %36 = arith.mulf %34, %35 : vector<16x1xf32>
    %37 = vector.broadcast %36 : vector<16x1xf32> to vector<16x128xf32>
    %38 = arith.addf %23, %37 : vector<16x128xf32>
    %cst_15 = arith.constant dense<0xFF800000> : vector<128xf32>
    %39 = vector.multi_reduction <maximumf>, %38, %cst_15 [0] : vector<16x128xf32> to vector<128xf32>
    %40 = vector.shape_cast %39 : vector<128xf32> to vector<1x128xf32>
    %41 = vector.broadcast %32 : vector<16x1xf32> to vector<16x128xf32>
    %42 = arith.mulf %23, %41 : vector<16x128xf32>
    %cst_16 = arith.constant dense<0.000000e+00> : vector<128xf32>
    %43 = vector.multi_reduction <add>, %42, %cst_16 [0] : vector<16x128xf32> to vector<128xf32>
    %44 = vector.shape_cast %43 : vector<128xf32> to vector<1x128xf32>
    %cst_17 = arith.constant 1.250000e-01 : f32
    %45 = vector.broadcast %cst_17 : f32 to vector<1x128xf32>
    %46 = arith.mulf %44, %45 : vector<1x128xf32>
    %47 = tpu.concatenate %40, %46 in 1 : vector<1x128xf32>, vector<1x128xf32> -> vector<1x256xf32>
    %c8_i32_18 = arith.constant 8 : i32
    %48 = vector.broadcast %c8_i32_18 : i32 to vector<16x1xi32>
    %49 = arith.cmpi sge, %24, %48 : vector<16x1xi32>
    %c16_i32 = arith.constant 16 : i32
    %50 = vector.broadcast %c16_i32 : i32 to vector<16x1xi32>
    %51 = arith.cmpi slt, %24, %50 : vector<16x1xi32>
    %52 = arith.andi %49, %51 : vector<16x1xi1>
    %cst_19 = arith.constant 1.000000e+00 : f32
    %cst_20 = arith.constant 0.000000e+00 : f32
    %53 = vector.broadcast %cst_19 : f32 to vector<16x1xf32>
    %54 = vector.broadcast %cst_20 : f32 to vector<16x1xf32>
    %55 = arith.select %52, %53, %54 : vector<16x1xi1>, vector<16x1xf32>
    %cst_21 = arith.constant 1.000000e+00 : f32
    %56 = vector.broadcast %cst_21 : f32 to vector<16x1xf32>
    %57 = arith.subf %55, %56 : vector<16x1xf32>
    %cst_22 = arith.constant 1.000000e+30 : f32
    %58 = vector.broadcast %cst_22 : f32 to vector<16x1xf32>
    %59 = arith.mulf %57, %58 : vector<16x1xf32>
    %60 = vector.broadcast %59 : vector<16x1xf32> to vector<16x128xf32>
    %61 = arith.addf %23, %60 : vector<16x128xf32>
    %cst_23 = arith.constant dense<0xFF800000> : vector<128xf32>
    %62 = vector.multi_reduction <maximumf>, %61, %cst_23 [0] : vector<16x128xf32> to vector<128xf32>
    %63 = vector.shape_cast %62 : vector<128xf32> to vector<1x128xf32>
    %64 = vector.broadcast %55 : vector<16x1xf32> to vector<16x128xf32>
    %65 = arith.mulf %23, %64 : vector<16x128xf32>
    %cst_24 = arith.constant dense<0.000000e+00> : vector<128xf32>
    %66 = vector.multi_reduction <add>, %65, %cst_24 [0] : vector<16x128xf32> to vector<128xf32>
    %67 = vector.shape_cast %66 : vector<128xf32> to vector<1x128xf32>
    %cst_25 = arith.constant 1.250000e-01 : f32
    %68 = vector.broadcast %cst_25 : f32 to vector<1x128xf32>
    %69 = arith.mulf %67, %68 : vector<1x128xf32>
    %70 = tpu.concatenate %63, %69 in 1 : vector<1x128xf32>, vector<1x128xf32> -> vector<1x256xf32>
    %71 = tpu.concatenate %47, %70 in 0 : vector<1x256xf32>, vector<1x256xf32> -> vector<2x256xf32>
    %72 = arith.addf %2, %71 : vector<2x256xf32>
    %c0_26 = arith.constant 0 : index
    %c0_27 = arith.constant 0 : index
    %73 = vector.load %arg10[%c0_26, %c0_27] : memref<2x256xf32, #tpu.memory_space<vmem>>, vector<2x256xf32>
    tpu.vector_store %arg10[%c0_26, %c0_27], %72 {strides = array<i32>} : memref<2x256xf32, #tpu.memory_space<vmem>>, vector<2x256xf32>,
    %c0_28 = arith.constant 0 : index
    %c0_29 = arith.constant 0 : index
    %74 = vector.load %arg0[%c0_28, %c0_29] : memref<64x1xi32, #tpu.memory_space<vmem>>, vector<64x1xi32>
    %c0_30 = arith.constant 0 : index
    %c0_31 = arith.constant 0 : index
    %75 = vector.load %arg1[%c0_30, %c0_31] : memref<1x64xi32, #tpu.memory_space<vmem>>, vector<1x64xi32>
    %c0_32 = arith.constant 0 : index
    %c0_33 = arith.constant 0 : index
    %76 = vector.load %arg4[%c0_32, %c0_33] : memref<64x128xf32, #tpu.memory_space<vmem>>, vector<64x128xf32>
    %c0_34 = arith.constant 0 : index
    %c0_35 = arith.constant 0 : index
    %77 = vector.load %arg5[%c0_34, %c0_35] : memref<64x1xf32, #tpu.memory_space<vmem>>, vector<64x1xf32>
    %c0_36 = arith.constant 0 : index
    %c0_37 = arith.constant 0 : index
    %78 = vector.load %arg6[%c0_36, %c0_37] : memref<384x128xbf16, #tpu.memory_space<vmem>>, vector<384x128xbf16>
    %c0_38 = arith.constant 0 : index
    %c0_39 = arith.constant 0 : index
    %79 = vector.load %arg7[%c0_38, %c0_39] : memref<1x128xf32, #tpu.memory_space<vmem>>, vector<1x128xf32>
    %80 = tpu.iota {dimensions = array<i32: 1>} : vector<64x16xi32>
    %81 = vector.broadcast %74 : vector<64x1xi32> to vector<64x16xi32>
    %82 = arith.cmpi eq, %80, %81 : vector<64x16xi32>
    %cst_40 = arith.constant 1.000000e+00 : f32
    %cst_41 = arith.constant 0.000000e+00 : f32
    %83 = vector.broadcast %cst_40 : f32 to vector<64x16xf32>
    %84 = vector.broadcast %cst_41 : f32 to vector<64x16xf32>
    %85 = arith.select %82, %83, %84 : vector<64x16xi1>, vector<64x16xf32>
    %86 = arith.truncf %85 : vector<64x16xf32> to vector<64x16xbf16>
    %87 = tpu.iota {dimensions = array<i32: 0>} : vector<16x64xi32>
    %88 = vector.broadcast %75 : vector<1x64xi32> to vector<16x64xi32>
    %89 = arith.cmpi eq, %87, %88 : vector<16x64xi32>
    %cst_42 = arith.constant 1.000000e+00 : f32
    %cst_43 = arith.constant 0.000000e+00 : f32
    %90 = vector.broadcast %cst_42 : f32 to vector<16x64xf32>
    %91 = vector.broadcast %cst_43 : f32 to vector<16x64xf32>
    %92 = arith.select %89, %90, %91 : vector<16x64xi1>, vector<16x64xf32>
    %93 = arith.truncf %92 : vector<16x64xf32> to vector<16x64xbf16>
    %94 = arith.truncf %23 : vector<16x128xf32> to vector<16x128xbf16>
    %cst_44 = arith.constant dense<0.000000e+00> : vector<64x128xf32>
    %95 = tpu.matmul %86, %94, %cst_44 {dimension_numbers = #tpu.dot_dimension_numbers<[1], [0], [0], [1], [0, 0, 1, 1], [], []>} : vector<64x16xbf16>, vector<16x128xbf16>, vector<64x128xf32> -> vector<64x128xf32>
    %96 = arith.mulf %95, %76 : vector<64x128xf32>
    %97 = vector.broadcast %77 : vector<64x1xf32> to vector<64x128xf32>
    %98 = arith.mulf %96, %97 : vector<64x128xf32>
    %99 = vector.broadcast %77 : vector<64x1xf32> to vector<64x128xf32>
    %100 = arith.mulf %95, %99 : vector<64x128xf32>
    %101 = tpu.concatenate %98, %100 in 1 : vector<64x128xf32>, vector<64x128xf32> -> vector<64x256xf32>
    %102 = arith.truncf %101 : vector<64x256xf32> to vector<64x256xbf16>
    %cst_45 = arith.constant dense<0.000000e+00> : vector<16x256xf32>
    %103 = tpu.matmul %93, %102, %cst_45 {dimension_numbers = #tpu.dot_dimension_numbers<[1], [0], [0], [1], [0, 0, 1, 1], [], []>} : vector<16x64xbf16>, vector<64x256xbf16>, vector<16x256xf32> -> vector<16x256xf32>
    %104 = tpu.concatenate %103, %23 in 1 : vector<16x256xf32>, vector<16x128xf32> -> vector<16x384xf32>
    %105 = arith.truncf %104 : vector<16x384xf32> to vector<16x384xbf16>
    %cst_46 = arith.constant dense<0.000000e+00> : vector<16x128xf32>
    %106 = tpu.matmul %105, %78, %cst_46 {dimension_numbers = #tpu.dot_dimension_numbers<[1], [0], [0], [1], [0, 0, 1, 1], [], []>} : vector<16x384xbf16>, vector<384x128xbf16>, vector<16x128xf32> -> vector<16x128xf32>
    %107 = vector.broadcast %79 : vector<1x128xf32> to vector<16x128xf32>
    %108 = arith.addf %106, %107 : vector<16x128xf32>
    %109 = tpu.iota {dimensions = array<i32: 1>} : vector<16x128xi32>
    %c32_i32_47 = arith.constant 32 : i32
    %110 = vector.broadcast %c32_i32_47 : i32 to vector<16x128xi32>
    %111 = arith.cmpi slt, %109, %110 : vector<16x128xi32>
    %cst_48 = arith.constant 0.000000e+00 : f32
    %112 = vector.broadcast %cst_48 : f32 to vector<16x128xf32>
    %113 = arith.maximumf %108, %112 : vector<16x128xf32>
    %114 = arith.select %111, %113, %108 : vector<16x128xi1>, vector<16x128xf32>
    %c0_49 = arith.constant 0 : index
    %c0_50 = arith.constant 0 : index
    %115 = vector.load %arg9[%c0_49, %c0_50] : memref<16x128xf32, #tpu.memory_space<vmem>>, vector<16x128xf32>
    tpu.vector_store %arg9[%c0_49, %c0_50], %114 {strides = array<i32>} : memref<16x128xf32, #tpu.memory_space<vmem>>, vector<16x128xf32>,
    return
  }
}

module attributes {stable_mosaic.version = 11 : i64} {
  func.func @_stage_kernel(%arg0: memref<64x1xi32, #tpu.memory_space<vmem>>, %arg1: memref<1x64xi32, #tpu.memory_space<vmem>>, %arg2: memref<8x1xi32, #tpu.memory_space<vmem>>, %arg3: memref<16x128xf32, #tpu.memory_space<vmem>>, %arg4: memref<64x128xf32, #tpu.memory_space<vmem>>, %arg5: memref<64x1xf32, #tpu.memory_space<vmem>>, %arg6: memref<384x128xbf16, #tpu.memory_space<vmem>>, %arg7: memref<1x128xf32, #tpu.memory_space<vmem>>, %arg8: memref<2x256xf32, #tpu.memory_space<vmem>>, %arg9: memref<8x128xf32, #tpu.memory_space<vmem>>, %arg10: memref<2x256xf32, #tpu.memory_space<vmem>>) attributes {dimension_semantics = [], scalar_prefetch = 0 : i64, scratch_operands = 0 : i64, tpu.core_type = #tpu.core_type<tc>} {
    %c0 = arith.constant 0 : index
    %c0_0 = arith.constant 0 : index
    %0 = vector.load %arg3[%c0, %c0_0] : memref<16x128xf32, #tpu.memory_space<vmem>>, vector<16x128xf32>
    %c0_1 = arith.constant 0 : index
    %c0_2 = arith.constant 0 : index
    %1 = vector.load %arg2[%c0_1, %c0_2] : memref<8x1xi32, #tpu.memory_space<vmem>>, vector<8x1xi32>
    %c0_3 = arith.constant 0 : index
    %c0_4 = arith.constant 0 : index
    %2 = vector.load %arg8[%c0_3, %c0_4] : memref<2x256xf32, #tpu.memory_space<vmem>>, vector<2x256xf32>
    %3 = tpu.iota {dimensions = array<i32: 1>} : vector<8x16xi32>
    %4 = vector.broadcast %1 : vector<8x1xi32> to vector<8x16xi32>
    %5 = arith.cmpi eq, %3, %4 : vector<8x16xi32>
    %cst = arith.constant 1.000000e+00 : f32
    %cst_5 = arith.constant 0.000000e+00 : f32
    %6 = vector.broadcast %cst : f32 to vector<8x16xf32>
    %7 = vector.broadcast %cst_5 : f32 to vector<8x16xf32>
    %8 = arith.select %5, %6, %7 : vector<8x16xi1>, vector<8x16xf32>
    %cst_6 = arith.constant dense<0.000000e+00> : vector<8x128xf32>
    %9 = tpu.matmul %8, %0, %cst_6 {dimension_numbers = #tpu.dot_dimension_numbers<[1], [0], [0], [1], [0, 0, 1, 1], [], []>} : vector<8x16xf32>, vector<16x128xf32>, vector<8x128xf32> -> vector<8x128xf32>
    %10 = tpu.iota {dimensions = array<i32: 1>} : vector<8x128xi32>
    %c32_i32 = arith.constant 32 : i32
    %11 = vector.broadcast %c32_i32 : i32 to vector<8x128xi32>
    %12 = arith.cmpi eq, %10, %11 : vector<8x128xi32>
    %cst_7 = arith.constant 0.000000e+00 : f32
    %13 = vector.broadcast %cst_7 : f32 to vector<8x128xf32>
    %14 = arith.select %12, %9, %13 : vector<8x128xi1>, vector<8x128xf32>
    %cst_8 = arith.constant dense<0.000000e+00> : vector<8xf32>
    %15 = vector.multi_reduction <add>, %14, %cst_8 [1] : vector<8x128xf32> to vector<8xf32>
    %16 = vector.shape_cast %15 : vector<8xf32> to vector<8x1xf32>
    %c32_i32_9 = arith.constant 32 : i32
    %17 = vector.broadcast %c32_i32_9 : i32 to vector<8x128xi32>
    %18 = arith.cmpi slt, %10, %17 : vector<8x128xi32>
    %19 = math.tanh %16 : vector<8x1xf32>
    %20 = vector.broadcast %19 : vector<8x1xf32> to vector<8x128xf32>
    %21 = arith.mulf %9, %20 : vector<8x128xf32>
    %cst_10 = arith.constant 0.000000e+00 : f32
    %22 = vector.broadcast %cst_10 : f32 to vector<8x128xf32>
    %23 = arith.select %18, %21, %22 : vector<8x128xi1>, vector<8x128xf32>
    %24 = tpu.iota {dimensions = array<i32: 0>} : vector<8x1xi32>
    %c0_i32 = arith.constant 0 : i32
    %25 = vector.broadcast %c0_i32 : i32 to vector<8x1xi32>
    %26 = arith.cmpi sge, %24, %25 : vector<8x1xi32>
    %c4_i32 = arith.constant 4 : i32
    %27 = vector.broadcast %c4_i32 : i32 to vector<8x1xi32>
    %28 = arith.cmpi slt, %24, %27 : vector<8x1xi32>
    %29 = arith.andi %26, %28 : vector<8x1xi1>
    %cst_11 = arith.constant 1.000000e+00 : f32
    %cst_12 = arith.constant 0.000000e+00 : f32
    %30 = vector.broadcast %cst_11 : f32 to vector<8x1xf32>
    %31 = vector.broadcast %cst_12 : f32 to vector<8x1xf32>
    %32 = arith.select %29, %30, %31 : vector<8x1xi1>, vector<8x1xf32>
    %cst_13 = arith.constant 1.000000e+00 : f32
    %33 = vector.broadcast %cst_13 : f32 to vector<8x1xf32>
    %34 = arith.subf %32, %33 : vector<8x1xf32>
    %cst_14 = arith.constant 1.000000e+30 : f32
    %35 = vector.broadcast %cst_14 : f32 to vector<8x1xf32>
    %36 = arith.mulf %34, %35 : vector<8x1xf32>
    %37 = vector.broadcast %36 : vector<8x1xf32> to vector<8x128xf32>
    %38 = arith.addf %23, %37 : vector<8x128xf32>
    %cst_15 = arith.constant dense<0xFF800000> : vector<128xf32>
    %39 = vector.multi_reduction <maximumf>, %38, %cst_15 [0] : vector<8x128xf32> to vector<128xf32>
    %40 = vector.shape_cast %39 : vector<128xf32> to vector<1x128xf32>
    %41 = vector.broadcast %32 : vector<8x1xf32> to vector<8x128xf32>
    %42 = arith.mulf %23, %41 : vector<8x128xf32>
    %cst_16 = arith.constant dense<0.000000e+00> : vector<128xf32>
    %43 = vector.multi_reduction <add>, %42, %cst_16 [0] : vector<8x128xf32> to vector<128xf32>
    %44 = vector.shape_cast %43 : vector<128xf32> to vector<1x128xf32>
    %cst_17 = arith.constant 2.500000e-01 : f32
    %45 = vector.broadcast %cst_17 : f32 to vector<1x128xf32>
    %46 = arith.mulf %44, %45 : vector<1x128xf32>
    %47 = tpu.concatenate %40, %46 in 1 : vector<1x128xf32>, vector<1x128xf32> -> vector<1x256xf32>
    %c4_i32_18 = arith.constant 4 : i32
    %48 = vector.broadcast %c4_i32_18 : i32 to vector<8x1xi32>
    %49 = arith.cmpi sge, %24, %48 : vector<8x1xi32>
    %c8_i32 = arith.constant 8 : i32
    %50 = vector.broadcast %c8_i32 : i32 to vector<8x1xi32>
    %51 = arith.cmpi slt, %24, %50 : vector<8x1xi32>
    %52 = arith.andi %49, %51 : vector<8x1xi1>
    %cst_19 = arith.constant 1.000000e+00 : f32
    %cst_20 = arith.constant 0.000000e+00 : f32
    %53 = vector.broadcast %cst_19 : f32 to vector<8x1xf32>
    %54 = vector.broadcast %cst_20 : f32 to vector<8x1xf32>
    %55 = arith.select %52, %53, %54 : vector<8x1xi1>, vector<8x1xf32>
    %cst_21 = arith.constant 1.000000e+00 : f32
    %56 = vector.broadcast %cst_21 : f32 to vector<8x1xf32>
    %57 = arith.subf %55, %56 : vector<8x1xf32>
    %cst_22 = arith.constant 1.000000e+30 : f32
    %58 = vector.broadcast %cst_22 : f32 to vector<8x1xf32>
    %59 = arith.mulf %57, %58 : vector<8x1xf32>
    %60 = vector.broadcast %59 : vector<8x1xf32> to vector<8x128xf32>
    %61 = arith.addf %23, %60 : vector<8x128xf32>
    %cst_23 = arith.constant dense<0xFF800000> : vector<128xf32>
    %62 = vector.multi_reduction <maximumf>, %61, %cst_23 [0] : vector<8x128xf32> to vector<128xf32>
    %63 = vector.shape_cast %62 : vector<128xf32> to vector<1x128xf32>
    %64 = vector.broadcast %55 : vector<8x1xf32> to vector<8x128xf32>
    %65 = arith.mulf %23, %64 : vector<8x128xf32>
    %cst_24 = arith.constant dense<0.000000e+00> : vector<128xf32>
    %66 = vector.multi_reduction <add>, %65, %cst_24 [0] : vector<8x128xf32> to vector<128xf32>
    %67 = vector.shape_cast %66 : vector<128xf32> to vector<1x128xf32>
    %cst_25 = arith.constant 2.500000e-01 : f32
    %68 = vector.broadcast %cst_25 : f32 to vector<1x128xf32>
    %69 = arith.mulf %67, %68 : vector<1x128xf32>
    %70 = tpu.concatenate %63, %69 in 1 : vector<1x128xf32>, vector<1x128xf32> -> vector<1x256xf32>
    %71 = tpu.concatenate %47, %70 in 0 : vector<1x256xf32>, vector<1x256xf32> -> vector<2x256xf32>
    %72 = arith.addf %2, %71 : vector<2x256xf32>
    %c0_26 = arith.constant 0 : index
    %c0_27 = arith.constant 0 : index
    %73 = vector.load %arg10[%c0_26, %c0_27] : memref<2x256xf32, #tpu.memory_space<vmem>>, vector<2x256xf32>
    tpu.vector_store %arg10[%c0_26, %c0_27], %72 {strides = array<i32>} : memref<2x256xf32, #tpu.memory_space<vmem>>, vector<2x256xf32>,
    %c0_28 = arith.constant 0 : index
    %c0_29 = arith.constant 0 : index
    %74 = vector.load %arg0[%c0_28, %c0_29] : memref<64x1xi32, #tpu.memory_space<vmem>>, vector<64x1xi32>
    %c0_30 = arith.constant 0 : index
    %c0_31 = arith.constant 0 : index
    %75 = vector.load %arg1[%c0_30, %c0_31] : memref<1x64xi32, #tpu.memory_space<vmem>>, vector<1x64xi32>
    %c0_32 = arith.constant 0 : index
    %c0_33 = arith.constant 0 : index
    %76 = vector.load %arg4[%c0_32, %c0_33] : memref<64x128xf32, #tpu.memory_space<vmem>>, vector<64x128xf32>
    %c0_34 = arith.constant 0 : index
    %c0_35 = arith.constant 0 : index
    %77 = vector.load %arg5[%c0_34, %c0_35] : memref<64x1xf32, #tpu.memory_space<vmem>>, vector<64x1xf32>
    %c0_36 = arith.constant 0 : index
    %c0_37 = arith.constant 0 : index
    %78 = vector.load %arg6[%c0_36, %c0_37] : memref<384x128xbf16, #tpu.memory_space<vmem>>, vector<384x128xbf16>
    %c0_38 = arith.constant 0 : index
    %c0_39 = arith.constant 0 : index
    %79 = vector.load %arg7[%c0_38, %c0_39] : memref<1x128xf32, #tpu.memory_space<vmem>>, vector<1x128xf32>
    %80 = tpu.iota {dimensions = array<i32: 1>} : vector<64x8xi32>
    %81 = vector.broadcast %74 : vector<64x1xi32> to vector<64x8xi32>
    %82 = arith.cmpi eq, %80, %81 : vector<64x8xi32>
    %cst_40 = arith.constant 1.000000e+00 : f32
    %cst_41 = arith.constant 0.000000e+00 : f32
    %83 = vector.broadcast %cst_40 : f32 to vector<64x8xf32>
    %84 = vector.broadcast %cst_41 : f32 to vector<64x8xf32>
    %85 = arith.select %82, %83, %84 : vector<64x8xi1>, vector<64x8xf32>
    %86 = arith.truncf %85 : vector<64x8xf32> to vector<64x8xbf16>
    %87 = tpu.iota {dimensions = array<i32: 0>} : vector<8x64xi32>
    %88 = vector.broadcast %75 : vector<1x64xi32> to vector<8x64xi32>
    %89 = arith.cmpi eq, %87, %88 : vector<8x64xi32>
    %cst_42 = arith.constant 1.000000e+00 : f32
    %cst_43 = arith.constant 0.000000e+00 : f32
    %90 = vector.broadcast %cst_42 : f32 to vector<8x64xf32>
    %91 = vector.broadcast %cst_43 : f32 to vector<8x64xf32>
    %92 = arith.select %89, %90, %91 : vector<8x64xi1>, vector<8x64xf32>
    %93 = arith.truncf %92 : vector<8x64xf32> to vector<8x64xbf16>
    %94 = arith.truncf %23 : vector<8x128xf32> to vector<8x128xbf16>
    %cst_44 = arith.constant dense<0.000000e+00> : vector<64x128xf32>
    %95 = tpu.matmul %86, %94, %cst_44 {dimension_numbers = #tpu.dot_dimension_numbers<[1], [0], [0], [1], [0, 0, 1, 1], [], []>} : vector<64x8xbf16>, vector<8x128xbf16>, vector<64x128xf32> -> vector<64x128xf32>
    %96 = arith.mulf %95, %76 : vector<64x128xf32>
    %97 = vector.broadcast %77 : vector<64x1xf32> to vector<64x128xf32>
    %98 = arith.mulf %96, %97 : vector<64x128xf32>
    %99 = vector.broadcast %77 : vector<64x1xf32> to vector<64x128xf32>
    %100 = arith.mulf %95, %99 : vector<64x128xf32>
    %101 = tpu.concatenate %98, %100 in 1 : vector<64x128xf32>, vector<64x128xf32> -> vector<64x256xf32>
    %102 = arith.truncf %101 : vector<64x256xf32> to vector<64x256xbf16>
    %cst_45 = arith.constant dense<0.000000e+00> : vector<8x256xf32>
    %103 = tpu.matmul %93, %102, %cst_45 {dimension_numbers = #tpu.dot_dimension_numbers<[1], [0], [0], [1], [0, 0, 1, 1], [], []>} : vector<8x64xbf16>, vector<64x256xbf16>, vector<8x256xf32> -> vector<8x256xf32>
    %104 = tpu.concatenate %103, %23 in 1 : vector<8x256xf32>, vector<8x128xf32> -> vector<8x384xf32>
    %105 = arith.truncf %104 : vector<8x384xf32> to vector<8x384xbf16>
    %cst_46 = arith.constant dense<0.000000e+00> : vector<8x128xf32>
    %106 = tpu.matmul %105, %78, %cst_46 {dimension_numbers = #tpu.dot_dimension_numbers<[1], [0], [0], [1], [0, 0, 1, 1], [], []>} : vector<8x384xbf16>, vector<384x128xbf16>, vector<8x128xf32> -> vector<8x128xf32>
    %107 = vector.broadcast %79 : vector<1x128xf32> to vector<8x128xf32>
    %108 = arith.addf %106, %107 : vector<8x128xf32>
    %109 = tpu.iota {dimensions = array<i32: 1>} : vector<8x128xi32>
    %c32_i32_47 = arith.constant 32 : i32
    %110 = vector.broadcast %c32_i32_47 : i32 to vector<8x128xi32>
    %111 = arith.cmpi slt, %109, %110 : vector<8x128xi32>
    %cst_48 = arith.constant 0.000000e+00 : f32
    %112 = vector.broadcast %cst_48 : f32 to vector<8x128xf32>
    %113 = arith.maximumf %108, %112 : vector<8x128xf32>
    %114 = arith.select %111, %113, %108 : vector<8x128xi1>, vector<8x128xf32>
    %c0_49 = arith.constant 0 : index
    %c0_50 = arith.constant 0 : index
    %115 = vector.load %arg9[%c0_49, %c0_50] : memref<8x128xf32, #tpu.memory_space<vmem>>, vector<8x128xf32>
    tpu.vector_store %arg9[%c0_49, %c0_50], %114 {strides = array<i32>} : memref<8x128xf32, #tpu.memory_space<vmem>>, vector<8x128xf32>,
    return
  }
}

module attributes {stable_mosaic.version = 11 : i64} {
  func.func @_stage_kernel(%arg0: memref<64x1xi32, #tpu.memory_space<vmem>>, %arg1: memref<1x64xi32, #tpu.memory_space<vmem>>, %arg2: memref<4x1xi32, #tpu.memory_space<vmem>>, %arg3: memref<8x128xf32, #tpu.memory_space<vmem>>, %arg4: memref<64x128xf32, #tpu.memory_space<vmem>>, %arg5: memref<64x1xf32, #tpu.memory_space<vmem>>, %arg6: memref<384x128xbf16, #tpu.memory_space<vmem>>, %arg7: memref<1x128xf32, #tpu.memory_space<vmem>>, %arg8: memref<2x256xf32, #tpu.memory_space<vmem>>, %arg9: memref<4x128xf32, #tpu.memory_space<vmem>>, %arg10: memref<2x256xf32, #tpu.memory_space<vmem>>) attributes {dimension_semantics = [], scalar_prefetch = 0 : i64, scratch_operands = 0 : i64, tpu.core_type = #tpu.core_type<tc>} {
    %c0 = arith.constant 0 : index
    %c0_0 = arith.constant 0 : index
    %0 = vector.load %arg3[%c0, %c0_0] : memref<8x128xf32, #tpu.memory_space<vmem>>, vector<8x128xf32>
    %c0_1 = arith.constant 0 : index
    %c0_2 = arith.constant 0 : index
    %1 = vector.load %arg2[%c0_1, %c0_2] : memref<4x1xi32, #tpu.memory_space<vmem>>, vector<4x1xi32>
    %c0_3 = arith.constant 0 : index
    %c0_4 = arith.constant 0 : index
    %2 = vector.load %arg8[%c0_3, %c0_4] : memref<2x256xf32, #tpu.memory_space<vmem>>, vector<2x256xf32>
    %3 = tpu.iota {dimensions = array<i32: 1>} : vector<4x8xi32>
    %4 = vector.broadcast %1 : vector<4x1xi32> to vector<4x8xi32>
    %5 = arith.cmpi eq, %3, %4 : vector<4x8xi32>
    %cst = arith.constant 1.000000e+00 : f32
    %cst_5 = arith.constant 0.000000e+00 : f32
    %6 = vector.broadcast %cst : f32 to vector<4x8xf32>
    %7 = vector.broadcast %cst_5 : f32 to vector<4x8xf32>
    %8 = arith.select %5, %6, %7 : vector<4x8xi1>, vector<4x8xf32>
    %cst_6 = arith.constant dense<0.000000e+00> : vector<4x128xf32>
    %9 = tpu.matmul %8, %0, %cst_6 {dimension_numbers = #tpu.dot_dimension_numbers<[1], [0], [0], [1], [0, 0, 1, 1], [], []>} : vector<4x8xf32>, vector<8x128xf32>, vector<4x128xf32> -> vector<4x128xf32>
    %10 = tpu.iota {dimensions = array<i32: 1>} : vector<4x128xi32>
    %c32_i32 = arith.constant 32 : i32
    %11 = vector.broadcast %c32_i32 : i32 to vector<4x128xi32>
    %12 = arith.cmpi eq, %10, %11 : vector<4x128xi32>
    %cst_7 = arith.constant 0.000000e+00 : f32
    %13 = vector.broadcast %cst_7 : f32 to vector<4x128xf32>
    %14 = arith.select %12, %9, %13 : vector<4x128xi1>, vector<4x128xf32>
    %cst_8 = arith.constant dense<0.000000e+00> : vector<4xf32>
    %15 = vector.multi_reduction <add>, %14, %cst_8 [1] : vector<4x128xf32> to vector<4xf32>
    %16 = vector.shape_cast %15 : vector<4xf32> to vector<4x1xf32>
    %c32_i32_9 = arith.constant 32 : i32
    %17 = vector.broadcast %c32_i32_9 : i32 to vector<4x128xi32>
    %18 = arith.cmpi slt, %10, %17 : vector<4x128xi32>
    %19 = math.tanh %16 : vector<4x1xf32>
    %20 = vector.broadcast %19 : vector<4x1xf32> to vector<4x128xf32>
    %21 = arith.mulf %9, %20 : vector<4x128xf32>
    %cst_10 = arith.constant 0.000000e+00 : f32
    %22 = vector.broadcast %cst_10 : f32 to vector<4x128xf32>
    %23 = arith.select %18, %21, %22 : vector<4x128xi1>, vector<4x128xf32>
    %24 = tpu.iota {dimensions = array<i32: 0>} : vector<4x1xi32>
    %c0_i32 = arith.constant 0 : i32
    %25 = vector.broadcast %c0_i32 : i32 to vector<4x1xi32>
    %26 = arith.cmpi sge, %24, %25 : vector<4x1xi32>
    %c2_i32 = arith.constant 2 : i32
    %27 = vector.broadcast %c2_i32 : i32 to vector<4x1xi32>
    %28 = arith.cmpi slt, %24, %27 : vector<4x1xi32>
    %29 = arith.andi %26, %28 : vector<4x1xi1>
    %cst_11 = arith.constant 1.000000e+00 : f32
    %cst_12 = arith.constant 0.000000e+00 : f32
    %30 = vector.broadcast %cst_11 : f32 to vector<4x1xf32>
    %31 = vector.broadcast %cst_12 : f32 to vector<4x1xf32>
    %32 = arith.select %29, %30, %31 : vector<4x1xi1>, vector<4x1xf32>
    %cst_13 = arith.constant 1.000000e+00 : f32
    %33 = vector.broadcast %cst_13 : f32 to vector<4x1xf32>
    %34 = arith.subf %32, %33 : vector<4x1xf32>
    %cst_14 = arith.constant 1.000000e+30 : f32
    %35 = vector.broadcast %cst_14 : f32 to vector<4x1xf32>
    %36 = arith.mulf %34, %35 : vector<4x1xf32>
    %37 = vector.broadcast %36 : vector<4x1xf32> to vector<4x128xf32>
    %38 = arith.addf %23, %37 : vector<4x128xf32>
    %cst_15 = arith.constant dense<0xFF800000> : vector<128xf32>
    %39 = vector.multi_reduction <maximumf>, %38, %cst_15 [0] : vector<4x128xf32> to vector<128xf32>
    %40 = vector.shape_cast %39 : vector<128xf32> to vector<1x128xf32>
    %41 = vector.broadcast %32 : vector<4x1xf32> to vector<4x128xf32>
    %42 = arith.mulf %23, %41 : vector<4x128xf32>
    %cst_16 = arith.constant dense<0.000000e+00> : vector<128xf32>
    %43 = vector.multi_reduction <add>, %42, %cst_16 [0] : vector<4x128xf32> to vector<128xf32>
    %44 = vector.shape_cast %43 : vector<128xf32> to vector<1x128xf32>
    %cst_17 = arith.constant 5.000000e-01 : f32
    %45 = vector.broadcast %cst_17 : f32 to vector<1x128xf32>
    %46 = arith.mulf %44, %45 : vector<1x128xf32>
    %47 = tpu.concatenate %40, %46 in 1 : vector<1x128xf32>, vector<1x128xf32> -> vector<1x256xf32>
    %c2_i32_18 = arith.constant 2 : i32
    %48 = vector.broadcast %c2_i32_18 : i32 to vector<4x1xi32>
    %49 = arith.cmpi sge, %24, %48 : vector<4x1xi32>
    %c4_i32 = arith.constant 4 : i32
    %50 = vector.broadcast %c4_i32 : i32 to vector<4x1xi32>
    %51 = arith.cmpi slt, %24, %50 : vector<4x1xi32>
    %52 = arith.andi %49, %51 : vector<4x1xi1>
    %cst_19 = arith.constant 1.000000e+00 : f32
    %cst_20 = arith.constant 0.000000e+00 : f32
    %53 = vector.broadcast %cst_19 : f32 to vector<4x1xf32>
    %54 = vector.broadcast %cst_20 : f32 to vector<4x1xf32>
    %55 = arith.select %52, %53, %54 : vector<4x1xi1>, vector<4x1xf32>
    %cst_21 = arith.constant 1.000000e+00 : f32
    %56 = vector.broadcast %cst_21 : f32 to vector<4x1xf32>
    %57 = arith.subf %55, %56 : vector<4x1xf32>
    %cst_22 = arith.constant 1.000000e+30 : f32
    %58 = vector.broadcast %cst_22 : f32 to vector<4x1xf32>
    %59 = arith.mulf %57, %58 : vector<4x1xf32>
    %60 = vector.broadcast %59 : vector<4x1xf32> to vector<4x128xf32>
    %61 = arith.addf %23, %60 : vector<4x128xf32>
    %cst_23 = arith.constant dense<0xFF800000> : vector<128xf32>
    %62 = vector.multi_reduction <maximumf>, %61, %cst_23 [0] : vector<4x128xf32> to vector<128xf32>
    %63 = vector.shape_cast %62 : vector<128xf32> to vector<1x128xf32>
    %64 = vector.broadcast %55 : vector<4x1xf32> to vector<4x128xf32>
    %65 = arith.mulf %23, %64 : vector<4x128xf32>
    %cst_24 = arith.constant dense<0.000000e+00> : vector<128xf32>
    %66 = vector.multi_reduction <add>, %65, %cst_24 [0] : vector<4x128xf32> to vector<128xf32>
    %67 = vector.shape_cast %66 : vector<128xf32> to vector<1x128xf32>
    %cst_25 = arith.constant 5.000000e-01 : f32
    %68 = vector.broadcast %cst_25 : f32 to vector<1x128xf32>
    %69 = arith.mulf %67, %68 : vector<1x128xf32>
    %70 = tpu.concatenate %63, %69 in 1 : vector<1x128xf32>, vector<1x128xf32> -> vector<1x256xf32>
    %71 = tpu.concatenate %47, %70 in 0 : vector<1x256xf32>, vector<1x256xf32> -> vector<2x256xf32>
    %72 = arith.addf %2, %71 : vector<2x256xf32>
    %c0_26 = arith.constant 0 : index
    %c0_27 = arith.constant 0 : index
    %73 = vector.load %arg10[%c0_26, %c0_27] : memref<2x256xf32, #tpu.memory_space<vmem>>, vector<2x256xf32>
    tpu.vector_store %arg10[%c0_26, %c0_27], %72 {strides = array<i32>} : memref<2x256xf32, #tpu.memory_space<vmem>>, vector<2x256xf32>,
    %c0_28 = arith.constant 0 : index
    %c0_29 = arith.constant 0 : index
    %74 = vector.load %arg0[%c0_28, %c0_29] : memref<64x1xi32, #tpu.memory_space<vmem>>, vector<64x1xi32>
    %c0_30 = arith.constant 0 : index
    %c0_31 = arith.constant 0 : index
    %75 = vector.load %arg1[%c0_30, %c0_31] : memref<1x64xi32, #tpu.memory_space<vmem>>, vector<1x64xi32>
    %c0_32 = arith.constant 0 : index
    %c0_33 = arith.constant 0 : index
    %76 = vector.load %arg4[%c0_32, %c0_33] : memref<64x128xf32, #tpu.memory_space<vmem>>, vector<64x128xf32>
    %c0_34 = arith.constant 0 : index
    %c0_35 = arith.constant 0 : index
    %77 = vector.load %arg5[%c0_34, %c0_35] : memref<64x1xf32, #tpu.memory_space<vmem>>, vector<64x1xf32>
    %c0_36 = arith.constant 0 : index
    %c0_37 = arith.constant 0 : index
    %78 = vector.load %arg6[%c0_36, %c0_37] : memref<384x128xbf16, #tpu.memory_space<vmem>>, vector<384x128xbf16>
    %c0_38 = arith.constant 0 : index
    %c0_39 = arith.constant 0 : index
    %79 = vector.load %arg7[%c0_38, %c0_39] : memref<1x128xf32, #tpu.memory_space<vmem>>, vector<1x128xf32>
    %80 = tpu.iota {dimensions = array<i32: 1>} : vector<64x4xi32>
    %81 = vector.broadcast %74 : vector<64x1xi32> to vector<64x4xi32>
    %82 = arith.cmpi eq, %80, %81 : vector<64x4xi32>
    %cst_40 = arith.constant 1.000000e+00 : f32
    %cst_41 = arith.constant 0.000000e+00 : f32
    %83 = vector.broadcast %cst_40 : f32 to vector<64x4xf32>
    %84 = vector.broadcast %cst_41 : f32 to vector<64x4xf32>
    %85 = arith.select %82, %83, %84 : vector<64x4xi1>, vector<64x4xf32>
    %86 = arith.truncf %85 : vector<64x4xf32> to vector<64x4xbf16>
    %87 = tpu.iota {dimensions = array<i32: 0>} : vector<4x64xi32>
    %88 = vector.broadcast %75 : vector<1x64xi32> to vector<4x64xi32>
    %89 = arith.cmpi eq, %87, %88 : vector<4x64xi32>
    %cst_42 = arith.constant 1.000000e+00 : f32
    %cst_43 = arith.constant 0.000000e+00 : f32
    %90 = vector.broadcast %cst_42 : f32 to vector<4x64xf32>
    %91 = vector.broadcast %cst_43 : f32 to vector<4x64xf32>
    %92 = arith.select %89, %90, %91 : vector<4x64xi1>, vector<4x64xf32>
    %93 = arith.truncf %92 : vector<4x64xf32> to vector<4x64xbf16>
    %94 = arith.truncf %23 : vector<4x128xf32> to vector<4x128xbf16>
    %cst_44 = arith.constant dense<0.000000e+00> : vector<64x128xf32>
    %95 = tpu.matmul %86, %94, %cst_44 {dimension_numbers = #tpu.dot_dimension_numbers<[1], [0], [0], [1], [0, 0, 1, 1], [], []>} : vector<64x4xbf16>, vector<4x128xbf16>, vector<64x128xf32> -> vector<64x128xf32>
    %96 = arith.mulf %95, %76 : vector<64x128xf32>
    %97 = vector.broadcast %77 : vector<64x1xf32> to vector<64x128xf32>
    %98 = arith.mulf %96, %97 : vector<64x128xf32>
    %99 = vector.broadcast %77 : vector<64x1xf32> to vector<64x128xf32>
    %100 = arith.mulf %95, %99 : vector<64x128xf32>
    %101 = tpu.concatenate %98, %100 in 1 : vector<64x128xf32>, vector<64x128xf32> -> vector<64x256xf32>
    %102 = arith.truncf %101 : vector<64x256xf32> to vector<64x256xbf16>
    %cst_45 = arith.constant dense<0.000000e+00> : vector<4x256xf32>
    %103 = tpu.matmul %93, %102, %cst_45 {dimension_numbers = #tpu.dot_dimension_numbers<[1], [0], [0], [1], [0, 0, 1, 1], [], []>} : vector<4x64xbf16>, vector<64x256xbf16>, vector<4x256xf32> -> vector<4x256xf32>
    %104 = tpu.concatenate %103, %23 in 1 : vector<4x256xf32>, vector<4x128xf32> -> vector<4x384xf32>
    %105 = arith.truncf %104 : vector<4x384xf32> to vector<4x384xbf16>
    %cst_46 = arith.constant dense<0.000000e+00> : vector<4x128xf32>
    %106 = tpu.matmul %105, %78, %cst_46 {dimension_numbers = #tpu.dot_dimension_numbers<[1], [0], [0], [1], [0, 0, 1, 1], [], []>} : vector<4x384xbf16>, vector<384x128xbf16>, vector<4x128xf32> -> vector<4x128xf32>
    %107 = vector.broadcast %79 : vector<1x128xf32> to vector<4x128xf32>
    %108 = arith.addf %106, %107 : vector<4x128xf32>
    %109 = tpu.iota {dimensions = array<i32: 1>} : vector<4x128xi32>
    %c32_i32_47 = arith.constant 32 : i32
    %110 = vector.broadcast %c32_i32_47 : i32 to vector<4x128xi32>
    %111 = arith.cmpi slt, %109, %110 : vector<4x128xi32>
    %cst_48 = arith.constant 0.000000e+00 : f32
    %112 = vector.broadcast %cst_48 : f32 to vector<4x128xf32>
    %113 = arith.maximumf %108, %112 : vector<4x128xf32>
    %114 = arith.select %111, %113, %108 : vector<4x128xi1>, vector<4x128xf32>
    %c0_49 = arith.constant 0 : index
    %c0_50 = arith.constant 0 : index
    %115 = vector.load %arg9[%c0_49, %c0_50] : memref<4x128xf32, #tpu.memory_space<vmem>>, vector<4x128xf32>
    tpu.vector_store %arg9[%c0_49, %c0_50], %114 {strides = array<i32>} : memref<4x128xf32, #tpu.memory_space<vmem>>, vector<4x128xf32>,
    return
  }
}

module attributes {stable_mosaic.version = 11 : i64} {
  func.func @_final_kernel(%arg0: memref<2x1xi32, #tpu.memory_space<vmem>>, %arg1: memref<4x128xf32, #tpu.memory_space<vmem>>, %arg2: memref<2x256xf32, #tpu.memory_space<vmem>>, %arg3: memref<256x128xbf16, #tpu.memory_space<vmem>>, %arg4: memref<1x128xf32, #tpu.memory_space<vmem>>, %arg5: memref<128x128xbf16, #tpu.memory_space<vmem>>, %arg6: memref<1x128xf32, #tpu.memory_space<vmem>>, %arg7: memref<128x128xbf16, #tpu.memory_space<vmem>>, %arg8: memref<1x128xf32, #tpu.memory_space<vmem>>, %arg9: memref<2x128xf32, #tpu.memory_space<vmem>>) attributes {dimension_semantics = [], scalar_prefetch = 0 : i64, scratch_operands = 0 : i64, tpu.core_type = #tpu.core_type<tc>} {
    %c0 = arith.constant 0 : index
    %c0_0 = arith.constant 0 : index
    %0 = vector.load %arg1[%c0, %c0_0] : memref<4x128xf32, #tpu.memory_space<vmem>>, vector<4x128xf32>
    %c0_1 = arith.constant 0 : index
    %c0_2 = arith.constant 0 : index
    %1 = vector.load %arg0[%c0_1, %c0_2] : memref<2x1xi32, #tpu.memory_space<vmem>>, vector<2x1xi32>
    %c0_3 = arith.constant 0 : index
    %c0_4 = arith.constant 0 : index
    %2 = vector.load %arg2[%c0_3, %c0_4] : memref<2x256xf32, #tpu.memory_space<vmem>>, vector<2x256xf32>
    %3 = tpu.iota {dimensions = array<i32: 1>} : vector<2x4xi32>
    %4 = vector.broadcast %1 : vector<2x1xi32> to vector<2x4xi32>
    %5 = arith.cmpi eq, %3, %4 : vector<2x4xi32>
    %cst = arith.constant 1.000000e+00 : f32
    %cst_5 = arith.constant 0.000000e+00 : f32
    %6 = vector.broadcast %cst : f32 to vector<2x4xf32>
    %7 = vector.broadcast %cst_5 : f32 to vector<2x4xf32>
    %8 = arith.select %5, %6, %7 : vector<2x4xi1>, vector<2x4xf32>
    %cst_6 = arith.constant dense<0.000000e+00> : vector<2x128xf32>
    %9 = tpu.matmul %8, %0, %cst_6 {dimension_numbers = #tpu.dot_dimension_numbers<[1], [0], [0], [1], [0, 0, 1, 1], [], []>} : vector<2x4xf32>, vector<4x128xf32>, vector<2x128xf32> -> vector<2x128xf32>
    %10 = tpu.iota {dimensions = array<i32: 1>} : vector<2x128xi32>
    %c32_i32 = arith.constant 32 : i32
    %11 = vector.broadcast %c32_i32 : i32 to vector<2x128xi32>
    %12 = arith.cmpi eq, %10, %11 : vector<2x128xi32>
    %cst_7 = arith.constant 0.000000e+00 : f32
    %13 = vector.broadcast %cst_7 : f32 to vector<2x128xf32>
    %14 = arith.select %12, %9, %13 : vector<2x128xi1>, vector<2x128xf32>
    %cst_8 = arith.constant dense<0.000000e+00> : vector<2xf32>
    %15 = vector.multi_reduction <add>, %14, %cst_8 [1] : vector<2x128xf32> to vector<2xf32>
    %16 = vector.shape_cast %15 : vector<2xf32> to vector<2x1xf32>
    %c32_i32_9 = arith.constant 32 : i32
    %17 = vector.broadcast %c32_i32_9 : i32 to vector<2x128xi32>
    %18 = arith.cmpi slt, %10, %17 : vector<2x128xi32>
    %19 = math.tanh %16 : vector<2x1xf32>
    %20 = vector.broadcast %19 : vector<2x1xf32> to vector<2x128xf32>
    %21 = arith.mulf %9, %20 : vector<2x128xf32>
    %cst_10 = arith.constant 0.000000e+00 : f32
    %22 = vector.broadcast %cst_10 : f32 to vector<2x128xf32>
    %23 = arith.select %18, %21, %22 : vector<2x128xi1>, vector<2x128xf32>
    %24 = tpu.iota {dimensions = array<i32: 0>} : vector<2x1xi32>
    %c0_i32 = arith.constant 0 : i32
    %25 = vector.broadcast %c0_i32 : i32 to vector<2x1xi32>
    %26 = arith.cmpi sge, %24, %25 : vector<2x1xi32>
    %c1_i32 = arith.constant 1 : i32
    %27 = vector.broadcast %c1_i32 : i32 to vector<2x1xi32>
    %28 = arith.cmpi slt, %24, %27 : vector<2x1xi32>
    %29 = arith.andi %26, %28 : vector<2x1xi1>
    %cst_11 = arith.constant 1.000000e+00 : f32
    %cst_12 = arith.constant 0.000000e+00 : f32
    %30 = vector.broadcast %cst_11 : f32 to vector<2x1xf32>
    %31 = vector.broadcast %cst_12 : f32 to vector<2x1xf32>
    %32 = arith.select %29, %30, %31 : vector<2x1xi1>, vector<2x1xf32>
    %cst_13 = arith.constant 1.000000e+00 : f32
    %33 = vector.broadcast %cst_13 : f32 to vector<2x1xf32>
    %34 = arith.subf %32, %33 : vector<2x1xf32>
    %cst_14 = arith.constant 1.000000e+30 : f32
    %35 = vector.broadcast %cst_14 : f32 to vector<2x1xf32>
    %36 = arith.mulf %34, %35 : vector<2x1xf32>
    %37 = vector.broadcast %36 : vector<2x1xf32> to vector<2x128xf32>
    %38 = arith.addf %23, %37 : vector<2x128xf32>
    %cst_15 = arith.constant dense<0xFF800000> : vector<128xf32>
    %39 = vector.multi_reduction <maximumf>, %38, %cst_15 [0] : vector<2x128xf32> to vector<128xf32>
    %40 = vector.shape_cast %39 : vector<128xf32> to vector<1x128xf32>
    %41 = vector.broadcast %32 : vector<2x1xf32> to vector<2x128xf32>
    %42 = arith.mulf %23, %41 : vector<2x128xf32>
    %cst_16 = arith.constant dense<0.000000e+00> : vector<128xf32>
    %43 = vector.multi_reduction <add>, %42, %cst_16 [0] : vector<2x128xf32> to vector<128xf32>
    %44 = vector.shape_cast %43 : vector<128xf32> to vector<1x128xf32>
    %cst_17 = arith.constant 1.000000e+00 : f32
    %45 = vector.broadcast %cst_17 : f32 to vector<1x128xf32>
    %46 = arith.mulf %44, %45 : vector<1x128xf32>
    %47 = tpu.concatenate %40, %46 in 1 : vector<1x128xf32>, vector<1x128xf32> -> vector<1x256xf32>
    %c1_i32_18 = arith.constant 1 : i32
    %48 = vector.broadcast %c1_i32_18 : i32 to vector<2x1xi32>
    %49 = arith.cmpi sge, %24, %48 : vector<2x1xi32>
    %c2_i32 = arith.constant 2 : i32
    %50 = vector.broadcast %c2_i32 : i32 to vector<2x1xi32>
    %51 = arith.cmpi slt, %24, %50 : vector<2x1xi32>
    %52 = arith.andi %49, %51 : vector<2x1xi1>
    %cst_19 = arith.constant 1.000000e+00 : f32
    %cst_20 = arith.constant 0.000000e+00 : f32
    %53 = vector.broadcast %cst_19 : f32 to vector<2x1xf32>
    %54 = vector.broadcast %cst_20 : f32 to vector<2x1xf32>
    %55 = arith.select %52, %53, %54 : vector<2x1xi1>, vector<2x1xf32>
    %cst_21 = arith.constant 1.000000e+00 : f32
    %56 = vector.broadcast %cst_21 : f32 to vector<2x1xf32>
    %57 = arith.subf %55, %56 : vector<2x1xf32>
    %cst_22 = arith.constant 1.000000e+30 : f32
    %58 = vector.broadcast %cst_22 : f32 to vector<2x1xf32>
    %59 = arith.mulf %57, %58 : vector<2x1xf32>
    %60 = vector.broadcast %59 : vector<2x1xf32> to vector<2x128xf32>
    %61 = arith.addf %23, %60 : vector<2x128xf32>
    %cst_23 = arith.constant dense<0xFF800000> : vector<128xf32>
    %62 = vector.multi_reduction <maximumf>, %61, %cst_23 [0] : vector<2x128xf32> to vector<128xf32>
    %63 = vector.shape_cast %62 : vector<128xf32> to vector<1x128xf32>
    %64 = vector.broadcast %55 : vector<2x1xf32> to vector<2x128xf32>
    %65 = arith.mulf %23, %64 : vector<2x128xf32>
    %cst_24 = arith.constant dense<0.000000e+00> : vector<128xf32>
    %66 = vector.multi_reduction <add>, %65, %cst_24 [0] : vector<2x128xf32> to vector<128xf32>
    %67 = vector.shape_cast %66 : vector<128xf32> to vector<1x128xf32>
    %cst_25 = arith.constant 1.000000e+00 : f32
    %68 = vector.broadcast %cst_25 : f32 to vector<1x128xf32>
    %69 = arith.mulf %67, %68 : vector<1x128xf32>
    %70 = tpu.concatenate %63, %69 in 1 : vector<1x128xf32>, vector<1x128xf32> -> vector<1x256xf32>
    %71 = tpu.concatenate %47, %70 in 0 : vector<1x256xf32>, vector<1x256xf32> -> vector<2x256xf32>
    %72 = arith.addf %2, %71 : vector<2x256xf32>
    %c0_26 = arith.constant 0 : index
    %c0_27 = arith.constant 0 : index
    %73 = vector.load %arg3[%c0_26, %c0_27] : memref<256x128xbf16, #tpu.memory_space<vmem>>, vector<256x128xbf16>
    %c0_28 = arith.constant 0 : index
    %c0_29 = arith.constant 0 : index
    %74 = vector.load %arg4[%c0_28, %c0_29] : memref<1x128xf32, #tpu.memory_space<vmem>>, vector<1x128xf32>
    %c0_30 = arith.constant 0 : index
    %c0_31 = arith.constant 0 : index
    %75 = vector.load %arg5[%c0_30, %c0_31] : memref<128x128xbf16, #tpu.memory_space<vmem>>, vector<128x128xbf16>
    %c0_32 = arith.constant 0 : index
    %c0_33 = arith.constant 0 : index
    %76 = vector.load %arg6[%c0_32, %c0_33] : memref<1x128xf32, #tpu.memory_space<vmem>>, vector<1x128xf32>
    %c0_34 = arith.constant 0 : index
    %c0_35 = arith.constant 0 : index
    %77 = vector.load %arg7[%c0_34, %c0_35] : memref<128x128xbf16, #tpu.memory_space<vmem>>, vector<128x128xbf16>
    %c0_36 = arith.constant 0 : index
    %c0_37 = arith.constant 0 : index
    %78 = vector.load %arg8[%c0_36, %c0_37] : memref<1x128xf32, #tpu.memory_space<vmem>>, vector<1x128xf32>
    %79 = arith.truncf %72 : vector<2x256xf32> to vector<2x256xbf16>
    %cst_38 = arith.constant dense<0.000000e+00> : vector<2x128xf32>
    %80 = tpu.matmul %79, %73, %cst_38 {dimension_numbers = #tpu.dot_dimension_numbers<[1], [0], [0], [1], [0, 0, 1, 1], [], []>} : vector<2x256xbf16>, vector<256x128xbf16>, vector<2x128xf32> -> vector<2x128xf32>
    %81 = vector.broadcast %74 : vector<1x128xf32> to vector<2x128xf32>
    %82 = arith.addf %80, %81 : vector<2x128xf32>
    %cst_39 = arith.constant 0.000000e+00 : f32
    %83 = vector.broadcast %cst_39 : f32 to vector<2x128xf32>
    %84 = arith.maximumf %82, %83 : vector<2x128xf32>
    %85 = arith.truncf %84 : vector<2x128xf32> to vector<2x128xbf16>
    %cst_40 = arith.constant dense<0.000000e+00> : vector<2x128xf32>
    %86 = tpu.matmul %85, %75, %cst_40 {dimension_numbers = #tpu.dot_dimension_numbers<[1], [0], [0], [1], [0, 0, 1, 1], [], []>} : vector<2x128xbf16>, vector<128x128xbf16>, vector<2x128xf32> -> vector<2x128xf32>
    %87 = vector.broadcast %76 : vector<1x128xf32> to vector<2x128xf32>
    %88 = arith.addf %86, %87 : vector<2x128xf32>
    %cst_41 = arith.constant 0.000000e+00 : f32
    %89 = vector.broadcast %cst_41 : f32 to vector<2x128xf32>
    %90 = arith.maximumf %88, %89 : vector<2x128xf32>
    %91 = arith.truncf %90 : vector<2x128xf32> to vector<2x128xbf16>
    %cst_42 = arith.constant dense<0.000000e+00> : vector<2x128xf32>
    %92 = tpu.matmul %91, %77, %cst_42 {dimension_numbers = #tpu.dot_dimension_numbers<[1], [0], [0], [1], [0, 0, 1, 1], [], []>} : vector<2x128xbf16>, vector<128x128xbf16>, vector<2x128xf32> -> vector<2x128xf32>
    %93 = vector.broadcast %78 : vector<1x128xf32> to vector<2x128xf32>
    %94 = arith.addf %92, %93 : vector<2x128xf32>
    %95 = tpu.iota {dimensions = array<i32: 1>} : vector<2x128xi32>
    %c32_i32_43 = arith.constant 32 : i32
    %96 = vector.broadcast %c32_i32_43 : i32 to vector<2x128xi32>
    %97 = arith.cmpi slt, %95, %96 : vector<2x128xi32>
    %cst_44 = arith.constant -1.000000e+30 : f32
    %98 = vector.broadcast %cst_44 : f32 to vector<2x128xf32>
    %99 = arith.select %97, %94, %98 : vector<2x128xi1>, vector<2x128xf32>
    %cst_45 = arith.constant dense<0xFF800000> : vector<2xf32>
    %100 = vector.multi_reduction <maximumf>, %99, %cst_45 [1] : vector<2x128xf32> to vector<2xf32>
    %101 = vector.shape_cast %100 : vector<2xf32> to vector<2x1xf32>
    %102 = vector.broadcast %101 : vector<2x1xf32> to vector<2x128xf32>
    %103 = arith.subf %99, %102 : vector<2x128xf32>
    %104 = math.exp %103 : vector<2x128xf32>
    %cst_46 = arith.constant dense<0.000000e+00> : vector<2xf32>
    %105 = vector.multi_reduction <add>, %104, %cst_46 [1] : vector<2x128xf32> to vector<2xf32>
    %106 = vector.shape_cast %105 : vector<2xf32> to vector<2x1xf32>
    %107 = math.log %106 : vector<2x1xf32>
    %108 = vector.broadcast %107 : vector<2x1xf32> to vector<2x128xf32>
    %109 = arith.subf %103, %108 : vector<2x128xf32>
    %c0_47 = arith.constant 0 : index
    %c0_48 = arith.constant 0 : index
    %110 = vector.load %arg9[%c0_47, %c0_48] : memref<2x128xf32, #tpu.memory_space<vmem>>, vector<2x128xf32>
    tpu.vector_store %arg9[%c0_47, %c0_48], %109 {strides = array<i32>} : memref<2x128xf32, #tpu.memory_space<vmem>>, vector<2x128xf32>,
    return
  }
}

</mosaic_0001>

<bundles_post_ra>
// kernel: _lambda_.6
= control target key start
LH: loop header
LB: loop body
LE: loop exit
PB: predicated region body
PF: predicated region fallthrough
CT: control target
= control target key end

     0   :  { %v801_v0 = vmov 0   ;;  %v42_v17 = vlaneseq  ;;  %vm54_vm0 = vcmask 261120   ;;  %v802_v20 = vmov 0.0   ;;  %s1093_s2 = inlined_call_operand.vmem [shape: s32[16,1], index: 2, kind: input, shape index: {}]   ;;  %s1094_s0 = inlined_call_operand.vmem [shape: s32[64,1], index: 0, kind: input, shape index: {}]   ;;  %s1095_s3 = inlined_call_operand.vmem [shape: f32[32,128], index: 3, kind: input, shape index: {}]   ;;  %s1096_s5 = inlined_call_operand.vmem [shape: f32[64,1], index: 5, kind: input, shape index: {}]   ;;  %s1097_s8 = inlined_call_operand.vmem [shape: f32[2,256], index: 8, kind: input, shape index: {}, may-alias: {8,10}]   ;;  %s1098_s10 = inlined_call_operand.vmem [shape: f32[2,256], index: 10, kind: output, shape index: {1}, may-alias: {8,10}]   ;;  %s1099_s1 = inlined_call_operand.vmem [shape: s32[1,64], index: 1, kind: input, shape index: {}]   ;;  %s1100_s4 = inlined_call_operand.vmem [shape: f32[64,128], index: 4, kind: input, shape index: {}]   ;;  %s1101_s6 = inlined_call_operand.vmem [shape: bf16[384,128], index: 6, kind: input, shape index: {}]   ;;  %s1102_s7 = inlined_call_operand.vmem [shape: f32[1,128], index: 7, kind: input, shape index: {}]   ;;  %s1103_s9 = inlined_call_operand.vmem [shape: f32[16,128], index: 9, kind: output, shape index: {0}]  }
   0x1   :  { %792 = vset.pattern.permute.xlu0 %v801_v0  ;;  %v39_v1 = vld [vmem:[%s1093_s2] sm:$0xff]  ;;  %793 = vset.pattern.permute.xlu2 %v801_v0  ;;  %v40_v3 = vld [vmem:[%s1093_s2 + $0x8] sm:$0xff]  ;;  %v182_v5 = vld [vmem:[%s1094_s0 + $0x10] sm:$0xff]  ;;  %vm305_vm8 = vcmask 130048   ;;  %vm169_vm11 = vcmask 1040384   ;;  %vm175_vm12 = vcmask 1041408  }
   0x2   :  { %45 = vperm.xlu0 %792, %v39_v1   ;;  %v180_v2 = vld [vmem:[%s1094_s0] sm:$0xff]  ;;  %794 = vset.pattern.permute.xlu1 %v801_v0  ;;  %v181_v4 = vld [vmem:[%s1094_s0 + $0x8] sm:$0xff]  ;;  %v186_v8 = vld [vmem:[%s1094_s0 + $0x30] sm:$0xff]  ;;  %v907_v18 = vand.u32 127, %v42_v17 }
   0x3   :  { %255 = vperm.xlu2 %793, %v180_v2   ;;  %v184_v6 = vld [vmem:[%s1094_s0 + $0x20] sm:$0xff]  ;;  %v185_v7 = vld [vmem:[%s1094_s0 + $0x28] sm:$0xff]  ;;  %v38_v9 = vld [vmem:[%s1095_s3 + $0x18] sm:$0xff] }
   0x4   :  { %v37_v10 = vld [vmem:[%s1095_s3 + $0x10] sm:$0xff]  ;;  %73 = vmatpush.msra.mxu0 %v38_v9  ;;  %v36_v11 = vld [vmem:[%s1095_s3 + $0x8] sm:$0xff]  ;;  %v187_v12 = vld [vmem:[%s1094_s0 + $0x38] sm:$0xff]  ;;  %vm84_vm3 = vcmp.eq.s32.totalorder %v907_v18, 32  ;;  %vm91_vm4 = vcmp.lt.s32.totalorder %v907_v18, 32 }
   0x5   :  { %v204_v13 = vld [vmem:[%s1096_s5 + $0x38] sm:$0xff]  ;;  %v199_v14 = vld [vmem:[%s1096_s5 + $0x10] sm:$0xff]  ;;  %v198_v15 = vld [vmem:[%s1096_s5 + $0x8] sm:$0xff] }
   0x6   :  { %74 = vmatpush.msra.mxu0 %v37_v10  ;;  %v35_v16 = vld [vmem:[%s1095_s3] sm:$0xff]  ;;  %v203_v24 = vld [vmem:[%s1096_s5 + $0x30] sm:$0xff]  ;;  %v200_v28 = vld [vmem:[%s1096_s5 + $0x18] sm:$0xff] }
   0x7   :  { %v201_v25 = vld [vmem:[%s1096_s5 + $0x20] sm:$0xff]  ;;  %v183_v31 = vld [vmem:[%s1094_s0 + $0x18] sm:$0xff]  ;;  %v202_v32 = vld [vmem:[%s1096_s5 + $0x28] sm:$0xff] }
   0x8   :  { %75 = vmatpush.msra.mxu0 %v36_v11  ;;  %v197_v33 = vld [vmem:[%s1096_s5] sm:$0xff]  ;;  %vm942_vm7 = vmpackc.low %vm91_vm4, %vm91_vm4 }
   0x9   :  { %v774_v47 = vld [vmem:[%s1101_s6 + $0x40] sm:$0xff] }
   0xa   :  { %48 = vperm.xlu0 %792, %v40_v3   ;;  %76 = vmatpush.msra.mxu0 %v35_v16 }
   0xb   :  { %258 = vperm.xlu2 %793, %v181_v4  }
  0x12   :  { %261 = vperm.xlu0 %792, %v182_v5  }
  0x13   :  { %267 = vperm.xlu2 %793, %v184_v6  }
  0x1a   :  { %270 = vperm.xlu0 %792, %v185_v7  }
  0x1b   :  { %273 = vperm.xlu2 %793, %v186_v8  }
  0x22   :  { %276 = vperm.xlu0 %792, %v187_v12  }
  0x23   :  { %387 = vperm.xlu2 %793, %v203_v24  }
  0x2a   :  { %392 = vperm.xlu0 %792, %v204_v13  }
  0x2b   :  { %377 = vperm.xlu2 %793, %v201_v25  }
  0x32   :  { %367 = vperm.xlu0 %792, %v199_v14  }
  0x33   :  { %372 = vperm.xlu2 %793, %v200_v28  }
  0x3a   :  { %362 = vperm.xlu0 %792, %v198_v15  }
  0x5d   :  { %v256_v35 = vpop.permute.xlu2 %255 }
  0x5e   :  { %vm278_vm5 = vcmp.eq.s32.totalorder %v907_v18, %v256_v35 }
  0x5f   :  { %v286_v43 = vsel %vm278_vm5, 1.0, %v802_v20 }
  0x65   :  { %v259_v39 = vpop.permute.xlu2 %258 }
  0x66   :  { %vm279_vm6 = vcmp.eq.s32.totalorder %v907_v18, %v259_v39 }
  0x67   :  { %v287_v44 = vsel %vm279_vm6, 1.0, %v802_v20 }
  0x68   :  { %v294_v54 = vpack.c.bf16 %v287_v44, %v286_v43 }
  0x74   :  { %v46_v19 = vpop.permute.xlu0 %45 }
  0x75   :  { %vm50_vm1 = vcmp.eq.s32.totalorder %v907_v18, %v46_v19 }
  0x76   :  { %v52_v21 = vsel %vm50_vm1, 1.0, %v802_v20 }
  0x77   :  { %656 = vmatmul.msk.f32.vlgmr.msra.gmra.mxu0 %vm54_vm0, %v52_v21 }
  0x7c   :  { %v49_v22 = vpop.permute.xlu0 %48 }
  0x7d   :  { %vm51_vm2 = vcmp.eq.s32.totalorder %v907_v18, %v49_v22 }
  0x7e   :  { %v53_v23 = vsel %vm51_vm2, 1.0, %v802_v20 }
  0x7f   :  { %657 = vmatmul.msk.f32.gmra.mxu0 %vm54_vm0, %v53_v23 }
  0x84   :  { %v262_v11 = vpop.permute.xlu0 %261 }
  0x85   :  { %vm280_vm9 = vcmp.eq.s32.totalorder %v907_v18, %v262_v11 }
  0x8c   :  { %v271_v35 = vpop.permute.xlu0 %270 }
  0x8d   :  { %vm283_vm13 = vcmp.eq.s32.totalorder %v907_v18, %v271_v35 }
  0xf4   :  { %v78_v26 = vpop.f32.mrf.mxu0 }
  0xf5   :  { %v85_v27 = vsel %vm84_vm3, %v78_v26, 0.0 }
  0xf6   :  { %87 = vadd.xlane.f32.xlu1 %v85_v27  ;;  %v288_v27 = vsel %vm280_vm9, 1.0, %v802_v20 }
  0xfc   :  { %v81_v29 = vpop.f32.mrf.mxu0 }
  0xfd   :  { %v86_v30 = vsel %vm84_vm3, %v81_v29, 0.0  ;;  %vm419_vm3 = vcmask 523264  }
  0xfe   :  { %89 = vadd.xlane.f32.xlu1 %v86_v30  ;;  %v41_v30 = vld [vmem:[%s1097_s8] sm:$0xf] }
 0x117   :  { %264 = vperm.xlu1 %794, %v183_v31  }
 0x11f   :  { %382 = vperm.xlu1 %794, %v202_v32  }
 0x127   :  { %357 = vperm.xlu1 %794, %v197_v33  }
 0x169   :  { %v88_v34 = vpop.xlane.xlu1 %87 }
 0x16a   :  { %797 = vtanh.f32 %v88_v34 }
 0x170   :  { %v798_v36 = vpop.eup %797 }
 0x171   :  { %v90_v37 = vpop.xlane.xlu1 %89  ;;  %v94_v38 = vmul.f32 %v798_v36, %v78_v26  ;;  %v268_v36 = vpop.permute.xlu2 %267 }
 0x172   :  { %799 = vtanh.f32 %v90_v37  ;;  %vm282_vm14 = vcmp.eq.s32.totalorder %v907_v18, %v268_v36  ;;  %v291_v37 = vsel %vm283_vm13, 1.0, %v802_v20 }
 0x173   :  { %v96_v40 = vsel %vm91_vm4, %v94_v38, 0.0 }
 0x174   :  { %v144_v45 = vadd.f32 -1e+30, %v96_v40  ;;  %v153_v46 = vmul.f32 0.0, %v96_v40 }
 0x178   :  { %v800_v41 = vpop.eup %799 }
 0x179   :  { %v95_v42 = vmul.f32 %v800_v41, %v81_v29  ;;  %v274_v41 = vpop.permute.xlu2 %273 }
 0x17a   :  { %vm284_vm0 = vcmp.eq.s32.totalorder %v907_v18, %v274_v41 }
 0x17b   :  { %v97_v48 = vsel %vm91_vm4, %v95_v42, 0.0  ;;  %v948_v49 = vpack.c.bf16 %v95_v42, %v94_v38  ;;  %v290_v38 = vsel %vm282_vm14, 1.0, %v802_v20  ;;  %v292_v43 = vsel %vm284_vm0, 1.0, %v802_v20 }
 0x17c   :  { %v114_v50 = vadd.f32 -1e+30, %v97_v48  ;;  %v123_v51 = vmul.f32 0.0, %v97_v48  ;;  %v146_v52 = vmax.f32 %v144_v45, %v97_v48  ;;  %v155_v53 = vadd.f32 %v153_v46, %v97_v48 }
 0x17d   :  { %660 = vmatpush.bf16.msk.msra.mxu1 %vm942_vm7, %v948_v49  ;;  %v296_v39 = vpack.c.bf16 %v291_v37, %v290_v38 }
 0x17e   :  { %v115_v55 = vmax.f32 %v96_v40, %v114_v50  ;;  %v124_v56 = vadd.f32 %v123_v51, %v96_v40  ;;  %v147_v57 = vrot.slane %v146_v52, 4  ;;  %v156_v58 = vrot.slane %v155_v53, 4  ;;  %v277_v40 = vpop.permute.xlu0 %276 }
 0x17f   :  { %vm285_vm15 = vcmp.eq.s32.totalorder %v907_v18, %v277_v40 }
 0x180   :  { %v116_v59 = vrot.slane %v115_v55, 4  ;;  %v125_v60 = vrot.slane %v124_v56, 4  ;;  %v148_v61 = vmax.f32 %v146_v52, %v147_v57  ;;  %v157_v62 = vadd.f32 %v156_v58, %v155_v53  ;;  %661 = vmatmul.msk.bf16.vlgmr.msra.gmra.mxu1 %vm305_vm8, %v294_v54  ;;  %v195_v57 = vld [vmem:[%s1100_s4 + $0x30] sm:$0xff]  ;;  %v194_v58 = vld [vmem:[%s1100_s4 + $0x28] sm:$0xff] }
 0x181   :  { %v293_v42 = vsel %vm285_vm15, 1.0, %v802_v20  ;;  %v388_v53 = vpop.permute.xlu2 %387 }
 0x182   :  { %v117_v63 = vmax.f32 %v115_v55, %v116_v59  ;;  %v126_v0 = vadd.f32 %v125_v60, %v124_v56  ;;  %v149_v1 = vrot.slane %v148_v61, 2  ;;  %v158_v2 = vrot.slane %v157_v62, 2  ;;  %v196_v59 = vld [vmem:[%s1100_s4 + $0x38] sm:$0xff]  ;;  %v193_v60 = vld [vmem:[%s1100_s4 + $0x20] sm:$0xff] }
 0x183   :  { %v297_v44 = vpack.c.bf16 %v293_v42, %v292_v43  ;;  %v789_v43 = vld [vmem:[%s1101_s6 + $0xb8] sm:$0xff] }
 0x184   :  { %v118_v3 = vrot.slane %v117_v63, 2  ;;  %v127_v4 = vrot.slane %v126_v0, 2  ;;  %v150_v5 = vmax.f32 %v148_v61, %v149_v1  ;;  %v159_v6 = vadd.f32 %v158_v2, %v157_v62 }
 0x186   :  { %v119_v7 = vmax.f32 %v117_v63, %v118_v3  ;;  %v128_v8 = vadd.f32 %v127_v4, %v126_v0  ;;  %v151_v9 = vrot.slane %v150_v5, 1  ;;  %v160_v10 = vrot.slane %v159_v6, 1  ;;  %v393_v54 = vpop.permute.xlu0 %392 }
 0x188   :  { %v120_v12 = vrot.slane %v119_v7, 1  ;;  %v129_v13 = vrot.slane %v128_v8, 1  ;;  %v152_v14 = vmax.f32 %v150_v5, %v151_v9  ;;  %v161_v15 = vadd.f32 %v160_v10, %v159_v6  ;;  %v192_v5 = vld [vmem:[%s1100_s4 + $0x18] sm:$0xff] }
 0x189   :  { %v265_v16 = vpop.permute.xlu1 %264  ;;  %v378_v56 = vpop.permute.xlu2 %377 }
 0x18a   :  { %v130_v19 = vadd.f32 %v129_v13, %v128_v8  ;;  %v162_v21 = vmul.f32 0.125, %v161_v15  ;;  %v121_v22 = vmax.f32 %v119_v7, %v120_v12  ;;  %vm281_vm10 = vcmp.eq.s32.totalorder %v907_v18, %v265_v16  ;;  %v191_v12 = vld [vmem:[%s1100_s4 + $0x10] sm:$0xff] }
 0x18b   :  { %v165_v24 = vrot.slane %v152_v14, 7  ;;  %v289_v26 = vsel %vm281_vm10, 1.0, %v802_v20  ;;  %v99_v7 = vshrl.u32 %v42_v17, 7  ;;  %v795_v17 = vld [vmem:[%s1099_s1] ss:$0 sm:$0xff] }
 0x18c   :  { %v131_v23 = vmul.f32 0.125, %v130_v19  ;;  %v166_v25 = vrot.slane %v162_v21, 7  ;;  %v295_v29 = vpack.c.bf16 %v289_v26, %v288_v27  ;;  %v190_v21 = vld [vmem:[%s1100_s4 + $0x8] sm:$0xff]  ;;  %v189_v27 = vld [vmem:[%s1100_s4] sm:$0xff] }
 0x18d   :  { %v170_v32 = vsel %vm169_vm11, %v121_v22, %v165_v24  ;;  %v100_v22 = vadd.s32 8, %v99_v7  ;;  %vm299_vm1 = vcmp.eq.s32.totalorder %v99_v7, %v795_v17 }
 0x18e   :  { %v171_v28 = vsel %vm169_vm11, %v131_v23, %v166_v25  ;;  %v368_v62 = vpop.permute.xlu0 %367  ;;  %v301_v41 = vsel %vm299_vm1, 1.0, %v802_v20 }
 0x18f   :  { %v174_v31 = vrot.slane %v171_v28, 6  ;;  %vm300_vm2 = vcmp.eq.s32.totalorder %v100_v22, %v795_v17 }
 0x190   :  { %662 = vmatmul.msk.bf16.gmra.mxu1 %vm305_vm8, %v295_v29  ;;  %v302_v42 = vsel %vm300_vm2, 1.0, %v802_v20  ;;  %v788_v20 = vld [vmem:[%s1101_s6 + $0xb0] sm:$0xff] }
 0x191   :  { %v176_v33 = vsel %vm175_vm12, %v170_v32, %v174_v31  ;;  %v383_v0 = vpop.permute.xlu1 %382  ;;  %v373_v19 = vpop.permute.xlu2 %372 }
 0x192   :  { %v178_v34 = vadd.f32 %v176_v33, %v41_v30 }
 0x194   :  { %179 = vst [vmem:[%s1098_s10] sm:$0xf] %v178_v34 }
 0x196   :  { %v363_v32 = vpop.permute.xlu0 %362 }
 0x199   :  { %v358_v33 = vpop.permute.xlu1 %357 }
 0x1a0   :  { %663 = vmatmul.msk.bf16.gmra.mxu1 %vm305_vm8, %v296_v39 }
 0x1b0   :  { %664 = vmatmul.msk.bf16.gmra.mxu1 %vm305_vm8, %v297_v44 }
 0x1fd   :  { %v327_v45 = vpop.f32.mrf.mxu1 }
 0x1fe   :  { %v347_v34 = vmul.f32 %v327_v45, %v189_v27  ;;  %v403_v38 = vmul.f32 %v358_v33, %v327_v45  ;;  %v781_v45 = vld [vmem:[%s1101_s6 + $0x78] sm:$0xff] }
 0x205   :  { %v329_v46 = vpop.f32.mrf.mxu1 }
 0x206   :  { %v348_v28 = vmul.f32 %v329_v46, %v190_v21  ;;  %v404_v35 = vmul.f32 %v363_v32, %v329_v46 }
 0x208   :  { %v396_v40 = vmul.f32 %v363_v32, %v348_v28  ;;  %v412_v44 = vpack.c.bf16 %v404_v35, %v403_v38 }
 0x20d   :  { %v332_v48 = vpop.f32.mrf.mxu1 }
 0x20e   :  { %v349_v23 = vmul.f32 %v332_v48, %v191_v12  ;;  %v405_v29 = vmul.f32 %v368_v62, %v332_v48  ;;  %v395_v48 = vmul.f32 %v358_v33, %v347_v34  ;;  %v796_v12 = vld [vmem:[%s1102_s7] ss:$0 sm:$0xff] }
 0x210   :  { %v397_v37 = vmul.f32 %v368_v62, %v349_v23  ;;  %v411_v46 = vpack.c.bf16 %v396_v40, %v395_v48  ;;  %v777_v62 = vld [vmem:[%s1101_s6 + $0x58] sm:$0xff] }
 0x215   :  { %v334_v50 = vpop.f32.mrf.mxu1 }
 0x216   :  { %v350_v13 = vmul.f32 %v334_v50, %v192_v5  ;;  %v406_v24 = vmul.f32 %v373_v19, %v334_v50  ;;  %v303_v50 = vpack.c.bf16 %v302_v42, %v301_v41  ;;  %v767_v5 = vld [vmem:[%s1101_s6 + $0x8] sm:$0xff] }
 0x218   :  { %v398_v31 = vmul.f32 %v373_v19, %v350_v13  ;;  %v414_v36 = vpack.c.bf16 %v406_v24, %v405_v29 }
 0x21a   :  { %v413_v39 = vpack.c.bf16 %v398_v31, %v397_v37 }
 0x21d   :  { %v337_v51 = vpop.f32.mrf.mxu1 }
 0x21e   :  { %v351_v6 = vmul.f32 %v337_v51, %v193_v60  ;;  %v407_v14 = vmul.f32 %v378_v56, %v337_v51  ;;  %v773_v51 = vld [vmem:[%s1101_s6 + $0x38] sm:$0xff] }
 0x21f   :  { %600 = vmatpush.bf16.msrb.mxu0 %v773_v51  ;;  %v785_v60 = vld [vmem:[%s1101_s6 + $0x98] sm:$0xff] }
 0x220   :  { %v399_v26 = vmul.f32 %v378_v56, %v351_v6  ;;  %v779_v56 = vld [vmem:[%s1101_s6 + $0x68] sm:$0xff] }
 0x225   :  { %v339_v52 = vpop.f32.mrf.mxu1 }
 0x226   :  { %v352_v1 = vmul.f32 %v339_v52, %v194_v58  ;;  %v408_v8 = vmul.f32 %v383_v0, %v339_v52  ;;  %v772_v52 = vld [vmem:[%s1101_s6 + $0x30] sm:$0xff]  ;;  %v770_v58 = vld [vmem:[%s1101_s6 + $0x20] sm:$0xff] }
 0x227   :  { %601 = vmatpush.bf16.msrb.mxu0 %v772_v52 }
 0x228   :  { %v400_v16 = vmul.f32 %v383_v0, %v352_v1  ;;  %v416_v25 = vpack.c.bf16 %v408_v8, %v407_v14  ;;  %v783_v0 = vld [vmem:[%s1101_s6 + $0x88] sm:$0xff]  ;;  %v782_v1 = vld [vmem:[%s1101_s6 + $0x80] sm:$0xff] }
 0x22a   :  { %v415_v30 = vpack.c.bf16 %v400_v16, %v399_v26 }
 0x22d   :  { %v342_v55 = vpop.f32.mrf.mxu1 }
 0x22e   :  { %v353_v61 = vmul.f32 %v342_v55, %v195_v57  ;;  %v409_v2 = vmul.f32 %v388_v53, %v342_v55  ;;  %v771_v55 = vld [vmem:[%s1101_s6 + $0x28] sm:$0xff]  ;;  %v786_v57 = vld [vmem:[%s1101_s6 + $0xa0] sm:$0xff] }
 0x22f   :  { %602 = vmatpush.bf16.msrb.mxu0 %v771_v55 }
 0x230   :  { %v401_v10 = vmul.f32 %v388_v53, %v353_v61  ;;  %v780_v53 = vld [vmem:[%s1101_s6 + $0x70] sm:$0xff]  ;;  %v769_v61 = vld [vmem:[%s1101_s6 + $0x18] sm:$0xff] }
 0x233   :  { %603 = vmatpush.bf16.msrb.mxu0 %v770_v58 }
 0x235   :  { %v344_v63 = vpop.f32.mrf.mxu1 }
 0x236   :  { %v354_v3 = vmul.f32 %v344_v63, %v196_v59  ;;  %v410_v4 = vmul.f32 %v393_v54, %v344_v63  ;;  %v778_v59 = vld [vmem:[%s1101_s6 + $0x60] sm:$0xff]  ;;  %v784_v63 = vld [vmem:[%s1101_s6 + $0x90] sm:$0xff] }
 0x237   :  { %604 = vmatpush.bf16.msrb.mxu0 %v769_v61 }
 0x238   :  { %v418_v9 = vpack.c.bf16 %v410_v4, %v409_v2  ;;  %v402_v11 = vmul.f32 %v393_v54, %v354_v3  ;;  %v787_v54 = vld [vmem:[%s1101_s6 + $0xa8] sm:$0xff]  ;;  %v776_v2 = vld [vmem:[%s1101_s6 + $0x50] sm:$0xff] }
 0x239   :  { %v768_v3 = vld [vmem:[%s1101_s6 + $0x10] sm:$0xff]  ;;  %v775_v4 = vld [vmem:[%s1101_s6 + $0x48] sm:$0xff] }
 0x23a   :  { %441 = vmatpush.bf16.msra.mxu3 %v418_v9  ;;  %v417_v15 = vpack.c.bf16 %v402_v11, %v401_v10 }
 0x23b   :  { %605 = vmatpush.bf16.msrb.mxu0 %v768_v3 }
 0x23c   :  { %427 = vmatpush.bf16.msra.mxu2 %v417_v15 }
 0x23e   :  { %442 = vmatpush.bf16.msra.mxu3 %v416_v25 }
 0x23f   :  { %606 = vmatpush.bf16.msrb.mxu0 %v767_v5 }
 0x240   :  { %428 = vmatpush.bf16.msra.mxu2 %v415_v30 }
 0x242   :  { %443 = vmatpush.bf16.msra.mxu3 %v414_v36 }
 0x244   :  { %429 = vmatpush.bf16.msra.mxu2 %v413_v39 }
 0x246   :  { %444 = vmatpush.bf16.msra.mxu3 %v412_v44 }
 0x248   :  { %430 = vmatpush.bf16.msra.mxu2 %v411_v46 }
 0x249   :  { %666 = vmatmul.msk.bf16.vlgmr.msra.gmra.mxu3 %vm419_vm3, %v303_v50 }
 0x24a   :  { %628 = vmatpush.bf16.msrb.mxu3 %v789_v43 }
 0x24b   :  { %665 = vmatmul.msk.bf16.vlgmr.msra.gmra.mxu2 %vm419_vm3, %v303_v50 }
 0x24c   :  { %614 = vmatpush.bf16.msrb.mxu2 %v781_v45 }
 0x24e   :  { %629 = vmatpush.bf16.msrb.mxu3 %v788_v20 }
 0x250   :  { %615 = vmatpush.bf16.msrb.mxu2 %v780_v53 }
 0x252   :  { %630 = vmatpush.bf16.msrb.mxu3 %v787_v54 }
 0x254   :  { %616 = vmatpush.bf16.msrb.mxu2 %v779_v56 }
 0x256   :  { %631 = vmatpush.bf16.msrb.mxu3 %v786_v57 }
 0x258   :  { %617 = vmatpush.bf16.msrb.mxu2 %v778_v59 }
 0x25a   :  { %632 = vmatpush.bf16.msrb.mxu3 %v785_v60 }
 0x25c   :  { %618 = vmatpush.bf16.msrb.mxu2 %v777_v62 }
 0x25e   :  { %633 = vmatpush.bf16.msrb.mxu3 %v784_v63 }
 0x260   :  { %619 = vmatpush.bf16.msrb.mxu2 %v776_v2 }
 0x262   :  { %634 = vmatpush.bf16.msrb.mxu3 %v783_v0 }
 0x264   :  { %620 = vmatpush.bf16.msrb.mxu2 %v775_v4 }
 0x266   :  { %635 = vmatpush.bf16.msrb.mxu3 %v782_v1 }
 0x268   :  { %621 = vmatpush.bf16.msrb.mxu2 %v774_v47 }
 0x269   :  { %765 = vmatmul.msk.bf16.vlgmr.msrb.gmra.mxu3 %vm942_vm7, %v948_v49  ;;  %v766_v49 = vld [vmem:[%s1101_s6] sm:$0xff] }
 0x26a   :  { %607 = vmatpush.bf16.msrb.mxu0 %v766_v49 }
 0x2cc   :  { %v446_v6 = vpop.f32.mrf.mxu3 }
 0x2ce   :  { %v432_v7 = vpop.f32.mrf.mxu2 }
 0x2d4   :  { %v448_v8 = vpop.f32.mrf.mxu3 }
 0x2d5   :  { %v452_v9 = vpack.c.bf16 %v448_v8, %v446_v6 }
 0x2d6   :  { %v434_v10 = vpop.f32.mrf.mxu2 }
 0x2d7   :  { %v451_v11 = vpack.c.bf16 %v434_v10, %v432_v7  ;;  %622 = vmatmul.bf16.vlgmr.msrb.gmra.mxu2 %v452_v9 }
 0x2d9   :  { %608 = vmatmul.bf16.vlgmr.msrb.gmra.mxu0 %v451_v11 }
 0x2ec   :  { %v637_v15 = vpop.f32.mrf.mxu3 }
 0x2f4   :  { %v639_v27 = vpop.f32.mrf.mxu3 }
 0x356   :  { %v609_v13 = vpop.f32.mrf.mxu0 }
 0x357   :  { %v610_v14 = vadd.f32 %v796_v12, %v609_v13 }
 0x35a   :  { %v623_v16 = vpop.f32.mrf.mxu2 }
 0x35b   :  { %v624_v19 = vadd.f32 %v623_v16, %v610_v14 }
 0x35d   :  { %v638_v21 = vadd.f32 %v637_v15, %v624_v19 }
 0x35e   :  { %v611_v22 = vpop.f32.mrf.mxu0 }
 0x35f   :  { %v642_v17 = vmax.f32 %v638_v21, 0.0  ;;  %v612_v24 = vadd.f32 %v796_v12, %v611_v22 }
 0x361   :  { %v644_v23 = vsel %vm91_vm4, %v642_v17, %v638_v21 }
 0x362   :  { %646 = vst [vmem:[%s1103_s9] sm:$0xff] %v644_v23  ;;  %v625_v25 = vpop.f32.mrf.mxu2 }
 0x363   :  { %v626_v26 = vadd.f32 %v625_v25, %v612_v24 }
 0x365   :  { %v640_v28 = vadd.f32 %v639_v27, %v626_v26 }
 0x367   :  { %v643_v29 = vmax.f32 %v640_v28, 0.0 }
 0x369   :  { %v645_v30 = vsel %vm91_vm4, %v643_v29, %v640_v28 }
 0x36a   :  { %647 = vst [vmem:[%s1103_s9 + $0x8] sm:$0xff] %v645_v30 }

// kernel: _lambda_.5
= control target key start
LH: loop header
LB: loop body
LE: loop exit
PB: predicated region body
PF: predicated region fallthrough
CT: control target
= control target key end

     0   :  { %v688_v0 = vmov 0   ;;  %v105_v23 = vlaneseq  ;;  %v689_v28 = vmov 0.0   ;;  %vm169_vm2 = vcmask 261120   ;;  %s967_s0 = inlined_call_operand.vmem [shape: s32[64,1], index: 0, kind: input, shape index: {}]   ;;  %s968_s4 = inlined_call_operand.vmem [shape: f32[64,1], index: 4, kind: input, shape index: {}]   ;;  %s969_s2 = inlined_call_operand.vmem [shape: f32[32,128], index: 2, kind: input, shape index: {}]   ;;  %s970_s1 = inlined_call_operand.vmem [shape: s32[1,64], index: 1, kind: input, shape index: {}]   ;;  %s971_s3 = inlined_call_operand.vmem [shape: f32[64,128], index: 3, kind: input, shape index: {}]   ;;  %s972_s5 = inlined_call_operand.vmem [shape: bf16[384,128], index: 5, kind: input, shape index: {}]   ;;  %s973_s6 = inlined_call_operand.vmem [shape: f32[1,128], index: 6, kind: input, shape index: {}]   ;;  %s974_s7 = inlined_call_operand.vmem [shape: f32[32,128], index: 7, kind: output, shape index: {}]  }
   0x1   :  { %684 = vset.pattern.permute.xlu1 %v688_v0  ;;  %683 = vset.pattern.permute.xlu0 %v688_v0  ;;  %v33_v1 = vld [vmem:[%s967_s0 + $0x10] sm:$0xff]  ;;  %v31_v2 = vld [vmem:[%s967_s0] sm:$0xff]  ;;  %v34_v4 = vld [vmem:[%s967_s0 + $0x18] sm:$0xff]  ;;  %vm283_vm11 = vcmask 523264  }
   0x2   :  { %114 = vperm.xlu1 %684, %v33_v1   ;;  %108 = vperm.xlu0 %683, %v31_v2   ;;  %v35_v3 = vld [vmem:[%s967_s0 + $0x20] sm:$0xff]  ;;  %v32_v5 = vld [vmem:[%s967_s0 + $0x8] sm:$0xff]  ;;  %v38_v7 = vld [vmem:[%s967_s0 + $0x38] sm:$0xff]  ;;  %v796_v25 = vand.u32 127, %v105_v23 }
   0x3   :  { %685 = vset.pattern.permute.xlu2 %v688_v0  ;;  %v36_v6 = vld [vmem:[%s967_s0 + $0x28] sm:$0xff]  ;;  %v37_v8 = vld [vmem:[%s967_s0 + $0x30] sm:$0xff]  ;;  %v52_v10 = vld [vmem:[%s968_s4 + $0x20] sm:$0xff] }
   0x4   :  { %120 = vperm.xlu2 %685, %v35_v3   ;;  %v54_v9 = vld [vmem:[%s968_s4 + $0x30] sm:$0xff]  ;;  %v55_v11 = vld [vmem:[%s968_s4 + $0x38] sm:$0xff]  ;;  %v53_v12 = vld [vmem:[%s968_s4 + $0x28] sm:$0xff]  ;;  %vm536_vm14 = vcmp.lt.s32.totalorder %v796_v25, 32 }
   0x5   :  { %v51_v13 = vld [vmem:[%s968_s4 + $0x18] sm:$0xff]  ;;  %v50_v14 = vld [vmem:[%s968_s4 + $0x10] sm:$0xff]  ;;  %v48_v15 = vld [vmem:[%s968_s4] sm:$0xff] }
   0x6   :  { %v49_v16 = vld [vmem:[%s968_s4 + $0x8] sm:$0xff]  ;;  %v29_v17 = vld [vmem:[%s969_s2 + $0x10] sm:$0xff]  ;;  %v30_v18 = vld [vmem:[%s969_s2 + $0x18] sm:$0xff] }
   0x7   :  { %v784_v19 = vpack.c.bf16 %v30_v18, %v29_v17  ;;  %v27_v20 = vld [vmem:[%s969_s2] sm:$0xff]  ;;  %v28_v21 = vld [vmem:[%s969_s2 + $0x8] sm:$0xff]  ;;  %v46_v56 = vld [vmem:[%s971_s3 + $0x30] sm:$0xff] }
   0x8   :  { %v793_v22 = vpack.c.bf16 %v28_v21, %v27_v20  ;;  %v45_v57 = vld [vmem:[%s971_s3 + $0x28] sm:$0xff]  ;;  %v47_v58 = vld [vmem:[%s971_s3 + $0x38] sm:$0xff]  ;;  %v44_v59 = vld [vmem:[%s971_s3 + $0x20] sm:$0xff] }
   0x9   :  { %188 = vmatpush.bf16.msra.mxu0 %v784_v19  ;;  %v41_v17 = vld [vmem:[%s971_s3 + $0x8] sm:$0xff]  ;;  %v847_v20 = vld [vmem:[%s970_s1] ss:$0 sm:$0xff]  ;;  %v664_v21 = vld [vmem:[%s972_s5 + $0x38] sm:$0xff] }
   0xa   :  { %117 = vperm.xlu1 %684, %v34_v4   ;;  %111 = vperm.xlu0 %683, %v32_v5   ;;  %v43_v4 = vld [vmem:[%s971_s3 + $0x18] sm:$0xff] }
   0xb   :  { %479 = vmatpush.bf16.msra.mxu3 %v664_v21 }
   0xc   :  { %123 = vperm.xlu2 %685, %v36_v6   ;;  %v835_v6 = vshrl.u32 %v105_v23, 7 }
   0xd   :  { %189 = vmatpush.bf16.msra.mxu0 %v793_v22 }
   0xe   :  { %v153_v18 = vadd.s32 8, %v835_v6  ;;  %vm157_vm9 = vcmp.eq.s32.totalorder %v835_v6, %v847_v20 }
  0x10   :  { %vm158_vm10 = vcmp.eq.s32.totalorder %v153_v18, %v847_v20 }
  0x12   :  { %129 = vperm.xlu1 %684, %v38_v7   ;;  %126 = vperm.xlu0 %683, %v37_v8  }
  0x14   :  { %251 = vperm.xlu2 %685, %v54_v9  }
  0x1a   :  { %241 = vperm.xlu1 %684, %v52_v10   ;;  %256 = vperm.xlu0 %683, %v55_v11   ;;  %v42_v11 = vld [vmem:[%s971_s3 + $0x10] sm:$0xff] }
  0x1c   :  { %246 = vperm.xlu2 %685, %v53_v12  }
  0x22   :  { %236 = vperm.xlu1 %684, %v51_v13   ;;  %231 = vperm.xlu0 %683, %v50_v14  }
  0x24   :  { %221 = vperm.xlu2 %685, %v48_v15  }
  0x2a   :  { %226 = vperm.xlu0 %683, %v49_v16  }
  0x5e   :  { %v121_v35 = vpop.permute.xlu2 %120 }
  0x5f   :  { %vm135_vm5 = vcmp.eq.s32.totalorder %v796_v25, %v121_v35 }
  0x60   :  { %v143_v38 = vsel %vm135_vm5, 1.0, %v689_v28 }
  0x66   :  { %v124_v37 = vpop.permute.xlu2 %123 }
  0x67   :  { %vm136_vm6 = vcmp.eq.s32.totalorder %v796_v25, %v124_v37 }
  0x68   :  { %v144_v39 = vsel %vm136_vm6, 1.0, %v689_v28 }
  0x69   :  { %v149_v40 = vpack.c.bf16 %v144_v39, %v143_v38 }
  0x6e   :  { %v252_v53 = vpop.permute.xlu2 %251 }
  0x74   :  { %v109_v24 = vpop.permute.xlu0 %108  ;;  %v115_v27 = vpop.permute.xlu1 %114 }
  0x75   :  { %vm131_vm0 = vcmp.eq.s32.totalorder %v796_v25, %v109_v24  ;;  %vm133_vm3 = vcmp.eq.s32.totalorder %v796_v25, %v115_v27 }
  0x76   :  { %v139_v29 = vsel %vm131_vm0, 1.0, %v689_v28  ;;  %v141_v33 = vsel %vm133_vm3, 1.0, %v689_v28  ;;  %v247_v63 = vpop.permute.xlu2 %246 }
  0x7c   :  { %v112_v26 = vpop.permute.xlu0 %111  ;;  %v118_v32 = vpop.permute.xlu1 %117 }
  0x7d   :  { %vm132_vm1 = vcmp.eq.s32.totalorder %v796_v25, %v112_v26  ;;  %vm134_vm4 = vcmp.eq.s32.totalorder %v796_v25, %v118_v32 }
  0x7e   :  { %v140_v30 = vsel %vm132_vm1, 1.0, %v689_v28  ;;  %v142_v34 = vsel %vm134_vm4, 1.0, %v689_v28 }
  0x7f   :  { %v147_v31 = vpack.c.bf16 %v140_v30, %v139_v29  ;;  %v148_v36 = vpack.c.bf16 %v142_v34, %v141_v33  ;;  %v40_v29 = vld [vmem:[%s971_s3] sm:$0xff]  ;;  %v663_v30 = vld [vmem:[%s972_s5 + $0x30] sm:$0xff] }
  0x80   :  { %480 = vmatpush.bf16.msra.mxu3 %v663_v30 }
  0x81   :  { %553 = vmatmul.msk.bf16.vlgmr.msra.gmra.mxu0 %vm169_vm2, %v147_v31 }
  0x84   :  { %v130_v41 = vpop.permute.xlu1 %129  ;;  %v127_v42 = vpop.permute.xlu0 %126 }
  0x85   :  { %vm138_vm7 = vcmp.eq.s32.totalorder %v796_v25, %v130_v41  ;;  %vm137_vm8 = vcmp.eq.s32.totalorder %v796_v25, %v127_v42  ;;  %v662_v42 = vld [vmem:[%s972_s5 + $0x28] sm:$0xff] }
  0x86   :  { %v146_v43 = vsel %vm138_vm7, 1.0, %v689_v28  ;;  %v145_v44 = vsel %vm137_vm8, 1.0, %v689_v28  ;;  %481 = vmatpush.bf16.msra.mxu3 %v662_v42 }
  0x87   :  { %v150_v45 = vpack.c.bf16 %v146_v43, %v145_v44 }
  0x8c   :  { %v257_v52 = vpop.permute.xlu0 %256  ;;  %v242_v55 = vpop.permute.xlu1 %241 }
  0x91   :  { %554 = vmatmul.msk.bf16.gmra.mxu0 %vm169_vm2, %v148_v36  ;;  %v222_v36 = vpop.permute.xlu2 %221 }
  0x94   :  { %v232_v61 = vpop.permute.xlu0 %231  ;;  %v237_v16 = vpop.permute.xlu1 %236 }
  0x9c   :  { %v227_v35 = vpop.permute.xlu0 %226 }
  0xa1   :  { %555 = vmatmul.msk.bf16.gmra.mxu0 %vm169_vm2, %v149_v40 }
  0xb1   :  { %556 = vmatmul.msk.bf16.gmra.mxu0 %vm169_vm2, %v150_v45  ;;  %v161_v45 = vsel %vm157_vm9, 1.0, %v689_v28 }
  0xfe   :  { %v818_v46 = vpop.f32.mrf.mxu0 }
  0xff   :  { %v211_v37 = vmul.f32 %v818_v46, %v40_v29  ;;  %v267_v41 = vmul.f32 %v222_v36, %v818_v46 }
 0x106   :  { %v193_v47 = vpop.f32.mrf.mxu0 }
 0x107   :  { %v212_v31 = vmul.f32 %v193_v47, %v41_v17  ;;  %v268_v38 = vmul.f32 %v227_v35, %v193_v47  ;;  %v680_v47 = vld [vmem:[%s972_s5 + $0xb8] sm:$0xff] }
 0x109   :  { %v260_v44 = vmul.f32 %v227_v35, %v212_v31 }
 0x10e   :  { %v196_v48 = vpop.f32.mrf.mxu0 }
 0x10f   :  { %v213_v23 = vmul.f32 %v196_v48, %v42_v11  ;;  %v269_v32 = vmul.f32 %v232_v61, %v196_v48  ;;  %v162_v48 = vsel %vm158_vm10, 1.0, %v689_v28  ;;  %v665_v11 = vld [vmem:[%s972_s5 + $0x40] sm:$0xff] }
 0x110   :  { %v165_v46 = vpack.c.bf16 %v162_v48, %v161_v45 }
 0x111   :  { %v261_v40 = vmul.f32 %v232_v61, %v213_v23  ;;  %v677_v61 = vld [vmem:[%s972_s5 + $0xa0] sm:$0xff] }
 0x116   :  { %v198_v49 = vpop.f32.mrf.mxu0 }
 0x117   :  { %v214_v12 = vmul.f32 %v198_v49, %v43_v4  ;;  %v270_v24 = vmul.f32 %v237_v16, %v198_v49  ;;  %v276_v49 = vpack.c.bf16 %v268_v38, %v267_v41  ;;  %v668_v4 = vld [vmem:[%s972_s5 + $0x58] sm:$0xff] }
 0x119   :  { %v262_v34 = vmul.f32 %v237_v16, %v214_v12  ;;  %v278_v39 = vpack.c.bf16 %v270_v24, %v269_v32 }
 0x11b   :  { %v277_v43 = vpack.c.bf16 %v262_v34, %v261_v40 }
 0x11e   :  { %v201_v50 = vpop.f32.mrf.mxu0 }
 0x11f   :  { %v215_v5 = vmul.f32 %v201_v50, %v44_v59  ;;  %v271_v13 = vmul.f32 %v242_v55, %v201_v50  ;;  %v259_v50 = vmul.f32 %v222_v36, %v211_v37  ;;  %v678_v59 = vld [vmem:[%s972_s5 + $0xa8] sm:$0xff] }
 0x121   :  { %v263_v27 = vmul.f32 %v242_v55, %v215_v5  ;;  %v671_v55 = vld [vmem:[%s972_s5 + $0x70] sm:$0xff]  ;;  %v674_v5 = vld [vmem:[%s972_s5 + $0x88] sm:$0xff] }
 0x126   :  { %v203_v51 = vpop.f32.mrf.mxu0 }
 0x127   :  { %v216_v0 = vmul.f32 %v203_v51, %v45_v57  ;;  %v272_v7 = vmul.f32 %v247_v63, %v203_v51  ;;  %v672_v51 = vld [vmem:[%s972_s5 + $0x78] sm:$0xff]  ;;  %v154_v57 = vadd.s32 16, %v835_v6 }
 0x129   :  { %v264_v15 = vmul.f32 %v247_v63, %v216_v0  ;;  %v280_v26 = vpack.c.bf16 %v272_v7, %v271_v13  ;;  %vm159_vm12 = vcmp.eq.s32.totalorder %v154_v57, %v847_v20  ;;  %v667_v7 = vld [vmem:[%s972_s5 + $0x50] sm:$0xff] }
 0x12a   :  { %v163_v63 = vsel %vm159_vm12, 1.0, %v689_v28 }
 0x12b   :  { %v279_v33 = vpack.c.bf16 %v264_v15, %v263_v27 }
 0x12e   :  { %v206_v54 = vpop.f32.mrf.mxu0 }
 0x12f   :  { %v217_v60 = vmul.f32 %v206_v54, %v46_v56  ;;  %v273_v1 = vmul.f32 %v252_v53, %v206_v54  ;;  %v679_v54 = vld [vmem:[%s972_s5 + $0xb0] sm:$0xff]  ;;  %v660_v56 = vld [vmem:[%s972_s5 + $0x18] sm:$0xff] }
 0x131   :  { %v265_v9 = vmul.f32 %v252_v53, %v217_v60  ;;  %v661_v53 = vld [vmem:[%s972_s5 + $0x20] sm:$0xff]  ;;  %v670_v60 = vld [vmem:[%s972_s5 + $0x68] sm:$0xff] }
 0x132   :  { %482 = vmatpush.bf16.msra.mxu3 %v661_v53 }
 0x136   :  { %v208_v62 = vpop.f32.mrf.mxu0  ;;  %483 = vmatpush.bf16.msra.mxu3 %v660_v56 }
 0x137   :  { %v218_v2 = vmul.f32 %v208_v62, %v47_v58  ;;  %v274_v3 = vmul.f32 %v257_v52, %v208_v62  ;;  %v155_v58 = vadd.s32 24, %v835_v6  ;;  %v669_v62 = vld [vmem:[%s972_s5 + $0x60] sm:$0xff]  ;;  %v658_v6 = vld [vmem:[%s972_s5 + $0x8] sm:$0xff] }
 0x139   :  { %v282_v8 = vpack.c.bf16 %v274_v3, %v273_v1  ;;  %v266_v10 = vmul.f32 %v257_v52, %v218_v2  ;;  %v275_v52 = vpack.c.bf16 %v260_v44, %v259_v50  ;;  %vm160_vm13 = vcmp.eq.s32.totalorder %v155_v58, %v847_v20  ;;  %v676_v1 = vld [vmem:[%s972_s5 + $0x98] sm:$0xff]  ;;  %v675_v3 = vld [vmem:[%s972_s5 + $0x90] sm:$0xff] }
 0x13a   :  { %v164_v0 = vsel %vm160_vm13, 1.0, %v689_v28  ;;  %v659_v28 = vld [vmem:[%s972_s5 + $0x10] sm:$0xff] }
 0x13b   :  { %313 = vmatpush.bf16.msra.mxu2 %v282_v8  ;;  %v281_v14 = vpack.c.bf16 %v266_v10, %v265_v9  ;;  %v166_v2 = vpack.c.bf16 %v164_v0, %v163_v63  ;;  %484 = vmatpush.bf16.msra.mxu3 %v659_v28  ;;  %v673_v8 = vld [vmem:[%s972_s5 + $0x80] sm:$0xff]  ;;  %v666_v10 = vld [vmem:[%s972_s5 + $0x48] sm:$0xff] }
 0x13c   :  { %v657_v9 = vld [vmem:[%s972_s5] sm:$0xff] }
 0x13d   :  { %294 = vmatpush.bf16.msra.mxu1 %v281_v14 }
 0x13f   :  { %314 = vmatpush.bf16.msra.mxu2 %v280_v26  ;;  %485 = vmatpush.bf16.msra.mxu3 %v658_v6 }
 0x141   :  { %295 = vmatpush.bf16.msra.mxu1 %v279_v33 }
 0x143   :  { %315 = vmatpush.bf16.msra.mxu2 %v278_v39  ;;  %486 = vmatpush.bf16.msra.mxu3 %v657_v9 }
 0x145   :  { %296 = vmatpush.bf16.msra.mxu1 %v277_v43 }
 0x147   :  { %316 = vmatpush.bf16.msra.mxu2 %v276_v49 }
 0x149   :  { %297 = vmatpush.bf16.msra.mxu1 %v275_v52 }
 0x14a   :  { %559 = vmatmul.msk.bf16.vlgmr.msra.gmra.mxu2 %vm283_vm11, %v165_v46 }
 0x14b   :  { %517 = vmatpush.bf16.msrb.mxu2 %v680_v47 }
 0x14c   :  { %557 = vmatmul.msk.bf16.vlgmr.msra.gmra.mxu1 %vm283_vm11, %v165_v46 }
 0x14d   :  { %498 = vmatpush.bf16.msrb.mxu1 %v672_v51 }
 0x14f   :  { %518 = vmatpush.bf16.msrb.mxu2 %v679_v54 }
 0x151   :  { %499 = vmatpush.bf16.msrb.mxu1 %v671_v55 }
 0x153   :  { %519 = vmatpush.bf16.msrb.mxu2 %v678_v59 }
 0x155   :  { %500 = vmatpush.bf16.msrb.mxu1 %v670_v60 }
 0x157   :  { %520 = vmatpush.bf16.msrb.mxu2 %v677_v61 }
 0x159   :  { %501 = vmatpush.bf16.msrb.mxu1 %v669_v62 }
 0x15a   :  { %560 = vmatmul.msk.bf16.gmra.mxu2 %vm283_vm11, %v166_v2 }
 0x15b   :  { %521 = vmatpush.bf16.msrb.mxu2 %v676_v1 }
 0x15c   :  { %558 = vmatmul.msk.bf16.gmra.mxu1 %vm283_vm11, %v166_v2 }
 0x15d   :  { %502 = vmatpush.bf16.msrb.mxu1 %v668_v4 }
 0x15f   :  { %522 = vmatpush.bf16.msrb.mxu2 %v675_v3 }
 0x161   :  { %503 = vmatpush.bf16.msrb.mxu1 %v667_v7 }
 0x163   :  { %523 = vmatpush.bf16.msrb.mxu2 %v674_v5 }
 0x165   :  { %504 = vmatpush.bf16.msrb.mxu1 %v666_v10 }
 0x167   :  { %524 = vmatpush.bf16.msrb.mxu2 %v673_v8 }
 0x169   :  { %505 = vmatpush.bf16.msrb.mxu1 %v665_v11 }
 0x16a   :  { %525 = vmatmul.bf16.vlgmr.msrb.gmra.mxu2 %v793_v22 }
 0x17a   :  { %530 = vmatmul.bf16.gmra.mxu2 %v784_v19  ;;  %v687_v19 = vld [vmem:[%s973_s6] ss:$0 sm:$0xff] }
 0x1c9   :  { %v299_v12 = vpop.f32.mrf.mxu1 }
 0x1cd   :  { %v318_v13 = vpop.f32.mrf.mxu2 }
 0x1d1   :  { %v301_v14 = vpop.f32.mrf.mxu1 }
 0x1d2   :  { %v328_v15 = vpack.c.bf16 %v301_v14, %v299_v12 }
 0x1d4   :  { %487 = vmatmul.bf16.vlgmr.msra.gmra.mxu3 %v328_v15 }
 0x1d5   :  { %v320_v16 = vpop.f32.mrf.mxu2 }
 0x1d6   :  { %v329_v17 = vpack.c.bf16 %v320_v16, %v318_v13 }
 0x1d8   :  { %506 = vmatmul.bf16.vlgmr.msrb.gmra.mxu1 %v329_v17 }
 0x1d9   :  { %v304_v18 = vpop.f32.mrf.mxu1 }
 0x1dd   :  { %v323_v20 = vpop.f32.mrf.mxu2 }
 0x1e1   :  { %v306_v22 = vpop.f32.mrf.mxu1 }
 0x1e2   :  { %v330_v21 = vpack.c.bf16 %v306_v22, %v304_v18 }
 0x1e4   :  { %492 = vmatmul.bf16.gmra.mxu3 %v330_v21 }
 0x1e5   :  { %v325_v23 = vpop.f32.mrf.mxu2 }
 0x1e6   :  { %v331_v24 = vpack.c.bf16 %v325_v23, %v323_v20 }
 0x1e8   :  { %511 = vmatmul.bf16.gmra.mxu1 %v331_v24 }
 0x1ed   :  { %v526_v26 = vpop.f32.mrf.mxu2 }
 0x1f5   :  { %v528_v35 = vpop.f32.mrf.mxu2 }
 0x1fd   :  { %v531_v48 = vpop.f32.mrf.mxu2 }
 0x205   :  { %v533_v55 = vpop.f32.mrf.mxu2 }
 0x255   :  { %v507_v27 = vpop.f32.mrf.mxu1 }
 0x257   :  { %v488_v29 = vpop.f32.mrf.mxu3 }
 0x258   :  { %v489_v30 = vadd.f32 %v687_v19, %v488_v29 }
 0x25a   :  { %v508_v31 = vadd.f32 %v507_v27, %v489_v30 }
 0x25c   :  { %v527_v32 = vadd.f32 %v526_v26, %v508_v31 }
 0x25d   :  { %v509_v33 = vpop.f32.mrf.mxu1 }
 0x25e   :  { %v537_v34 = vmax.f32 %v527_v32, 0.0 }
 0x25f   :  { %v490_v36 = vpop.f32.mrf.mxu3 }
 0x260   :  { %v541_v37 = vsel %vm536_vm14, %v537_v34, %v527_v32  ;;  %v491_v38 = vadd.f32 %v687_v19, %v490_v36 }
 0x261   :  { %545 = vst [vmem:[%s974_s7] sm:$0xff] %v541_v37 }
 0x262   :  { %v510_v39 = vadd.f32 %v509_v33, %v491_v38 }
 0x264   :  { %v529_v40 = vadd.f32 %v528_v35, %v510_v39 }
 0x265   :  { %v512_v42 = vpop.f32.mrf.mxu1 }
 0x266   :  { %v538_v41 = vmax.f32 %v529_v40, 0.0 }
 0x267   :  { %v493_v43 = vpop.f32.mrf.mxu3 }
 0x268   :  { %v542_v44 = vsel %vm536_vm14, %v538_v41, %v529_v40  ;;  %v494_v45 = vadd.f32 %v687_v19, %v493_v43 }
 0x269   :  { %546 = vst [vmem:[%s974_s7 + $0x8] sm:$0xff] %v542_v44 }
 0x26a   :  { %v513_v47 = vadd.f32 %v512_v42, %v494_v45 }
 0x26c   :  { %v532_v49 = vadd.f32 %v531_v48, %v513_v47 }
 0x26d   :  { %v514_v53 = vpop.f32.mrf.mxu1 }
 0x26e   :  { %v539_v50 = vmax.f32 %v532_v49, 0.0 }
 0x26f   :  { %v495_v46 = vpop.f32.mrf.mxu3 }
 0x270   :  { %v543_v51 = vsel %vm536_vm14, %v539_v50, %v532_v49  ;;  %v496_v52 = vadd.f32 %v687_v19, %v495_v46 }
 0x271   :  { %547 = vst [vmem:[%s974_s7 + $0x10] sm:$0xff] %v543_v51 }
 0x272   :  { %v515_v54 = vadd.f32 %v514_v53, %v496_v52 }
 0x274   :  { %v534_v56 = vadd.f32 %v533_v55, %v515_v54 }
 0x276   :  { %v540_v57 = vmax.f32 %v534_v56, 0.0 }
 0x278   :  { %v544_v58 = vsel %vm536_vm14, %v540_v57, %v534_v56 }
 0x279   :  { %548 = vst [vmem:[%s974_s7 + $0x18] sm:$0xff] %v544_v58 }

// kernel: _lambda_.7
= control target key start
LH: loop header
LB: loop body
LE: loop exit
PB: predicated region body
PF: predicated region fallthrough
CT: control target
= control target key end

     0   :  { %v750_v0 = vmov 0   ;;  %v39_v8 = vlaneseq  ;;  %vm46_vm0 = vcmask 130048   ;;  %v751_v13 = vmov 0.0   ;;  %s1021_s2 = inlined_call_operand.vmem [shape: s32[8,1], index: 2, kind: input, shape index: {}]   ;;  %s1022_s3 = inlined_call_operand.vmem [shape: f32[16,128], index: 3, kind: input, shape index: {}]   ;;  %s1023_s0 = inlined_call_operand.vmem [shape: s32[64,1], index: 0, kind: input, shape index: {}]   ;;  %s1024_s5 = inlined_call_operand.vmem [shape: f32[64,1], index: 5, kind: input, shape index: {}]   ;;  %s1025_s8 = inlined_call_operand.vmem [shape: f32[2,256], index: 8, kind: input, shape index: {}, may-alias: {8,10}]   ;;  %s1026_s10 = inlined_call_operand.vmem [shape: f32[2,256], index: 10, kind: output, shape index: {1}, may-alias: {8,10}]   ;;  %s1027_s1 = inlined_call_operand.vmem [shape: s32[1,64], index: 1, kind: input, shape index: {}]   ;;  %s1028_s4 = inlined_call_operand.vmem [shape: f32[64,128], index: 4, kind: input, shape index: {}]   ;;  %s1029_s6 = inlined_call_operand.vmem [shape: bf16[384,128], index: 6, kind: input, shape index: {}]   ;;  %s1030_s7 = inlined_call_operand.vmem [shape: f32[1,128], index: 7, kind: input, shape index: {}]   ;;  %s1031_s9 = inlined_call_operand.vmem [shape: f32[8,128], index: 9, kind: output, shape index: {0}]  }
   0x1   :  { %743 = vset.pattern.permute.xlu0 %v750_v0  ;;  %v37_v1 = vld [vmem:[%s1021_s2] sm:$0xff]  ;;  %v36_v2 = vld [vmem:[%s1022_s3 + $0x8] sm:$0xff]  ;;  %744 = vset.pattern.permute.xlu1 %v750_v0  ;;  %v141_v6 = vld [vmem:[%s1023_s0 + $0x10] sm:$0xff]  ;;  %vm275_vm8 = vcmask 1043456   ;;  %vm262_vm9 = vcmask 64512   ;;  %vm128_vm12 = vcmask 1040384  }
   0x2   :  { %42 = vperm.xlu0 %743, %v37_v1   ;;  %64 = vmatpush.msra.mxu0 %v36_v2  ;;  %v35_v3 = vld [vmem:[%s1022_s3] sm:$0xff]  ;;  %v140_v5 = vld [vmem:[%s1023_s0 + $0x8] sm:$0xff]  ;;  %v145_v9 = vld [vmem:[%s1023_s0 + $0x30] sm:$0xff]  ;;  %v831_v10 = vand.u32 127, %v39_v8  ;;  %v869_v27 = vshrl.u32 %v39_v8, 7  ;;  %vm134_vm13 = vcmask 1041408  }
   0x3   :  { %745 = vset.pattern.permute.xlu2 %v750_v0  ;;  %v139_v4 = vld [vmem:[%s1023_s0] sm:$0xff]  ;;  %v162_v12 = vld [vmem:[%s1024_s5 + $0x30] sm:$0xff]  ;;  %v142_v17 = vld [vmem:[%s1023_s0 + $0x18] sm:$0xff] }
   0x4   :  { %65 = vmatpush.msra.mxu0 %v35_v3  ;;  %214 = vperm.xlu1 %744, %v139_v4   ;;  %v143_v7 = vld [vmem:[%s1023_s0 + $0x20] sm:$0xff]  ;;  %v158_v16 = vld [vmem:[%s1024_s5 + $0x10] sm:$0xff]  ;;  %v157_v18 = vld [vmem:[%s1024_s5 + $0x8] sm:$0xff]  ;;  %vm70_vm2 = vcmp.eq.s32.totalorder %v831_v10, 32  ;;  %vm81_vm3 = vcmp.lt.s32.totalorder %v869_v27, 4  ;;  %vm101_vm4 = vcmp.ge.s32.totalorder %v869_v27, 4 }
   0x5   :  { %220 = vperm.xlu2 %745, %v141_v6   ;;  %v160_v15 = vld [vmem:[%s1024_s5 + $0x20] sm:$0xff]  ;;  %v144_v19 = vld [vmem:[%s1023_s0 + $0x28] sm:$0xff]  ;;  %v146_v20 = vld [vmem:[%s1023_s0 + $0x38] sm:$0xff]  ;;  %v83_v30 = vsel %vm81_vm3, 1.0, %v751_v13  ;;  %v104_v31 = vsel %vm101_vm4, 1.0, %v751_v13  ;;  %vm74_vm5 = vcmp.lt.s32.totalorder %v831_v10, 32 }
   0x6   :  { %v163_v21 = vld [vmem:[%s1024_s5 + $0x38] sm:$0xff]  ;;  %v161_v24 = vld [vmem:[%s1024_s5 + $0x28] sm:$0xff]  ;;  %v156_v26 = vld [vmem:[%s1024_s5] sm:$0xff]  ;;  %v610_v32 = vadd.f32 -1.0, %v83_v30  ;;  %v611_v33 = vadd.f32 -1.0, %v104_v31  ;;  %vm380_vm3 = vcmask 523264  }
   0x7   :  { %v159_v25 = vld [vmem:[%s1024_s5 + $0x18] sm:$0xff]  ;;  %vm714_vm4 = vmpackc.low %vm74_vm5, %vm74_vm5 }
   0x8   :  { %v85_v35 = vmul.f32 1e+30, %v610_v32  ;;  %v106_v36 = vmul.f32 1e+30, %v611_v33 }
   0xc   :  { %217 = vperm.xlu1 %744, %v140_v5  }
   0xd   :  { %223 = vperm.xlu2 %745, %v142_v17  }
  0x14   :  { %226 = vperm.xlu1 %744, %v143_v7  }
  0x15   :  { %229 = vperm.xlu2 %745, %v144_v19  }
  0x1c   :  { %232 = vperm.xlu1 %744, %v145_v9  }
  0x1d   :  { %235 = vperm.xlu2 %745, %v146_v20  }
  0x24   :  { %348 = vperm.xlu1 %744, %v162_v12  }
  0x25   :  { %353 = vperm.xlu2 %745, %v163_v21   ;;  %v38_v21 = vld [vmem:[%s1025_s8] sm:$0xf] }
  0x2c   :  { %338 = vperm.xlu1 %744, %v160_v15  }
  0x2d   :  { %343 = vperm.xlu2 %745, %v161_v24  }
  0x34   :  { %328 = vperm.xlu1 %744, %v158_v16  }
  0x35   :  { %333 = vperm.xlu2 %745, %v159_v25  }
  0x3c   :  { %323 = vperm.xlu1 %744, %v157_v18  }
  0x5f   :  { %v221_v51 = vpop.permute.xlu2 %220 }
  0x60   :  { %vm239_vm10 = vcmp.eq.s32.totalorder %v831_v10, %v221_v51  ;;  %v155_v51 = vld [vmem:[%s1028_s4 + $0x38] sm:$0xff] }
  0x61   :  { %v247_v12 = vsel %vm239_vm10, 1.0, %v751_v13 }
  0x67   :  { %v224_v5 = vpop.permute.xlu2 %223 }
  0x68   :  { %vm240_vm11 = vcmp.eq.s32.totalorder %v831_v10, %v224_v5 }
  0x74   :  { %v43_v11 = vpop.permute.xlu0 %42 }
  0x75   :  { %vm44_vm1 = vcmp.eq.s32.totalorder %v831_v10, %v43_v11 }
  0x76   :  { %v45_v14 = vsel %vm44_vm1, 1.0, %v751_v13  ;;  %v215_v28 = vpop.permute.xlu1 %214 }
  0x77   :  { %609 = vmatmul.msk.f32.vlgmr.msra.gmra.mxu0 %vm46_vm0, %v45_v14  ;;  %vm237_vm6 = vcmp.eq.s32.totalorder %v831_v10, %v215_v28  ;;  %v248_v14 = vsel %vm240_vm11, 1.0, %v751_v13  ;;  %v230_v28 = vpop.permute.xlu2 %229 }
  0x78   :  { %v245_v44 = vsel %vm237_vm6, 1.0, %v751_v13  ;;  %v254_v20 = vpack.c.bf16 %v248_v14, %v247_v12  ;;  %vm242_vm15 = vcmp.eq.s32.totalorder %v831_v10, %v230_v28 }
  0x7e   :  { %v218_v37 = vpop.permute.xlu1 %217 }
  0x7f   :  { %vm238_vm7 = vcmp.eq.s32.totalorder %v831_v10, %v218_v37  ;;  %v236_v33 = vpop.permute.xlu2 %235 }
  0x80   :  { %v246_v45 = vsel %vm238_vm7, 1.0, %v751_v13  ;;  %vm244_vm1 = vcmp.eq.s32.totalorder %v831_v10, %v236_v33 }
  0x81   :  { %v253_v53 = vpack.c.bf16 %v246_v45, %v245_v44 }
  0x87   :  { %v354_v45 = vpop.permute.xlu2 %353 }
  0xf4   :  { %v67_v22 = vpop.f32.mrf.mxu0 }
  0xf5   :  { %v71_v23 = vsel %vm70_vm2, %v67_v22, 0.0 }
  0xf6   :  { %72 = vadd.xlane.f32.xlu0 %v71_v23 }
 0x10a   :  { %318 = vperm.xlu0 %743, %v156_v26   ;;  %v227_v26 = vpop.permute.xlu1 %226 }
 0x10b   :  { %vm241_vm14 = vcmp.eq.s32.totalorder %v831_v10, %v227_v26 }
 0x112   :  { %v233_v32 = vpop.permute.xlu1 %232 }
 0x113   :  { %vm243_vm0 = vcmp.eq.s32.totalorder %v831_v10, %v233_v32  ;;  %v740_v32 = vld [vmem:[%s1029_s6 + $0xb8] sm:$0xff] }
 0x169   :  { %v73_v29 = vpop.xlane.xlu0 %72 }
 0x16a   :  { %748 = vtanh.f32 %v73_v29  ;;  %v249_v29 = vsel %vm241_vm14, 1.0, %v751_v13 }
 0x170   :  { %v749_v34 = vpop.eup %748 }
 0x171   :  { %v876_v38 = vmul.f32 %v749_v34, %v67_v22  ;;  %v251_v34 = vsel %vm243_vm0, 1.0, %v751_v13 }
 0x173   :  { %v77_v39 = vsel %vm74_vm5, %v876_v38, 0.0 }
 0x174   :  { %v261_v40 = vpack.c.bf16 %v77_v39, %v77_v39  ;;  %v86_v41 = vadd.f32 %v85_v35, %v77_v39  ;;  %v93_v42 = vmul.f32 %v83_v30, %v77_v39  ;;  %v107_v43 = vadd.f32 %v106_v36, %v77_v39 }
 0x175   :  { %v114_v46 = vmul.f32 %v104_v31, %v77_v39  ;;  %v250_v30 = vsel %vm242_vm15, 1.0, %v751_v13  ;;  %v252_v35 = vsel %vm244_vm1, 1.0, %v751_v13 }
 0x176   :  { %v277_v47 = vsel %vm275_vm8, %v261_v40, 0  ;;  %v87_v48 = vrot.slane %v86_v41, 4  ;;  %v94_v49 = vrot.slane %v93_v42, 4  ;;  %v108_v50 = vrot.slane %v107_v43, 4 }
 0x177   :  { %286 = vmatpush.bf16.msra.mxu1 %v277_v47  ;;  %v115_v52 = vrot.slane %v114_v46, 4  ;;  %v255_v31 = vpack.c.bf16 %v250_v30, %v249_v29  ;;  %v256_v36 = vpack.c.bf16 %v252_v35, %v251_v34 }
 0x178   :  { %v88_v54 = vmax.f32 %v86_v41, %v87_v48  ;;  %v95_v55 = vadd.f32 %v94_v49, %v93_v42  ;;  %v109_v56 = vmax.f32 %v107_v43, %v108_v50  ;;  %v349_v43 = vpop.permute.xlu1 %348  ;;  %v344_v48 = vpop.permute.xlu2 %343  ;;  %v154_v49 = vld [vmem:[%s1028_s4 + $0x30] sm:$0xff]  ;;  %v153_v50 = vld [vmem:[%s1028_s4 + $0x28] sm:$0xff] }
 0x179   :  { %v116_v57 = vadd.f32 %v115_v52, %v114_v46  ;;  %v152_v52 = vld [vmem:[%s1028_s4 + $0x20] sm:$0xff] }
 0x17a   :  { %612 = vmatmul.msk.bf16.vlgmr.msra.gmra.mxu1 %vm262_vm9, %v253_v53  ;;  %v96_v58 = vrot.slane %v95_v55, 2  ;;  %v110_v59 = vrot.slane %v109_v56, 2  ;;  %v89_v60 = vrot.slane %v88_v54, 2 }
 0x17b   :  { %v117_v61 = vrot.slane %v116_v57, 2 }
 0x17c   :  { %v97_v62 = vadd.f32 %v96_v58, %v95_v55  ;;  %v111_v63 = vmax.f32 %v109_v56, %v110_v59  ;;  %v90_v3 = vmax.f32 %v88_v54, %v89_v60  ;;  %v151_v60 = vld [vmem:[%s1028_s4 + $0x18] sm:$0xff]  ;;  %v319_v26 = vpop.permute.xlu0 %318 }
 0x17d   :  { %v118_v0 = vadd.f32 %v117_v61, %v116_v57 }
 0x17e   :  { %v98_v1 = vrot.slane %v97_v62, 1  ;;  %v112_v2 = vrot.slane %v111_v63, 1  ;;  %v91_v9 = vrot.slane %v90_v3, 1 }
 0x17f   :  { %v119_v4 = vrot.slane %v118_v0, 1 }
 0x180   :  { %v99_v6 = vadd.f32 %v98_v1, %v97_v62  ;;  %v113_v7 = vmax.f32 %v111_v63, %v112_v2  ;;  %v92_v18 = vmax.f32 %v90_v3, %v91_v9  ;;  %v339_v46 = vpop.permute.xlu1 %338  ;;  %v150_v2 = vld [vmem:[%s1028_s4 + $0x10] sm:$0xff]  ;;  %v746_v9 = vld [vmem:[%s1027_s1] ss:$0 sm:$0xff] }
 0x181   :  { %v120_v8 = vadd.f32 %v119_v4, %v118_v0  ;;  %vm258_vm2 = vcmp.eq.s32.totalorder %v869_v27, %v746_v9 }
 0x182   :  { %v100_v15 = vmul.f32 0.25, %v99_v6  ;;  %v124_v16 = vrot.slane %v113_v7, 7  ;;  %v334_v7 = vpop.permute.xlu2 %333 }
 0x183   :  { %v121_v11 = vmul.f32 0.25, %v120_v8  ;;  %v149_v8 = vld [vmem:[%s1028_s4 + $0x8] sm:$0xff] }
 0x184   :  { %v129_v23 = vsel %vm128_vm12, %v92_v18, %v124_v16  ;;  %v148_v16 = vld [vmem:[%s1028_s4] sm:$0xff] }
 0x185   :  { %v125_v17 = vrot.slane %v121_v11, 7 }
 0x187   :  { %v130_v19 = vsel %vm128_vm12, %v100_v15, %v125_v17 }
 0x188   :  { %v133_v22 = vrot.slane %v130_v19, 6  ;;  %v329_v54 = vpop.permute.xlu1 %328 }
 0x18a   :  { %613 = vmatmul.msk.bf16.gmra.mxu1 %vm262_vm9, %v254_v20  ;;  %v135_v24 = vsel %vm134_vm13, %v129_v23, %v133_v22 }
 0x18b   :  { %v137_v25 = vadd.f32 %v135_v24, %v38_v21 }
 0x18d   :  { %138 = vst [vmem:[%s1026_s10] sm:$0xf] %v137_v25 }
 0x190   :  { %v324_v21 = vpop.permute.xlu1 %323 }
 0x19a   :  { %614 = vmatmul.msk.bf16.gmra.mxu1 %vm262_vm9, %v255_v31  ;;  %v259_v31 = vsel %vm258_vm2, 1.0, %v751_v13  ;;  %v739_v13 = vld [vmem:[%s1029_s6 + $0xb0] sm:$0xff] }
 0x19b   :  { %v260_v27 = vpack.c.bf16 %v259_v31, %v259_v31 }
 0x1aa   :  { %615 = vmatmul.msk.bf16.gmra.mxu1 %vm262_vm9, %v256_v36  ;;  %v732_v36 = vld [vmem:[%s1029_s6 + $0x78] sm:$0xff] }
 0x1f7   :  { %v288_v37 = vpop.f32.mrf.mxu1 }
 0x1f8   :  { %v308_v22 = vmul.f32 %v288_v37, %v148_v16  ;;  %v364_v28 = vmul.f32 %v319_v26, %v288_v37  ;;  %v724_v37 = vld [vmem:[%s1029_s6 + $0x38] sm:$0xff] }
 0x1f9   :  { %559 = vmatpush.bf16.msrb.mxu0 %v724_v37 }
 0x1fa   :  { %v356_v34 = vmul.f32 %v319_v26, %v308_v22 }
 0x1ff   :  { %v290_v39 = vpop.f32.mrf.mxu1 }
 0x200   :  { %v309_v17 = vmul.f32 %v290_v39, %v149_v8  ;;  %v365_v23 = vmul.f32 %v324_v21, %v290_v39  ;;  %v723_v39 = vld [vmem:[%s1029_s6 + $0x30] sm:$0xff] }
 0x201   :  { %560 = vmatpush.bf16.msrb.mxu0 %v723_v39 }
 0x202   :  { %v357_v30 = vmul.f32 %v324_v21, %v309_v17  ;;  %v373_v33 = vpack.c.bf16 %v365_v23, %v364_v28 }
 0x204   :  { %v372_v35 = vpack.c.bf16 %v357_v30, %v356_v34 }
 0x207   :  { %v293_v40 = vpop.f32.mrf.mxu1 }
 0x208   :  { %v310_v11 = vmul.f32 %v293_v40, %v150_v2  ;;  %v366_v18 = vmul.f32 %v329_v54, %v293_v40  ;;  %v731_v40 = vld [vmem:[%s1029_s6 + $0x70] sm:$0xff] }
 0x20a   :  { %v358_v25 = vmul.f32 %v329_v54, %v310_v11  ;;  %v718_v54 = vld [vmem:[%s1029_s6 + $0x8] sm:$0xff] }
 0x20f   :  { %v295_v41 = vpop.f32.mrf.mxu1 }
 0x210   :  { %v311_v3 = vmul.f32 %v295_v41, %v151_v60  ;;  %v367_v12 = vmul.f32 %v334_v7, %v295_v41  ;;  %v738_v41 = vld [vmem:[%s1029_s6 + $0xa8] sm:$0xff] }
 0x212   :  { %v359_v20 = vmul.f32 %v334_v7, %v311_v3  ;;  %v375_v24 = vpack.c.bf16 %v367_v12, %v366_v18  ;;  %v747_v3 = vld [vmem:[%s1030_s7] ss:$0 sm:$0xff] }
 0x214   :  { %v374_v29 = vpack.c.bf16 %v359_v20, %v358_v25 }
 0x217   :  { %v298_v42 = vpop.f32.mrf.mxu1 }
 0x218   :  { %v312_v61 = vmul.f32 %v298_v42, %v152_v52  ;;  %v368_v4 = vmul.f32 %v339_v46, %v298_v42  ;;  %v722_v42 = vld [vmem:[%s1029_s6 + $0x28] sm:$0xff]  ;;  %v727_v52 = vld [vmem:[%s1029_s6 + $0x50] sm:$0xff] }
 0x219   :  { %561 = vmatpush.bf16.msrb.mxu0 %v722_v42 }
 0x21a   :  { %v360_v15 = vmul.f32 %v339_v46, %v312_v61  ;;  %v729_v46 = vld [vmem:[%s1029_s6 + $0x60] sm:$0xff] }
 0x21f   :  { %v300_v44 = vpop.f32.mrf.mxu1 }
 0x220   :  { %v313_v56 = vmul.f32 %v300_v44, %v153_v50  ;;  %v369_v62 = vmul.f32 %v344_v48, %v300_v44  ;;  %v737_v44 = vld [vmem:[%s1029_s6 + $0xa0] sm:$0xff]  ;;  %v735_v50 = vld [vmem:[%s1029_s6 + $0x90] sm:$0xff] }
 0x222   :  { %v361_v6 = vmul.f32 %v344_v48, %v313_v56  ;;  %v377_v14 = vpack.c.bf16 %v369_v62, %v368_v4  ;;  %v720_v48 = vld [vmem:[%s1029_s6 + $0x18] sm:$0xff]  ;;  %v733_v56 = vld [vmem:[%s1029_s6 + $0x80] sm:$0xff] }
 0x224   :  { %v376_v19 = vpack.c.bf16 %v361_v6, %v360_v15 }
 0x227   :  { %v303_v47 = vpop.f32.mrf.mxu1 }
 0x228   :  { %v314_v53 = vmul.f32 %v303_v47, %v154_v49  ;;  %v370_v57 = vmul.f32 %v349_v43, %v303_v47  ;;  %v736_v47 = vld [vmem:[%s1029_s6 + $0x98] sm:$0xff] }
 0x229   :  { %v728_v49 = vld [vmem:[%s1029_s6 + $0x58] sm:$0xff] }
 0x22a   :  { %v362_v0 = vmul.f32 %v349_v43, %v314_v53  ;;  %v730_v43 = vld [vmem:[%s1029_s6 + $0x68] sm:$0xff] }
 0x22b   :  { %v734_v53 = vld [vmem:[%s1029_s6 + $0x88] sm:$0xff] }
 0x22f   :  { %v305_v55 = vpop.f32.mrf.mxu1 }
 0x230   :  { %v315_v58 = vmul.f32 %v305_v55, %v155_v51  ;;  %v371_v59 = vmul.f32 %v354_v45, %v305_v55  ;;  %v719_v51 = vld [vmem:[%s1029_s6 + $0x10] sm:$0xff]  ;;  %v726_v55 = vld [vmem:[%s1029_s6 + $0x48] sm:$0xff] }
 0x232   :  { %v379_v63 = vpack.c.bf16 %v371_v59, %v370_v57  ;;  %v363_v1 = vmul.f32 %v354_v45, %v315_v58  ;;  %v721_v45 = vld [vmem:[%s1029_s6 + $0x20] sm:$0xff]  ;;  %v715_v57 = vpack.c.bf16 %v876_v38, %v876_v38 }
 0x233   :  { %562 = vmatpush.bf16.msrb.mxu0 %v721_v45  ;;  %v725_v58 = vld [vmem:[%s1029_s6 + $0x40] sm:$0xff] }
 0x234   :  { %401 = vmatpush.bf16.msra.mxu3 %v379_v63  ;;  %v378_v5 = vpack.c.bf16 %v363_v1, %v362_v0  ;;  %v717_v59 = vld [vmem:[%s1029_s6] sm:$0xff] }
 0x236   :  { %388 = vmatpush.bf16.msra.mxu2 %v378_v5 }
 0x237   :  { %563 = vmatpush.bf16.msrb.mxu0 %v720_v48 }
 0x238   :  { %402 = vmatpush.bf16.msra.mxu3 %v377_v14 }
 0x23a   :  { %389 = vmatpush.bf16.msra.mxu2 %v376_v19 }
 0x23b   :  { %564 = vmatpush.bf16.msrb.mxu0 %v719_v51 }
 0x23c   :  { %403 = vmatpush.bf16.msra.mxu3 %v375_v24 }
 0x23e   :  { %390 = vmatpush.bf16.msra.mxu2 %v374_v29 }
 0x23f   :  { %565 = vmatpush.bf16.msrb.mxu0 %v718_v54 }
 0x240   :  { %404 = vmatpush.bf16.msra.mxu3 %v373_v33 }
 0x242   :  { %391 = vmatpush.bf16.msra.mxu2 %v372_v35 }
 0x243   :  { %617 = vmatmul.msk.bf16.vlgmr.msra.gmra.mxu3 %vm380_vm3, %v260_v27  ;;  %566 = vmatpush.bf16.msrb.mxu0 %v717_v59 }
 0x244   :  { %585 = vmatpush.bf16.msrb.mxu3 %v740_v32 }
 0x245   :  { %616 = vmatmul.msk.bf16.vlgmr.msra.gmra.mxu2 %vm380_vm3, %v260_v27 }
 0x246   :  { %572 = vmatpush.bf16.msrb.mxu2 %v732_v36 }
 0x248   :  { %586 = vmatpush.bf16.msrb.mxu3 %v739_v13 }
 0x24a   :  { %573 = vmatpush.bf16.msrb.mxu2 %v731_v40 }
 0x24c   :  { %587 = vmatpush.bf16.msrb.mxu3 %v738_v41 }
 0x24e   :  { %574 = vmatpush.bf16.msrb.mxu2 %v730_v43 }
 0x250   :  { %588 = vmatpush.bf16.msrb.mxu3 %v737_v44 }
 0x252   :  { %575 = vmatpush.bf16.msrb.mxu2 %v729_v46 }
 0x254   :  { %589 = vmatpush.bf16.msrb.mxu3 %v736_v47 }
 0x256   :  { %576 = vmatpush.bf16.msrb.mxu2 %v728_v49 }
 0x258   :  { %590 = vmatpush.bf16.msrb.mxu3 %v735_v50 }
 0x25a   :  { %577 = vmatpush.bf16.msrb.mxu2 %v727_v52 }
 0x25c   :  { %591 = vmatpush.bf16.msrb.mxu3 %v734_v53 }
 0x25e   :  { %578 = vmatpush.bf16.msrb.mxu2 %v726_v55 }
 0x260   :  { %592 = vmatpush.bf16.msrb.mxu3 %v733_v56 }
 0x262   :  { %579 = vmatpush.bf16.msrb.mxu2 %v725_v58 }
 0x263   :  { %716 = vmatmul.msk.bf16.vlgmr.msrb.gmra.mxu3 %vm714_vm4, %v715_v57 }
 0x2c6   :  { %v406_v60 = vpop.f32.mrf.mxu3 }
 0x2c7   :  { %v411_v61 = vpack.c.bf16 %v406_v60, %v406_v60 }
 0x2c8   :  { %v393_v62 = vpop.f32.mrf.mxu2 }
 0x2c9   :  { %v410_v63 = vpack.c.bf16 %v393_v62, %v393_v62  ;;  %580 = vmatmul.bf16.vlgmr.msrb.gmra.mxu2 %v411_v61 }
 0x2cb   :  { %567 = vmatmul.bf16.vlgmr.msrb.gmra.mxu0 %v410_v63 }
 0x2ce   :  { %v408_v0 = vpop.f32.mrf.mxu3 }
 0x2d0   :  { %v395_v1 = vpop.f32.mrf.mxu2 }
 0x2e6   :  { %v594_v38 = vpop.f32.mrf.mxu3 }
 0x2ee   :  { %v596_v2 = vpop.f32.mrf.mxu3 }
 0x348   :  { %v568_v4 = vpop.f32.mrf.mxu0 }
 0x349   :  { %v569_v5 = vadd.f32 %v747_v3, %v568_v4 }
 0x34c   :  { %v581_v6 = vpop.f32.mrf.mxu2 }
 0x34d   :  { %v582_v7 = vadd.f32 %v581_v6, %v569_v5 }
 0x34f   :  { %v595_v8 = vadd.f32 %v594_v38, %v582_v7 }
 0x350   :  { %v570_v9 = vpop.f32.mrf.mxu0 }
 0x351   :  { %v598_v11 = vmax.f32 %v595_v8, 0.0 }
 0x353   :  { %v599_v12 = vsel %vm74_vm5, %v598_v11, %v595_v8 }
 0x354   :  { %600 = vst [vmem:[%s1031_s9] sm:$0xff] %v599_v12  ;;  %v583_v14 = vpop.f32.mrf.mxu2 }

// kernel: _lambda_.8
= control target key start
LH: loop header
LB: loop body
LE: loop exit
PB: predicated region body
PF: predicated region fallthrough
CT: control target
= control target key end

     0   :  { %v754_v0 = vmov 0   ;;  %v38_v6 = vlaneseq  ;;  %vm45_vm0 = vcmask 64512   ;;  %v755_v11 = vmov 0.0   ;;  %s1030_s2 = inlined_call_operand.vmem [shape: s32[4,1], index: 2, kind: input, shape index: {}]   ;;  %s1031_s3 = inlined_call_operand.vmem [shape: f32[8,128], index: 3, kind: input, shape index: {}]   ;;  %s1032_s0 = inlined_call_operand.vmem [shape: s32[64,1], index: 0, kind: input, shape index: {}]   ;;  %s1033_s5 = inlined_call_operand.vmem [shape: f32[64,1], index: 5, kind: input, shape index: {}]   ;;  %s1034_s8 = inlined_call_operand.vmem [shape: f32[2,256], index: 8, kind: input, shape index: {}, may-alias: {8,10}]   ;;  %s1035_s10 = inlined_call_operand.vmem [shape: f32[2,256], index: 10, kind: output, shape index: {1}, may-alias: {8,10}]   ;;  %s1036_s1 = inlined_call_operand.vmem [shape: s32[1,64], index: 1, kind: input, shape index: {}]   ;;  %s1037_s4 = inlined_call_operand.vmem [shape: f32[64,128], index: 4, kind: input, shape index: {}]   ;;  %s1038_s6 = inlined_call_operand.vmem [shape: bf16[384,128], index: 6, kind: input, shape index: {}]   ;;  %s1039_s7 = inlined_call_operand.vmem [shape: f32[1,128], index: 7, kind: input, shape index: {}]   ;;  %s1040_s9 = inlined_call_operand.vmem [shape: f32[4,128], index: 9, kind: output, shape index: {0}]  }
   0x1   :  { %747 = vset.pattern.permute.xlu0 %v754_v0  ;;  %v36_v1 = vld [vmem:[%s1030_s2] sm:$0xf]  ;;  %748 = vset.pattern.permute.xlu1 %v754_v0  ;;  %v145_v4 = vld [vmem:[%s1032_s0 + $0x8] sm:$0xff]  ;;  %v150_v7 = vld [vmem:[%s1032_s0 + $0x30] sm:$0xff]  ;;  %vm71_vm3 = vcmask 1043456   ;;  %vm139_vm11 = vcmask 1041408  }
   0x2   :  { %41 = vperm.xlu0 %747, %v36_v1   ;;  %749 = vset.pattern.permute.xlu2 %v754_v0  ;;  %v35_v2 = vld [vmem:[%s1031_s3] sm:$0xff]  ;;  %v829_v8 = vand.u32 127, %v38_v6  ;;  %v167_v10 = vld [vmem:[%s1033_s5 + $0x30] sm:$0xff]  ;;  %v147_v16 = vld [vmem:[%s1032_s0 + $0x18] sm:$0xff]  ;;  %v871_v27 = vshrl.u32 %v38_v6, 7  ;;  %vm267_vm12 = vcmask 31744  }
   0x3   :  { %64 = vmatpush.msra.mxu0 %v35_v2  ;;  %v144_v3 = vld [vmem:[%s1032_s0] sm:$0xff]  ;;  %v146_v14 = vld [vmem:[%s1032_s0 + $0x10] sm:$0xff]  ;;  %v162_v17 = vld [vmem:[%s1033_s5 + $0x8] sm:$0xff]  ;;  %vm133_vm15 = vcmask 1040384  }
   0x4   :  { %219 = vperm.xlu1 %748, %v144_v3   ;;  %v148_v5 = vld [vmem:[%s1032_s0 + $0x20] sm:$0xff]  ;;  %v163_v15 = vld [vmem:[%s1033_s5 + $0x10] sm:$0xff]  ;;  %225 = vperm.xlu2 %749, %v146_v14   ;;  %v149_v18 = vld [vmem:[%s1032_s0 + $0x28] sm:$0xff]  ;;  %vm69_vm2 = vcmp.eq.s32.totalorder %v829_v8, 32  ;;  %vm104_vm4 = vcmp.ge.s32.totalorder %v871_v27, 2  ;;  %vm105_vm5 = vcmp.lt.s32.totalorder %v871_v27, 4 }
   0x5   :  { %v165_v13 = vld [vmem:[%s1033_s5 + $0x20] sm:$0xff]  ;;  %v151_v19 = vld [vmem:[%s1032_s0 + $0x38] sm:$0xff]  ;;  %v166_v24 = vld [vmem:[%s1033_s5 + $0x28] sm:$0xff]  ;;  %vm82_vm6 = vcmp.lt.s32.totalorder %v871_v27, 2  ;;  %vm75_vm8 = vcmp.lt.s32.totalorder %v829_v8, 32 }
   0x6   :  { %v168_v20 = vld [vmem:[%s1033_s5 + $0x38] sm:$0xff]  ;;  %v161_v26 = vld [vmem:[%s1033_s5] sm:$0xff]  ;;  %vm106_vm7 = vmand %vm104_vm4, %vm105_vm5  ;;  %v84_v30 = vsel %vm82_vm6, 1.0, %v755_v11  ;;  %vm384_vm5 = vcmask 523264  }
   0x7   :  { %v164_v25 = vld [vmem:[%s1033_s5 + $0x18] sm:$0xff]  ;;  %v107_v31 = vsel %vm106_vm7, 1.0, %v755_v11  ;;  %v614_v32 = vadd.f32 -1.0, %v84_v30  ;;  %vm718_vm6 = vmpackc.low %vm75_vm8, %vm75_vm8 }
   0x8   :  { %v615_v33 = vadd.f32 -1.0, %v107_v31 }
   0x9   :  { %v86_v35 = vmul.f32 1e+30, %v614_v32 }
   0xa   :  { %v109_v36 = vmul.f32 1e+30, %v615_v33 }
   0xc   :  { %222 = vperm.xlu1 %748, %v145_v4   ;;  %228 = vperm.xlu2 %749, %v147_v16  }
  0x14   :  { %231 = vperm.xlu1 %748, %v148_v5   ;;  %234 = vperm.xlu2 %749, %v149_v18  }
  0x1c   :  { %237 = vperm.xlu1 %748, %v150_v7   ;;  %240 = vperm.xlu2 %749, %v151_v19  }
  0x24   :  { %352 = vperm.xlu1 %748, %v167_v10   ;;  %357 = vperm.xlu2 %749, %v168_v20  }
  0x2c   :  { %342 = vperm.xlu1 %748, %v165_v13   ;;  %347 = vperm.xlu2 %749, %v166_v24   ;;  %v37_v24 = vld [vmem:[%s1034_s8] sm:$0xf] }
  0x34   :  { %332 = vperm.xlu1 %748, %v163_v15   ;;  %337 = vperm.xlu2 %749, %v164_v25  }
  0x3c   :  { %327 = vperm.xlu1 %748, %v162_v17  }
  0x5e   :  { %v226_v56 = vpop.permute.xlu2 %225 }
  0x5f   :  { %vm244_vm13 = vcmp.eq.s32.totalorder %v829_v8, %v226_v56  ;;  %v157_v56 = vld [vmem:[%s1037_s4 + $0x20] sm:$0xff] }
  0x60   :  { %v252_v20 = vsel %vm244_vm13, 1.0, %v755_v11 }
  0x66   :  { %v229_v14 = vpop.permute.xlu2 %228 }
  0x67   :  { %vm245_vm14 = vcmp.eq.s32.totalorder %v829_v8, %v229_v14  ;;  %v154_v14 = vld [vmem:[%s1037_s4 + $0x8] sm:$0xff] }
  0x6e   :  { %v235_v32 = vpop.permute.xlu2 %234 }
  0x74   :  { %v42_v9 = vpop.permute.xlu0 %41 }
  0x75   :  { %vm43_vm1 = vcmp.eq.s32.totalorder %v829_v8, %v42_v9 }
  0x76   :  { %v44_v12 = vsel %vm43_vm1, 1.0, %v755_v11  ;;  %v220_v28 = vpop.permute.xlu1 %219  ;;  %vm247_vm1 = vcmp.eq.s32.totalorder %v829_v8, %v235_v32 }
  0x77   :  { %613 = vmatmul.msk.f32.vlgmr.msra.gmra.mxu0 %vm45_vm0, %v44_v12  ;;  %vm242_vm9 = vcmp.eq.s32.totalorder %v829_v8, %v220_v28 }
  0x78   :  { %v250_v44 = vsel %vm242_vm9, 1.0, %v755_v11 }
  0x7e   :  { %v223_v37 = vpop.permute.xlu1 %222 }
  0x7f   :  { %vm243_vm10 = vcmp.eq.s32.totalorder %v829_v8, %v223_v37  ;;  %v241_v37 = vpop.permute.xlu2 %240 }
  0x80   :  { %v251_v45 = vsel %vm243_vm10, 1.0, %v755_v11 }
  0x81   :  { %v258_v61 = vpack.c.bf16 %v251_v45, %v250_v44 }
  0xf4   :  { %v66_v21 = vpop.f32.mrf.mxu0 }
  0xf5   :  { %v70_v22 = vsel %vm69_vm2, %v66_v21, 0.0 }
  0xf6   :  { %v72_v23 = vsel %vm71_vm3, %v70_v22, 0.0 }
  0xf7   :  { %73 = vadd.xlane.f32.xlu0 %v72_v23 }
 0x10b   :  { %322 = vperm.xlu0 %747, %v161_v26  }
 0x16a   :  { %v74_v29 = vpop.xlane.xlu0 %73 }
 0x16b   :  { %752 = vtanh.f32 %v74_v29 }
 0x171   :  { %v753_v34 = vpop.eup %752 }
 0x172   :  { %v879_v38 = vmul.f32 %v753_v34, %v66_v21  ;;  %v253_v21 = vsel %vm245_vm14, 1.0, %v755_v11  ;;  %v255_v34 = vsel %vm247_vm1, 1.0, %v755_v11 }
 0x173   :  { %v259_v28 = vpack.c.bf16 %v253_v21, %v252_v20  ;;  %v153_v20 = vld [vmem:[%s1037_s4] sm:$0xff] }
 0x174   :  { %v78_v39 = vsel %vm75_vm8, %v879_v38, 0.0 }
 0x175   :  { %v87_v40 = vadd.f32 %v86_v35, %v78_v39  ;;  %v95_v41 = vmul.f32 %v84_v30, %v78_v39  ;;  %v110_v42 = vadd.f32 %v109_v36, %v78_v39  ;;  %v118_v43 = vmul.f32 %v107_v31, %v78_v39  ;;  %v232_v31 = vpop.permute.xlu1 %231 }
 0x176   :  { %v266_v46 = vpack.c.bf16 %v78_v39, %v78_v39  ;;  %vm246_vm0 = vcmp.eq.s32.totalorder %v829_v8, %v232_v31 }
 0x177   :  { %v88_v47 = vsel %vm71_vm3, %v87_v40, -inf  ;;  %v96_v48 = vsel %vm71_vm3, %v95_v41, 0.0  ;;  %v111_v49 = vsel %vm71_vm3, %v110_v42, -inf  ;;  %v119_v50 = vsel %vm71_vm3, %v118_v43, 0.0 }
 0x178   :  { %v89_v51 = vrot.slane %v88_v47, 4  ;;  %v97_v52 = vrot.slane %v96_v48, 4  ;;  %v112_v53 = vrot.slane %v111_v49, 4  ;;  %v120_v54 = vrot.slane %v119_v50, 4 }
 0x179   :  { %v281_v55 = vsel %vm139_vm11, %v266_v46, 0  ;;  %v254_v33 = vsel %vm246_vm0, 1.0, %v755_v11  ;;  %vm249_vm3 = vcmp.eq.s32.totalorder %v829_v8, %v241_v37 }
 0x17a   :  { %v90_v57 = vmax.f32 %v88_v47, %v89_v51  ;;  %v98_v58 = vadd.f32 %v97_v52, %v96_v48  ;;  %v113_v59 = vmax.f32 %v111_v49, %v112_v53  ;;  %v121_v60 = vadd.f32 %v120_v54, %v119_v50  ;;  %290 = vmatpush.bf16.msra.mxu1 %v281_v55  ;;  %v358_v49 = vpop.permute.xlu2 %357  ;;  %v159_v53 = vld [vmem:[%s1037_s4 + $0x30] sm:$0xff]  ;;  %v158_v54 = vld [vmem:[%s1037_s4 + $0x28] sm:$0xff]  ;;  %v160_v55 = vld [vmem:[%s1037_s4 + $0x38] sm:$0xff] }
 0x17b   :  { %v260_v35 = vpack.c.bf16 %v255_v34, %v254_v33  ;;  %v257_v40 = vsel %vm249_vm3, 1.0, %v755_v11 }
 0x17c   :  { %v91_v62 = vrot.slane %v90_v57, 2  ;;  %v99_v63 = vrot.slane %v98_v58, 2  ;;  %v114_v0 = vrot.slane %v113_v59, 2  ;;  %v122_v1 = vrot.slane %v121_v60, 2 }
 0x17d   :  { %616 = vmatmul.msk.bf16.vlgmr.msra.gmra.mxu1 %vm267_vm12, %v258_v61  ;;  %v238_v36 = vpop.permute.xlu1 %237  ;;  %v323_v31 = vpop.permute.xlu0 %322 }
 0x17e   :  { %v100_v2 = vadd.f32 %v99_v63, %v98_v58  ;;  %v115_v3 = vmax.f32 %v113_v59, %v114_v0  ;;  %v123_v4 = vadd.f32 %v122_v1, %v121_v60  ;;  %v92_v5 = vmax.f32 %v90_v57, %v91_v62  ;;  %v156_v0 = vld [vmem:[%s1037_s4 + $0x18] sm:$0xff] }
 0x17f   :  { %vm248_vm2 = vcmp.eq.s32.totalorder %v829_v8, %v238_v36  ;;  %v744_v36 = vld [vmem:[%s1038_s6 + $0xb8] sm:$0xff] }
 0x180   :  { %v101_v6 = vrot.slane %v100_v2, 1  ;;  %v116_v7 = vrot.slane %v115_v3, 1  ;;  %v124_v9 = vrot.slane %v123_v4, 1  ;;  %v93_v15 = vrot.slane %v92_v5, 1 }
 0x181   :  { %v256_v39 = vsel %vm248_vm2, 1.0, %v755_v11 }
 0x182   :  { %v102_v10 = vadd.f32 %v101_v6, %v100_v2  ;;  %v117_v12 = vmax.f32 %v115_v3, %v116_v7  ;;  %v125_v13 = vadd.f32 %v124_v9, %v123_v4  ;;  %v94_v22 = vmax.f32 %v92_v5, %v93_v15  ;;  %v348_v52 = vpop.permute.xlu2 %347  ;;  %v155_v6 = vld [vmem:[%s1037_s4 + $0x10] sm:$0xff]  ;;  %v750_v15 = vld [vmem:[%s1036_s1] ss:$0 sm:$0xff] }
 0x183   :  { %v261_v41 = vpack.c.bf16 %v257_v40, %v256_v39  ;;  %vm263_vm4 = vcmp.eq.s32.totalorder %v871_v27, %v750_v15 }
 0x184   :  { %v126_v16 = vmul.f32 0.5, %v125_v13  ;;  %v103_v17 = vmul.f32 0.5, %v102_v10  ;;  %v129_v18 = vrot.slane %v117_v12, 7 }
 0x185   :  { %v353_v47 = vpop.permute.xlu1 %352 }
 0x186   :  { %v130_v19 = vrot.slane %v126_v16, 7  ;;  %v134_v26 = vsel %vm133_vm15, %v94_v22, %v129_v18 }
 0x188   :  { %v135_v23 = vsel %vm133_vm15, %v103_v17, %v130_v19 }
 0x189   :  { %v138_v25 = vrot.slane %v135_v23, 6 }
 0x18a   :  { %v338_v13 = vpop.permute.xlu2 %337 }
 0x18b   :  { %v140_v29 = vsel %vm139_vm11, %v134_v26, %v138_v25 }
 0x18c   :  { %v142_v30 = vadd.f32 %v140_v29, %v37_v24 }
 0x18d   :  { %617 = vmatmul.msk.bf16.gmra.mxu1 %vm267_vm12, %v259_v28  ;;  %v343_v50 = vpop.permute.xlu1 %342 }
 0x18e   :  { %143 = vst [vmem:[%s1035_s10] sm:$0xf] %v142_v30 }
 0x195   :  { %v333_v58 = vpop.permute.xlu1 %332 }
 0x19d   :  { %618 = vmatmul.msk.bf16.gmra.mxu1 %vm267_vm12, %v260_v35  ;;  %v328_v25 = vpop.permute.xlu1 %327  ;;  %v264_v35 = vsel %vm263_vm4, 1.0, %v755_v11  ;;  %v743_v11 = vld [vmem:[%s1038_s6 + $0xb0] sm:$0xff] }
 0x19e   :  { %v265_v27 = vpack.c.bf16 %v264_v35, %v264_v35 }
 0x1ad   :  { %619 = vmatmul.msk.bf16.gmra.mxu1 %vm267_vm12, %v261_v41  ;;  %v736_v41 = vld [vmem:[%s1038_s6 + $0x78] sm:$0xff] }
 0x1fa   :  { %v292_v42 = vpop.f32.mrf.mxu1 }
 0x1fb   :  { %v312_v26 = vmul.f32 %v292_v42, %v153_v20  ;;  %v368_v32 = vmul.f32 %v323_v31, %v292_v42  ;;  %v728_v42 = vld [vmem:[%s1038_s6 + $0x38] sm:$0xff] }
 0x1fc   :  { %563 = vmatpush.bf16.msrb.mxu0 %v728_v42 }
 0x1fd   :  { %v360_v39 = vmul.f32 %v323_v31, %v312_v26 }
 0x202   :  { %v294_v43 = vpop.f32.mrf.mxu1 }
 0x203   :  { %v313_v21 = vmul.f32 %v294_v43, %v154_v14  ;;  %v369_v28 = vmul.f32 %v328_v25, %v294_v43  ;;  %v727_v43 = vld [vmem:[%s1038_s6 + $0x30] sm:$0xff] }
 0x204   :  { %564 = vmatpush.bf16.msrb.mxu0 %v727_v43 }
 0x205   :  { %v361_v34 = vmul.f32 %v328_v25, %v313_v21  ;;  %v377_v37 = vpack.c.bf16 %v369_v28, %v368_v32 }
 0x207   :  { %v376_v40 = vpack.c.bf16 %v361_v34, %v360_v39 }
 0x20a   :  { %v297_v44 = vpop.f32.mrf.mxu1 }
 0x20b   :  { %v314_v16 = vmul.f32 %v297_v44, %v155_v6  ;;  %v370_v22 = vmul.f32 %v333_v58, %v297_v44  ;;  %v735_v44 = vld [vmem:[%s1038_s6 + $0x70] sm:$0xff] }
 0x20d   :  { %v362_v30 = vmul.f32 %v333_v58, %v314_v16  ;;  %v722_v58 = vld [vmem:[%s1038_s6 + $0x8] sm:$0xff] }
 0x212   :  { %v299_v45 = vpop.f32.mrf.mxu1 }
 0x213   :  { %v315_v7 = vmul.f32 %v299_v45, %v156_v0  ;;  %v371_v17 = vmul.f32 %v338_v13, %v299_v45  ;;  %v742_v45 = vld [vmem:[%s1038_s6 + $0xa8] sm:$0xff] }
 0x215   :  { %v363_v24 = vmul.f32 %v338_v13, %v315_v7  ;;  %v379_v29 = vpack.c.bf16 %v371_v17, %v370_v22  ;;  %v751_v7 = vld [vmem:[%s1039_s7] ss:$0 sm:$0xff] }
 0x217   :  { %v378_v33 = vpack.c.bf16 %v363_v24, %v362_v30 }
 0x21a   :  { %v302_v46 = vpop.f32.mrf.mxu1 }
 0x21b   :  { %v316_v1 = vmul.f32 %v302_v46, %v157_v56  ;;  %v372_v9 = vmul.f32 %v343_v50, %v302_v46  ;;  %v726_v46 = vld [vmem:[%s1038_s6 + $0x28] sm:$0xff]  ;;  %v731_v56 = vld [vmem:[%s1038_s6 + $0x50] sm:$0xff] }
 0x21c   :  { %565 = vmatpush.bf16.msrb.mxu0 %v726_v46 }
 0x21d   :  { %v364_v19 = vmul.f32 %v343_v50, %v316_v1  ;;  %v733_v50 = vld [vmem:[%s1038_s6 + $0x60] sm:$0xff] }
 0x222   :  { %v304_v48 = vpop.f32.mrf.mxu1 }
 0x223   :  { %v317_v60 = vmul.f32 %v304_v48, %v158_v54  ;;  %v373_v2 = vmul.f32 %v348_v52, %v304_v48  ;;  %v741_v48 = vld [vmem:[%s1038_s6 + $0xa0] sm:$0xff]  ;;  %v739_v54 = vld [vmem:[%s1038_s6 + $0x90] sm:$0xff] }
 0x225   :  { %v365_v12 = vmul.f32 %v348_v52, %v317_v60  ;;  %v381_v18 = vpack.c.bf16 %v373_v2, %v372_v9  ;;  %v724_v52 = vld [vmem:[%s1038_s6 + $0x18] sm:$0xff]  ;;  %v737_v60 = vld [vmem:[%s1038_s6 + $0x80] sm:$0xff] }
 0x227   :  { %v380_v23 = vpack.c.bf16 %v365_v12, %v364_v19 }
 0x22a   :  { %v307_v51 = vpop.f32.mrf.mxu1 }
 0x22b   :  { %v318_v57 = vmul.f32 %v307_v51, %v159_v53  ;;  %v374_v61 = vmul.f32 %v353_v47, %v307_v51  ;;  %v740_v51 = vld [vmem:[%s1038_s6 + $0x98] sm:$0xff] }
 0x22c   :  { %v732_v53 = vld [vmem:[%s1038_s6 + $0x58] sm:$0xff] }
 0x22d   :  { %v366_v4 = vmul.f32 %v353_v47, %v318_v57  ;;  %v734_v47 = vld [vmem:[%s1038_s6 + $0x68] sm:$0xff] }
 0x22e   :  { %v738_v57 = vld [vmem:[%s1038_s6 + $0x88] sm:$0xff] }
 0x232   :  { %v309_v59 = vpop.f32.mrf.mxu1 }
 0x233   :  { %v319_v62 = vmul.f32 %v309_v59, %v160_v55  ;;  %v375_v63 = vmul.f32 %v358_v49, %v309_v59  ;;  %v723_v55 = vld [vmem:[%s1038_s6 + $0x10] sm:$0xff]  ;;  %v730_v59 = vld [vmem:[%s1038_s6 + $0x48] sm:$0xff] }
 0x235   :  { %v383_v3 = vpack.c.bf16 %v375_v63, %v374_v61  ;;  %v367_v5 = vmul.f32 %v358_v49, %v319_v62  ;;  %v725_v49 = vld [vmem:[%s1038_s6 + $0x20] sm:$0xff]  ;;  %v719_v61 = vpack.c.bf16 %v879_v38, %v879_v38 }
 0x236   :  { %566 = vmatpush.bf16.msrb.mxu0 %v725_v49  ;;  %v729_v62 = vld [vmem:[%s1038_s6 + $0x40] sm:$0xff] }
 0x237   :  { %405 = vmatpush.bf16.msra.mxu3 %v383_v3  ;;  %v382_v10 = vpack.c.bf16 %v367_v5, %v366_v4  ;;  %v721_v63 = vld [vmem:[%s1038_s6] sm:$0xff] }
 0x239   :  { %392 = vmatpush.bf16.msra.mxu2 %v382_v10 }
 0x23a   :  { %567 = vmatpush.bf16.msrb.mxu0 %v724_v52 }
 0x23b   :  { %406 = vmatpush.bf16.msra.mxu3 %v381_v18 }
 0x23d   :  { %393 = vmatpush.bf16.msra.mxu2 %v380_v23 }
 0x23e   :  { %568 = vmatpush.bf16.msrb.mxu0 %v723_v55 }
 0x23f   :  { %407 = vmatpush.bf16.msra.mxu3 %v379_v29 }
 0x241   :  { %394 = vmatpush.bf16.msra.mxu2 %v378_v33 }
 0x242   :  { %569 = vmatpush.bf16.msrb.mxu0 %v722_v58 }
 0x243   :  { %408 = vmatpush.bf16.msra.mxu3 %v377_v37 }
 0x245   :  { %395 = vmatpush.bf16.msra.mxu2 %v376_v40 }
 0x246   :  { %621 = vmatmul.msk.bf16.vlgmr.msra.gmra.mxu3 %vm384_vm5, %v265_v27  ;;  %570 = vmatpush.bf16.msrb.mxu0 %v721_v63 }
 0x247   :  { %589 = vmatpush.bf16.msrb.mxu3 %v744_v36 }
 0x248   :  { %620 = vmatmul.msk.bf16.vlgmr.msra.gmra.mxu2 %vm384_vm5, %v265_v27 }
 0x249   :  { %576 = vmatpush.bf16.msrb.mxu2 %v736_v41 }
 0x24b   :  { %590 = vmatpush.bf16.msrb.mxu3 %v743_v11 }
 0x24d   :  { %577 = vmatpush.bf16.msrb.mxu2 %v735_v44 }
 0x24f   :  { %591 = vmatpush.bf16.msrb.mxu3 %v742_v45 }
 0x251   :  { %578 = vmatpush.bf16.msrb.mxu2 %v734_v47 }
 0x253   :  { %592 = vmatpush.bf16.msrb.mxu3 %v741_v48 }
 0x255   :  { %579 = vmatpush.bf16.msrb.mxu2 %v733_v50 }
 0x257   :  { %593 = vmatpush.bf16.msrb.mxu3 %v740_v51 }
 0x259   :  { %580 = vmatpush.bf16.msrb.mxu2 %v732_v53 }
 0x25b   :  { %594 = vmatpush.bf16.msrb.mxu3 %v739_v54 }
 0x25d   :  { %581 = vmatpush.bf16.msrb.mxu2 %v731_v56 }
 0x25f   :  { %595 = vmatpush.bf16.msrb.mxu3 %v738_v57 }
 0x261   :  { %582 = vmatpush.bf16.msrb.mxu2 %v730_v59 }
 0x263   :  { %596 = vmatpush.bf16.msrb.mxu3 %v737_v60 }
 0x265   :  { %583 = vmatpush.bf16.msrb.mxu2 %v729_v62 }
 0x266   :  { %720 = vmatmul.msk.bf16.vlgmr.msrb.gmra.mxu3 %vm718_vm6, %v719_v61 }
 0x2c9   :  { %v410_v0 = vpop.f32.mrf.mxu3 }
 0x2ca   :  { %v415_v1 = vpack.c.bf16 %v410_v0, %v410_v0 }
 0x2cb   :  { %v397_v2 = vpop.f32.mrf.mxu2 }
 0x2cc   :  { %v414_v3 = vpack.c.bf16 %v397_v2, %v397_v2  ;;  %584 = vmatmul.bf16.vlgmr.msrb.gmra.mxu2 %v415_v1 }
 0x2ce   :  { %571 = vmatmul.bf16.vlgmr.msrb.gmra.mxu0 %v414_v3 }
 0x2d1   :  { %v412_v4 = vpop.f32.mrf.mxu3 }
 0x2d3   :  { %v399_v5 = vpop.f32.mrf.mxu2 }
 0x2e9   :  { %v598_v38 = vpop.f32.mrf.mxu3 }
 0x2f1   :  { %v600_v6 = vpop.f32.mrf.mxu3 }
 0x34b   :  { %v572_v9 = vpop.f32.mrf.mxu0 }
 0x34c   :  { %v573_v10 = vadd.f32 %v751_v7, %v572_v9 }
 0x34f   :  { %v585_v12 = vpop.f32.mrf.mxu2 }
 0x350   :  { %v586_v13 = vadd.f32 %v585_v12, %v573_v10 }
 0x352   :  { %v599_v14 = vadd.f32 %v598_v38, %v586_v13 }
 0x353   :  { %v574_v15 = vpop.f32.mrf.mxu0 }
 0x354   :  { %v602_v16 = vmax.f32 %v599_v14, 0.0 }
 0x356   :  { %v603_v17 = vsel %vm75_vm8, %v602_v16, %v599_v14 }
 0x357   :  { %604 = vst [vmem:[%s1040_s9] sm:$0xf] %v603_v17  ;;  %v587_v18 = vpop.f32.mrf.mxu2 }

// kernel: _lambda_.9
= control target key start
LH: loop header
LB: loop body
LE: loop exit
PB: predicated region body
PF: predicated region fallthrough
CT: control target
= control target key end

     0   :  { %v707_v1 = vmov 0   ;;  %s894_s0 = inlined_call_operand.vmem [shape: s32[2,1], index: 0, kind: input, shape index: {}]   ;;  %s895_s1 = inlined_call_operand.vmem [shape: f32[4,128], index: 1, kind: input, shape index: {}]   ;;  %s896_s2 = inlined_call_operand.vmem [shape: f32[2,256], index: 2, kind: input, shape index: {}]   ;;  %s897_s3 = inlined_call_operand.vmem [shape: bf16[256,128], index: 3, kind: input, shape index: {}]   ;;  %s898_s4 = inlined_call_operand.vmem [shape: f32[1,128], index: 4, kind: input, shape index: {}]   ;;  %s899_s5 = inlined_call_operand.vmem [shape: bf16[128,128], index: 5, kind: input, shape index: {}]   ;;  %s900_s6 = inlined_call_operand.vmem [shape: f32[1,128], index: 6, kind: input, shape index: {}]   ;;  %s901_s7 = inlined_call_operand.vmem [shape: bf16[128,128], index: 7, kind: input, shape index: {}]   ;;  %s902_s8 = inlined_call_operand.vmem [shape: f32[1,128], index: 8, kind: input, shape index: {}]   ;;  %s903_s9 = inlined_call_operand.hbm [shape: f32[2,128], index: 9, kind: output, shape index: {}]  }
   0x1   :  { %v34_v0 = vld [vmem:[%s894_s0] sm:$0x3]  ;;  %671 = vset.pattern.permute.xlu0 %v707_v1 }
   0x2   :  { %14 = vsyncpa [#allocation3], 0  ;;  %39 = vperm.xlu0 %671, %v34_v0   ;;  %v33_v2 = vld [vmem:[%s895_s1] sm:$0xf]  ;;  %vm47_vm0 = vcmask 1043456   ;;  %v36_v3 = vlaneseq  ;;  %vm43_vm1 = vcmask 31744  }
   0x3   :  { %504 = vmatpush.msk.msra.mxu0 %vm47_vm0, %v33_v2  ;;  %v708_v6 = vmov 0.0   ;;  %vm73_vm4 = vcmask 1041408   ;;  %v643_v11 = vld [vmem:[%s897_s3 + $0x38] sm:$0xff]  ;;  %v642_v13 = vld [vmem:[%s897_s3 + $0x30] sm:$0xff]  ;;  %v641_v15 = vld [vmem:[%s897_s3 + $0x28] sm:$0xff]  ;;  %vm133_vm10 = vcmask 1040384  }
   0x4   :  { %v766_v4 = vand.u32 127, %v36_v3  ;;  %v651_v12 = vld [vmem:[%s897_s3 + $0x78] sm:$0xff]  ;;  %316 = vmatpush.bf16.msra.mxu1 %v643_v11  ;;  %v650_v14 = vld [vmem:[%s897_s3 + $0x70] sm:$0xff]  ;;  %v649_v16 = vld [vmem:[%s897_s3 + $0x68] sm:$0xff]  ;;  %v82_v17 = vshrl.u32 %v36_v3, 7  ;;  %s495_s12 = sshll.u32 %s903_s9, 4  ;;  %s496_s12 = int_to_ptr.hbm [resolvable:$true] %s495_s12 }
   0x5   :  { %329 = vmatpush.bf16.msra.mxu2 %v651_v12  ;;  %v640_v18 = vld [vmem:[%s897_s3 + $0x20] sm:$0xff]  ;;  %v639_v20 = vld [vmem:[%s897_s3 + $0x18] sm:$0xff]  ;;  %v638_v22 = vld [vmem:[%s897_s3 + $0x10] sm:$0xff] }
   0x6   :  { %vm71_vm3 = vcmp.eq.s32.totalorder %v766_v4, 32  ;;  %v648_v19 = vld [vmem:[%s897_s3 + $0x60] sm:$0xff]  ;;  %vm105_vm5 = vcmp.ge.s32.totalorder %v82_v17, 1  ;;  %vm106_vm6 = vcmp.lt.s32.totalorder %v82_v17, 2  ;;  %v647_v21 = vld [vmem:[%s897_s3 + $0x58] sm:$0xff]  ;;  %vm84_vm7 = vcmp.lt.s32.totalorder %v82_v17, 1 }
   0x7   :  { %vm107_vm8 = vmand %vm105_vm5, %vm106_vm6  ;;  %v646_v23 = vld [vmem:[%s897_s3 + $0x50] sm:$0xff]  ;;  %v86_v24 = vsel %vm84_vm7, 1.0, %v708_v6  ;;  %v637_v27 = vld [vmem:[%s897_s3 + $0x8] sm:$0xff]  ;;  %vm77_vm9 = vcmp.lt.s32.totalorder %v766_v4, 32 }
   0x8   :  { %317 = vmatpush.bf16.msra.mxu1 %v642_v13  ;;  %v108_v25 = vsel %vm107_vm8, 1.0, %v708_v6  ;;  %v645_v28 = vld [vmem:[%s897_s3 + $0x48] sm:$0xff]  ;;  %v506_v29 = vadd.f32 -1.0, %v86_v24  ;;  %v636_v31 = vld [vmem:[%s897_s3] sm:$0xff]  ;;  %v659_v42 = vld [vmem:[%s899_s5 + $0x38] sm:$0xff] }
   0x9   :  { %330 = vmatpush.bf16.msra.mxu2 %v650_v14  ;;  %v507_v30 = vadd.f32 -1.0, %v108_v25  ;;  %v644_v32 = vld [vmem:[%s897_s3 + $0x40] sm:$0xff]  ;;  %395 = vmatpush.bf16.msra.mxu3 %v659_v42  ;;  %v658_v51 = vld [vmem:[%s899_s5 + $0x30] sm:$0xff]  ;;  %v657_v60 = vld [vmem:[%s899_s5 + $0x28] sm:$0xff] }
   0xa   :  { %v88_v34 = vmul.f32 1e+30, %v506_v29  ;;  %v655_v12 = vld [vmem:[%s899_s5 + $0x18] sm:$0xff]  ;;  %v665_v29 = vld [vmem:[%s901_s7 + $0x28] sm:$0xff] }
   0xb   :  { %v110_v35 = vmul.f32 1e+30, %v507_v30  ;;  %v664_v30 = vld [vmem:[%s901_s7 + $0x20] sm:$0xff]  ;;  %v661_v42 = vld [vmem:[%s901_s7 + $0x8] sm:$0xff] }
   0xc   :  { %318 = vmatpush.bf16.msra.mxu1 %v641_v15  ;;  %v35_v15 = vld [vmem:[%s896_s2] sm:$0xf] }
   0xd   :  { %331 = vmatpush.bf16.msra.mxu2 %v649_v16  ;;  %396 = vmatpush.bf16.msra.mxu3 %v658_v51 }
  0x10   :  { %319 = vmatpush.bf16.msra.mxu1 %v640_v18 }
  0x11   :  { %332 = vmatpush.bf16.msra.mxu2 %v648_v19  ;;  %397 = vmatpush.bf16.msra.mxu3 %v657_v60 }
  0x14   :  { %320 = vmatpush.bf16.msra.mxu1 %v639_v20 }
  0x15   :  { %333 = vmatpush.bf16.msra.mxu2 %v647_v21 }
  0x18   :  { %321 = vmatpush.bf16.msra.mxu1 %v638_v22 }
  0x19   :  { %334 = vmatpush.bf16.msra.mxu2 %v646_v23 }
  0x1c   :  { %322 = vmatpush.bf16.msra.mxu1 %v637_v27  ;;  %v667_v27 = vld [vmem:[%s901_s7 + $0x38] sm:$0xff] }
  0x1d   :  { %335 = vmatpush.bf16.msra.mxu2 %v645_v28  ;;  %461 = vmatpush.bf16.msrb.mxu0 %v667_v27  ;;  %v666_v28 = vld [vmem:[%s901_s7 + $0x30] sm:$0xff] }
  0x20   :  { %323 = vmatpush.bf16.msra.mxu1 %v636_v31  ;;  %v663_v31 = vld [vmem:[%s901_s7 + $0x18] sm:$0xff] }
  0x21   :  { %336 = vmatpush.bf16.msra.mxu2 %v644_v32  ;;  %462 = vmatpush.bf16.msrb.mxu0 %v666_v28 }
  0x25   :  { %463 = vmatpush.bf16.msrb.mxu0 %v665_v29 }
  0x29   :  { %464 = vmatpush.bf16.msrb.mxu0 %v664_v30 }
  0x2d   :  { %465 = vmatpush.bf16.msrb.mxu0 %v663_v31 }
  0x74   :  { %v40_v5 = vpop.permute.xlu0 %39 }
  0x75   :  { %vm41_vm2 = vcmp.eq.s32.totalorder %v766_v4, %v40_v5  ;;  %v656_v5 = vld [vmem:[%s899_s5 + $0x20] sm:$0xff] }
  0x76   :  { %v42_v7 = vsel %vm41_vm2, 1.0, %v708_v6  ;;  %398 = vmatpush.bf16.msra.mxu3 %v656_v5 }
  0x77   :  { %505 = vmatmul.msk.f32.vlgmr.msra.gmra.mxu0 %vm43_vm1, %v42_v7 }
  0x7a   :  { %399 = vmatpush.bf16.msra.mxu3 %v655_v12 }
  0xf4   :  { %v68_v8 = vpop.f32.mrf.mxu0 }
  0xf5   :  { %v72_v9 = vsel %vm71_vm3, %v68_v8, 0.0 }
  0xf6   :  { %v74_v10 = vsel %vm73_vm4, %v72_v9, 0.0 }
  0xf7   :  { %75 = vadd.xlane.f32.xlu0 %v74_v10 }
 0x16a   :  { %v76_v26 = vpop.xlane.xlu0 %75 }
 0x16b   :  { %675 = vtanh.f32 %v76_v26  ;;  %v652_v26 = vld [vmem:[%s899_s5] sm:$0xff] }
 0x171   :  { %v676_v33 = vpop.eup %675 }
 0x172   :  { %v79_v36 = vmul.f32 %v676_v33, %v68_v8  ;;  %v662_v33 = vld [vmem:[%s901_s7 + $0x10] sm:$0xff] }
 0x173   :  { %466 = vmatpush.bf16.msrb.mxu0 %v662_v33 }
 0x174   :  { %v80_v37 = vsel %vm77_vm9, %v79_v36, 0.0 }
 0x175   :  { %v89_v38 = vadd.f32 %v88_v34, %v80_v37  ;;  %v97_v39 = vmul.f32 %v86_v24, %v80_v37  ;;  %v111_v40 = vadd.f32 %v110_v35, %v80_v37  ;;  %v119_v41 = vmul.f32 %v108_v25, %v80_v37  ;;  %v654_v24 = vld [vmem:[%s899_s5 + $0x10] sm:$0xff]  ;;  %v653_v25 = vld [vmem:[%s899_s5 + $0x8] sm:$0xff]  ;;  %v672_v34 = vld [vmem:[%s898_s4] ss:$0 sm:$0xff] }
 0x176   :  { %400 = vmatpush.bf16.msra.mxu3 %v654_v24 }
 0x177   :  { %v90_v43 = vsel %vm73_vm4, %v89_v38, -inf  ;;  %v98_v44 = vsel %vm73_vm4, %v97_v39, 0.0  ;;  %v112_v45 = vsel %vm73_vm4, %v111_v40, -inf  ;;  %v120_v46 = vsel %vm73_vm4, %v119_v41, 0.0  ;;  %467 = vmatpush.bf16.msrb.mxu0 %v661_v42 }
 0x178   :  { %v91_v47 = vrot.slane %v90_v43, 4  ;;  %v99_v48 = vrot.slane %v98_v44, 4  ;;  %v113_v49 = vrot.slane %v112_v45, 4  ;;  %v121_v50 = vrot.slane %v120_v46, 4 }
 0x17a   :  { %v92_v52 = vmax.f32 %v90_v43, %v91_v47  ;;  %v100_v53 = vadd.f32 %v99_v48, %v98_v44  ;;  %v114_v54 = vmax.f32 %v112_v45, %v113_v49  ;;  %v122_v55 = vadd.f32 %v121_v50, %v120_v46  ;;  %401 = vmatpush.bf16.msra.mxu3 %v653_v25  ;;  %v660_v43 = vld [vmem:[%s901_s7] sm:$0xff] }
 0x17b   :  { %468 = vmatpush.bf16.msrb.mxu0 %v660_v43  ;;  %v673_v44 = vld [vmem:[%s900_s6] ss:$0 sm:$0xff]  ;;  %s709_s6 = smov [#allocation2]  }
 0x17c   :  { %v93_v56 = vrot.slane %v92_v52, 2  ;;  %v101_v57 = vrot.slane %v100_v53, 2  ;;  %v115_v58 = vrot.slane %v114_v54, 2  ;;  %v123_v59 = vrot.slane %v122_v55, 2  ;;  %v674_v50 = vld [vmem:[%s902_s8] ss:$0 sm:$0xff] }
 0x17d   :  { %s493_s7 = sshll.u32 %s709_s6, 4  ;;  %s494_s7 = int_to_ptr.vmem [resolvable:$true] %s493_s7 }
 0x17e   :  { %v94_v61 = vmax.f32 %v92_v52, %v93_v56  ;;  %v102_v62 = vadd.f32 %v101_v57, %v100_v53  ;;  %v116_v63 = vmax.f32 %v114_v54, %v115_v58  ;;  %v124_v0 = vadd.f32 %v123_v59, %v122_v55  ;;  %402 = vmatpush.bf16.msra.mxu3 %v652_v26 }
 0x180   :  { %v103_v1 = vrot.slane %v102_v62, 1  ;;  %v117_v2 = vrot.slane %v116_v63, 1  ;;  %v125_v3 = vrot.slane %v124_v0, 1  ;;  %v95_v6 = vrot.slane %v94_v61, 1 }
 0x182   :  { %v118_v7 = vmax.f32 %v116_v63, %v117_v2  ;;  %v126_v8 = vadd.f32 %v125_v3, %v124_v0  ;;  %v104_v9 = vadd.f32 %v103_v1, %v102_v62  ;;  %v96_v13 = vmax.f32 %v94_v61, %v95_v6 }
 0x184   :  { %v129_v10 = vrot.slane %v118_v7, 7  ;;  %v130_v11 = vrot.slane %v126_v8, 7 }
 0x186   :  { %v135_v14 = vsel %vm133_vm10, %v104_v9, %v130_v11  ;;  %v134_v17 = vsel %vm133_vm10, %v96_v13, %v129_v10 }
 0x187   :  { %v138_v16 = vrot.slane %v135_v14, 6 }
 0x189   :  { %v139_v18 = vsel %vm73_vm4, %v134_v17, %v138_v16 }
 0x18a   :  { %v141_v19 = vadd.f32 %v139_v18, %v35_v15 }
 0x18c   :  { %210 = vst [vmem:[#allocation1] ss:$4 sm:$0xff] %v141_v19 }
 0x193   :  { %v211_v20 = vld.sshfl [vmem:[#allocation1] sm:$0xff pattern:$0x73625140]  ;;  %v212_v21 = vld.sshfl [vmem:[#allocation1 + $0x8] sm:$0xff pattern:$0x73625140] }
 0x194   :  { %v215_v22 = vpack.c.bf16 %v211_v20, %v211_v20  ;;  %v216_v23 = vpack.c.bf16 %v212_v21, %v212_v21 }
 0x196   :  { %324 = vmatmul.bf16.vlgmr.msra.gmra.mxu1 %v215_v22  ;;  %337 = vmatmul.bf16.vlgmr.msra.gmra.mxu2 %v216_v23 }
 0x213   :  { %v325_v32 = vpop.f32.mrf.mxu1 }
 0x214   :  { %v326_v35 = vadd.f32 %v672_v34, %v325_v32 }
 0x219   :  { %v338_v36 = vpop.f32.mrf.mxu2 }
 0x21a   :  { %v339_v37 = vadd.f32 %v338_v36, %v326_v35 }
 0x21b   :  { %v327_v38 = vpop.f32.mrf.mxu1 }
 0x21c   :  { %v342_v39 = vmax.f32 %v339_v37, 0.0 }
 0x21e   :  { %v343_v40 = vpack.c.bf16 %v342_v39, %v342_v39 }
 0x220   :  { %403 = vmatmul.bf16.vlgmr.msra.gmra.mxu3 %v343_v40 }
 0x221   :  { %v340_v41 = vpop.f32.mrf.mxu2 }
 0x2a3   :  { %v404_v45 = vpop.f32.mrf.mxu3 }
 0x2a4   :  { %v405_v46 = vadd.f32 %v673_v44, %v404_v45 }
 0x2a6   :  { %v408_v47 = vmax.f32 %v405_v46, 0.0 }
 0x2a8   :  { %v409_v48 = vpack.c.bf16 %v408_v47, %v408_v47 }
 0x2aa   :  { %469 = vmatmul.bf16.vlgmr.msrb.gmra.mxu0 %v409_v48 }
 0x2ab   :  { %v406_v49 = vpop.f32.mrf.mxu3 }
 0x327   :  { %v470_v51 = vpop.f32.mrf.mxu0 }
 0x328   :  { %v471_v52 = vadd.f32 %v674_v50, %v470_v51 }
 0x32a   :  { %v474_v53 = vsel %vm77_vm9, %v471_v52, -1e+30 }
 0x32b   :  { %v475_v54 = vsel %vm73_vm4, %v474_v53, -inf }
 0x32c   :  { %476 = vmax.xlane.f32.xlu1 %v475_v54 }
 0x32f   :  { %v472_v55 = vpop.f32.mrf.mxu0 }
 0x39f   :  { %v477_v56 = vpop.xlane.xlu1 %476 }
 0x3a0   :  { %v478_v57 = vsub.f32 %v474_v53, %v477_v56 }
 0x3a2   :  { %v479_v58 = vmul.f32 1.442695, %v478_v57 }
 0x3a4   :  { %677 = vpow2.f32 %v479_v58 }
 0x3aa   :  { %v678_v59 = vpop.eup %677 }
 0x3ab   :  { %v481_v60 = vsel %vm73_vm4, %v678_v59, 0.0 }
 0x3ac   :  { %482 = vadd.xlane.f32.xlu1 %v481_v60 }
 0x41f   :  { %v483_v61 = vpop.xlane.xlu1 %482 }
 0x420   :  { %679 = vlog2.f32 %v483_v61 }
 0x426   :  { %v680_v62 = vpop.eup %679 }
 0x427   :  { %v485_v4 = vmul.f32 0.6931472, %v680_v62 }
 0x429   :  { %v486_v63 = vsub.f32 %v478_v57, %v485_v4 }
 0x42b   :  { %487 = vst [vmem:[#allocation2] sm:$0x3] %v486_v63 }
 0x42c   :  { %498 = dma.vmem_to_hbm [thread:$0]  %s494_s7, 32, %s496_s12, [#allocation3]  }
 0x42d   :  { %705 = dma.done.wait [#allocation3], 32  }
 0x42e   :  { %706 = vsyncadd [#allocation3], 4294967264 }
 0x42f   :  { %503 = vsyncpa [#allocation3], 1 }

</bundles_post_ra>
